<compile_context>
chip_gen: v7x
topology: tpu7x:2x2x1
jax: 0.10.0
libtpu: 0.0.40
codegen_flags: <defaults>
</compile_context>

<pallas_src>
import jax
import jax.numpy as jnp
from jax import lax
from jax.experimental import pallas as pl
from jax.experimental.pallas import tpu as pltpu

# ----------------------------- model dims (small, synthetic) -----------------
B = 4          # real batch
B_PAD = 8      # batch padded to a full sublane tile
T_SRC = 8      # source sequence length
T_TGT = 8      # target sequence length
VOCAB = 32     # shared source/target vocab size
E = 32         # embedding dim
H = 32         # GRU hidden dim

LANES = 128            # one vreg of lanes
GW = 3 * LANES         # fused gate width: r-block | n-block | z-block (each 128 lanes)
R_OFF, N_OFF, Z_OFF = 0, LANES, 2 * LANES
VPAD = LANES           # vocab padded to one full lane vreg for the output store


# ----------------------------- kernel -----------------------------------------
def seq2seq_kernel(src_ref, tgt_ref,
                   enc_table_ref, enc_wh_ref, enc_bhn_ref,
                   dec_table_ref, dec_wh_ref, dec_bhn_ref,
                   out_w_ref, out_b_ref,
                   out_ref,
                   hs_scratch):
    # Hoist all weight loads / broadcasts out of the unrolled loops.
    enc_table = enc_table_ref[...]                                # (V, GW)
    dec_table = dec_table_ref[...]                                # (V, GW)
    enc_wh = enc_wh_ref[...]                                      # (LANES, GW), rows H: zero
    dec_wh = dec_wh_ref[...]                                      # (LANES, GW)
    enc_bhn = jnp.broadcast_to(enc_bhn_ref[...], (B_PAD, LANES))  # bh_n at lanes 0:H
    dec_bhn = jnp.broadcast_to(dec_bhn_ref[...], (B_PAD, LANES))
    vocab_iota = lax.broadcasted_iota(jnp.int32, (B_PAD, VOCAB), 1)

    def xg_for(tok_ref, t, table):
        # In-kernel embedding gather as a one-hot matmul: gathering row tok of `table`
        # == embedding lookup + x @ Wi + folded biases for all three gates.
        # Independent of the recurrence -> fills otherwise-idle MXU slots.
        tok = tok_ref[:, t:t + 1]                                  # (B_PAD, 1) int32
        onehot = jnp.where(vocab_iota == tok, 1.0, 0.0)            # (B_PAD, V) f32
        return jnp.dot(onehot, table, preferred_element_type=jnp.float32)  # (B_PAD, GW)

    def gru_step(xg, h, wh, bhn):
        # Single fused (B_PAD, LANES) @ (LANES, GW) matmul is the only recurrent MXU op.
        hg = jnp.dot(h, wh, preferred_element_type=jnp.float32)    # (B_PAD, GW)
        # All slices below are at 128-lane vreg boundaries -> free register selection;
        # all element-wise math is full-vreg (valid data in lanes 0:H, padding is
        # finite garbage that never reaches real outputs because weight pad rows are 0).
        r = jax.nn.sigmoid(xg[:, R_OFF:R_OFF + LANES] + hg[:, R_OFF:R_OFF + LANES])
        z = jax.nn.sigmoid(xg[:, Z_OFF:Z_OFF + LANES] + hg[:, Z_OFF:Z_OFF + LANES])
        n = jnp.tanh(xg[:, N_OFF:N_OFF + LANES]
                     + r * (hg[:, N_OFF:N_OFF + LANES] + bhn))
        return (1.0 - z) * n + z * h                               # (B_PAD, LANES)

    # h0 = zeros (as nn.GRU with no initial hidden); carried in vregs, 128-lane resident.
    h = jnp.zeros((B_PAD, LANES), jnp.float32)

    # ---------------- encoder: consume source sequence (fully unrolled) -------
    for t in range(T_SRC):
        h = gru_step(xg_for(src_ref, t, enc_table), h, enc_wh, enc_bhn)

    # ---------------- decoder: teacher forcing over targets (fully unrolled) --
    for t in range(T_TGT):
        h = gru_step(xg_for(tgt_ref, t, dec_table), h, dec_wh, dec_bhn)
        hs_scratch[t * B_PAD:(t + 1) * B_PAD, :] = h               # tile-aligned store

    # One vocab projection + one contiguous, lane-dense output store.
    out_ref[...] = jnp.dot(hs_scratch[...], out_w_ref[...],
                           preferred_element_type=jnp.float32) + out_b_ref[...]


# ----------------------------- parameters --------------------------------------
def init_params(key):
    """PyTorch-equivalent parameter shapes (GRU gate order r, z, n)."""
    ks = jax.random.split(key, 12)
    s = 0.1
    return dict(
        enc_emb=s * jax.random.normal(ks[0], (VOCAB, E), jnp.float32),
        dec_emb=s * jax.random.normal(ks[1], (VOCAB, E), jnp.float32),
        enc_wi=s * jax.random.normal(ks[2], (3, E, H), jnp.float32),
        enc_wh=s * jax.random.normal(ks[3], (3, H, H), jnp.float32),
        enc_bi=s * jax.random.normal(ks[4], (3, 1, H), jnp.float32),
        enc_bh=s * jax.random.normal(ks[5], (3, 1, H), jnp.float32),
        dec_wi=s * jax.random.normal(ks[6], (3, E, H), jnp.float32),
        dec_wh=s * jax.random.normal(ks[7], (3, H, H), jnp.float32),
        dec_bi=s * jax.random.normal(ks[8], (3, 1, H), jnp.float32),
        dec_bh=s * jax.random.normal(ks[9], (3, 1, H), jnp.float32),
        out_w=s * jax.random.normal(ks[10], (H, VOCAB), jnp.float32),
        out_b=s * jax.random.normal(ks[11], (1, VOCAB), jnp.float32),
    )


def fuse_params(params):
    """One-time weight preprocessing.

    Gates are spread over three vreg-aligned 128-lane blocks (r @ 0, n @ 128, z @ 256).
    The embedding, input-gate weights and the foldable biases (bi_r+bh_r, bi_z+bh_z,
    bi_n) are folded into a gatherable (V, 384) table; bh_n stays separate because it
    sits inside r*(...).  Hidden/output weights are zero-padded to 128 rows so the
    128-lane resident hidden state's pad lanes never contribute.
    """
    def fuse(emb, wi, wh, bi, bh):
        t_r = jnp.dot(emb, wi[0]) + bi[0] + bh[0]                  # (V, H)
        t_z = jnp.dot(emb, wi[1]) + bi[1] + bh[1]
        t_n = jnp.dot(emb, wi[2]) + bi[2]
        table = jnp.zeros((VOCAB, GW), jnp.float32)
        table = table.at[:, R_OFF:R_OFF + H].set(t_r)
        table = table.at[:, N_OFF:N_OFF + H].set(t_n)
        table = table.at[:, Z_OFF:Z_OFF + H].set(t_z)
        whp = jnp.zeros((LANES, GW), jnp.float32)
        whp = whp.at[:H, R_OFF:R_OFF + H].set(wh[0])
        whp = whp.at[:H, N_OFF:N_OFF + H].set(wh[2])
        whp = whp.at[:H, Z_OFF:Z_OFF + H].set(wh[1])
        bhn = jnp.zeros((1, LANES), jnp.float32).at[:, :H].set(bh[2])
        return table, whp, bhn

    enc_table, enc_wh, enc_bhn = fuse(params["enc_emb"], params["enc_wi"],
                                      params["enc_wh"], params["enc_bi"],
                                      params["enc_bh"])
    dec_table, dec_wh, dec_bhn = fuse(params["dec_emb"], params["dec_wi"],
                                      params["dec_wh"], params["dec_bi"],
                                      params["dec_bh"])
    out_w = jnp.zeros((LANES, VPAD), jnp.float32).at[:H, :VOCAB].set(params["out_w"])
    out_b = jnp.zeros((1, VPAD), jnp.float32).at[:, :VOCAB].set(params["out_b"])
    return dict(enc_table=enc_table, enc_wh=enc_wh, enc_bhn=enc_bhn,
                dec_table=dec_table, dec_wh=dec_wh, dec_bhn=dec_bhn,
                out_w=out_w, out_b=out_b)


# ----------------------------- forward ------------------------------------------
@jax.jit
def seq2seq_forward(src_tokens, tgt_tokens, fused):
    """inputs/targets are int32 token-id arrays (B, T_SRC) / (B, T_TGT).

    Returns time-major decoder logits (T_TGT, B, VOCAB) (nn.GRU default layout)."""
    src_p = jnp.zeros((B_PAD, T_SRC), jnp.int32).at[:B, :].set(src_tokens)
    tgt_p = jnp.zeros((B_PAD, T_TGT), jnp.int32).at[:B, :].set(tgt_tokens)

    vmem = pl.BlockSpec(memory_space=pltpu.MemorySpace.VMEM)
    logits = pl.pallas_call(
        seq2seq_kernel,
        out_shape=jax.ShapeDtypeStruct((T_TGT * B_PAD, VPAD), jnp.float32),
        in_specs=[vmem] * 10,
        out_specs=vmem,
        scratch_shapes=[pltpu.VMEM((T_TGT * B_PAD, LANES), jnp.float32)],
    )(src_p, tgt_p,
      fused["enc_table"], fused["enc_wh"], fused["enc_bhn"],
      fused["dec_table"], fused["dec_wh"], fused["dec_bhn"],
      fused["out_w"], fused["out_b"])

    # Free reshape + one small slice dropping batch/vocab padding (no transpose HLO).
    return logits.reshape(T_TGT, B_PAD, VPAD)[:, :B, :VOCAB]


# ----------------------------- pure-JAX reference (PyTorch GRU semantics) --------
def seq2seq_reference(src_tokens, tgt_tokens, p):
    def gru_step(prefix, x, h):
        wi, wh = p[prefix + "_wi"], p[prefix + "_wh"]
        bi, bh = p[prefix + "_bi"], p[prefix + "_bh"]
        r = jax.nn.sigmoid(x @ wi[0] + bi[0] + h @ wh[0] + bh[0])
        z = jax.nn.sigmoid(x @ wi[1] + bi[1] + h @ wh[1] + bh[1])
        n = jnp.tanh(x @ wi[2] + bi[2] + r * (h @ wh[2] + bh[2]))
        return (1.0 - z) * n + z * h

    h = jnp.zeros((B, H), jnp.float32)
    for t in range(T_SRC):
        h = gru_step("enc", p["enc_emb"][src_tokens[:, t]], h)
    outs = []
    for t in range(T_TGT):
        h = gru_step("dec", p["dec_emb"][tgt_tokens[:, t]], h)
        outs.append(h @ p["out_w"] + p["out_b"])
    return jnp.stack(outs, axis=0)                                 # (T_TGT, B, VOCAB)


if __name__ == "__main__":
    key = jax.random.PRNGKey(0)
    k_p, k_src, k_tgt = jax.random.split(key, 3)
    params = init_params(k_p)
    fused = fuse_params(params)

    inputs = jax.random.randint(k_src, (B, T_SRC), 0, VOCAB, dtype=jnp.int32)
    targets = jax.random.randint(k_tgt, (B, T_TGT), 0, VOCAB, dtype=jnp.int32)

    decoder_outputs = seq2seq_forward(inputs, targets, fused)
    jax.block_until_ready(decoder_outputs)

    assert decoder_outputs.shape == (T_TGT, B, VOCAB)
    assert decoder_outputs.dtype == jnp.float32

    ref = seq2seq_reference(inputs, targets, params)
    err = float(jnp.max(jnp.abs(decoder_outputs - ref)))
    # Tolerance covers default MXU matmul precision differences vs. the XLA reference.
    assert err < 2e-2, f"max |kernel - reference| = {err}"

    print("KERNEL_OK")
</pallas_src>

<mosaic_0001>
module attributes {stable_mosaic.version = 11 : i64} {
  func.func @seq2seq_kernel(%arg0: memref<8x8xi32, #tpu.memory_space<vmem>>, %arg1: memref<8x8xi32, #tpu.memory_space<vmem>>, %arg2: memref<32x384xf32, #tpu.memory_space<vmem>>, %arg3: memref<128x384xf32, #tpu.memory_space<vmem>>, %arg4: memref<1x128xf32, #tpu.memory_space<vmem>>, %arg5: memref<32x384xf32, #tpu.memory_space<vmem>>, %arg6: memref<128x384xf32, #tpu.memory_space<vmem>>, %arg7: memref<1x128xf32, #tpu.memory_space<vmem>>, %arg8: memref<128x128xf32, #tpu.memory_space<vmem>>, %arg9: memref<1x128xf32, #tpu.memory_space<vmem>>, %arg10: memref<64x128xf32, #tpu.memory_space<vmem>>, %arg11: memref<64x128xf32, #tpu.memory_space<vmem>>) attributes {dimension_semantics = [], scalar_prefetch = 0 : i64, scratch_operands = 1 : i64, tpu.core_type = #tpu.core_type<tc>} {
    %c0 = arith.constant 0 : index
    %c0_0 = arith.constant 0 : index
    %0 = vector.load %arg2[%c0, %c0_0] : memref<32x384xf32, #tpu.memory_space<vmem>>, vector<32x384xf32>
    %c0_1 = arith.constant 0 : index
    %c0_2 = arith.constant 0 : index
    %1 = vector.load %arg5[%c0_1, %c0_2] : memref<32x384xf32, #tpu.memory_space<vmem>>, vector<32x384xf32>
    %c0_3 = arith.constant 0 : index
    %c0_4 = arith.constant 0 : index
    %2 = vector.load %arg3[%c0_3, %c0_4] : memref<128x384xf32, #tpu.memory_space<vmem>>, vector<128x384xf32>
    %c0_5 = arith.constant 0 : index
    %c0_6 = arith.constant 0 : index
    %3 = vector.load %arg6[%c0_5, %c0_6] : memref<128x384xf32, #tpu.memory_space<vmem>>, vector<128x384xf32>
    %c0_7 = arith.constant 0 : index
    %c0_8 = arith.constant 0 : index
    %4 = vector.load %arg4[%c0_7, %c0_8] : memref<1x128xf32, #tpu.memory_space<vmem>>, vector<1x128xf32>
    %5 = vector.shape_cast %4 : vector<1x128xf32> to vector<1x128xf32>
    %6 = vector.broadcast %5 : vector<1x128xf32> to vector<8x128xf32>
    %c0_9 = arith.constant 0 : index
    %c0_10 = arith.constant 0 : index
    %7 = vector.load %arg7[%c0_9, %c0_10] : memref<1x128xf32, #tpu.memory_space<vmem>>, vector<1x128xf32>
    %8 = vector.shape_cast %7 : vector<1x128xf32> to vector<1x128xf32>
    %9 = vector.broadcast %8 : vector<1x128xf32> to vector<8x128xf32>
    %10 = tpu.iota {dimensions = array<i32: 1>} : vector<8x32xi32>
    %cst = arith.constant 0.000000e+00 : f32
    %11 = vector.broadcast %cst : f32 to vector<8x128xf32>
    %c0_11 = arith.constant 0 : index
    %c0_12 = arith.constant 0 : index
    %12 = vector.load %arg0[%c0_11, %c0_12] : memref<8x8xi32, #tpu.memory_space<vmem>>, vector<8x1xi32>
    %13 = vector.broadcast %12 : vector<8x1xi32> to vector<8x32xi32>
    %14 = arith.cmpi eq, %10, %13 : vector<8x32xi32>
    %cst_13 = arith.constant 1.000000e+00 : f32
    %cst_14 = arith.constant 0.000000e+00 : f32
    %15 = vector.broadcast %cst_13 : f32 to vector<8x32xf32>
    %16 = vector.broadcast %cst_14 : f32 to vector<8x32xf32>
    %17 = arith.select %14, %15, %16 : vector<8x32xi1>, vector<8x32xf32>
    %cst_15 = arith.constant dense<0.000000e+00> : vector<8x384xf32>
    %18 = tpu.matmul %17, %0, %cst_15 {dimension_numbers = #tpu.dot_dimension_numbers<[1], [0], [0], [1], [0, 0, 1, 1], [], []>} : vector<8x32xf32>, vector<32x384xf32>, vector<8x384xf32> -> vector<8x384xf32>
    %cst_16 = arith.constant dense<0.000000e+00> : vector<8x384xf32>
    %19 = tpu.matmul %11, %2, %cst_16 {dimension_numbers = #tpu.dot_dimension_numbers<[1], [0], [0], [1], [0, 0, 1, 1], [], []>} : vector<8x128xf32>, vector<128x384xf32>, vector<8x384xf32> -> vector<8x384xf32>
    %20 = vector.extract_strided_slice %18 {offsets = [0, 0], sizes = [8, 128], strides = [1, 1]} : vector<8x384xf32> to vector<8x128xf32>
    %21 = vector.extract_strided_slice %19 {offsets = [0, 0], sizes = [8, 128], strides = [1, 1]} : vector<8x384xf32> to vector<8x128xf32>
    %22 = arith.addf %20, %21 : vector<8x128xf32>
    %23 = arith.negf %22 : vector<8x128xf32>
    %24 = math.exp %23 : vector<8x128xf32>
    %cst_17 = arith.constant 1.000000e+00 : f32
    %25 = vector.broadcast %cst_17 : f32 to vector<8x128xf32>
    %26 = arith.addf %25, %24 : vector<8x128xf32>
    %27 = arith.divf %25, %26 : vector<8x128xf32>
    %28 = vector.extract_strided_slice %18 {offsets = [0, 256], sizes = [8, 128], strides = [1, 1]} : vector<8x384xf32> to vector<8x128xf32>
    %29 = vector.extract_strided_slice %19 {offsets = [0, 256], sizes = [8, 128], strides = [1, 1]} : vector<8x384xf32> to vector<8x128xf32>
    %30 = arith.addf %28, %29 : vector<8x128xf32>
    %31 = arith.negf %30 : vector<8x128xf32>
    %32 = math.exp %31 : vector<8x128xf32>
    %cst_18 = arith.constant 1.000000e+00 : f32
    %33 = vector.broadcast %cst_18 : f32 to vector<8x128xf32>
    %34 = arith.addf %33, %32 : vector<8x128xf32>
    %35 = arith.divf %33, %34 : vector<8x128xf32>
    %36 = vector.extract_strided_slice %18 {offsets = [0, 128], sizes = [8, 128], strides = [1, 1]} : vector<8x384xf32> to vector<8x128xf32>
    %37 = vector.extract_strided_slice %19 {offsets = [0, 128], sizes = [8, 128], strides = [1, 1]} : vector<8x384xf32> to vector<8x128xf32>
    %38 = arith.addf %37, %6 : vector<8x128xf32>
    %39 = arith.mulf %27, %38 : vector<8x128xf32>
    %40 = arith.addf %36, %39 : vector<8x128xf32>
    %41 = math.tanh %40 : vector<8x128xf32>
    %cst_19 = arith.constant 1.000000e+00 : f32
    %42 = vector.broadcast %cst_19 : f32 to vector<8x128xf32>
    %43 = arith.subf %42, %35 : vector<8x128xf32>
    %44 = arith.mulf %43, %41 : vector<8x128xf32>
    %45 = arith.mulf %35, %11 : vector<8x128xf32>
    %46 = arith.addf %44, %45 : vector<8x128xf32>
    %c0_20 = arith.constant 0 : index
    %c1 = arith.constant 1 : index
    %47 = vector.load %arg0[%c0_20, %c1] : memref<8x8xi32, #tpu.memory_space<vmem>>, vector<8x1xi32>
    %48 = vector.broadcast %47 : vector<8x1xi32> to vector<8x32xi32>
    %49 = arith.cmpi eq, %10, %48 : vector<8x32xi32>
    %cst_21 = arith.constant 1.000000e+00 : f32
    %cst_22 = arith.constant 0.000000e+00 : f32
    %50 = vector.broadcast %cst_21 : f32 to vector<8x32xf32>
    %51 = vector.broadcast %cst_22 : f32 to vector<8x32xf32>
    %52 = arith.select %49, %50, %51 : vector<8x32xi1>, vector<8x32xf32>
    %cst_23 = arith.constant dense<0.000000e+00> : vector<8x384xf32>
    %53 = tpu.matmul %52, %0, %cst_23 {dimension_numbers = #tpu.dot_dimension_numbers<[1], [0], [0], [1], [0, 0, 1, 1], [], []>} : vector<8x32xf32>, vector<32x384xf32>, vector<8x384xf32> -> vector<8x384xf32>
    %cst_24 = arith.constant dense<0.000000e+00> : vector<8x384xf32>
    %54 = tpu.matmul %46, %2, %cst_24 {dimension_numbers = #tpu.dot_dimension_numbers<[1], [0], [0], [1], [0, 0, 1, 1], [], []>} : vector<8x128xf32>, vector<128x384xf32>, vector<8x384xf32> -> vector<8x384xf32>
    %55 = vector.extract_strided_slice %53 {offsets = [0, 0], sizes = [8, 128], strides = [1, 1]} : vector<8x384xf32> to vector<8x128xf32>
    %56 = vector.extract_strided_slice %54 {offsets = [0, 0], sizes = [8, 128], strides = [1, 1]} : vector<8x384xf32> to vector<8x128xf32>
    %57 = arith.addf %55, %56 : vector<8x128xf32>
    %58 = arith.negf %57 : vector<8x128xf32>
    %59 = math.exp %58 : vector<8x128xf32>
    %cst_25 = arith.constant 1.000000e+00 : f32
    %60 = vector.broadcast %cst_25 : f32 to vector<8x128xf32>
    %61 = arith.addf %60, %59 : vector<8x128xf32>
    %62 = arith.divf %60, %61 : vector<8x128xf32>
    %63 = vector.extract_strided_slice %53 {offsets = [0, 256], sizes = [8, 128], strides = [1, 1]} : vector<8x384xf32> to vector<8x128xf32>
    %64 = vector.extract_strided_slice %54 {offsets = [0, 256], sizes = [8, 128], strides = [1, 1]} : vector<8x384xf32> to vector<8x128xf32>
    %65 = arith.addf %63, %64 : vector<8x128xf32>
    %66 = arith.negf %65 : vector<8x128xf32>
    %67 = math.exp %66 : vector<8x128xf32>
    %cst_26 = arith.constant 1.000000e+00 : f32
    %68 = vector.broadcast %cst_26 : f32 to vector<8x128xf32>
    %69 = arith.addf %68, %67 : vector<8x128xf32>
    %70 = arith.divf %68, %69 : vector<8x128xf32>
    %71 = vector.extract_strided_slice %53 {offsets = [0, 128], sizes = [8, 128], strides = [1, 1]} : vector<8x384xf32> to vector<8x128xf32>
    %72 = vector.extract_strided_slice %54 {offsets = [0, 128], sizes = [8, 128], strides = [1, 1]} : vector<8x384xf32> to vector<8x128xf32>
    %73 = arith.addf %72, %6 : vector<8x128xf32>
    %74 = arith.mulf %62, %73 : vector<8x128xf32>
    %75 = arith.addf %71, %74 : vector<8x128xf32>
    %76 = math.tanh %75 : vector<8x128xf32>
    %cst_27 = arith.constant 1.000000e+00 : f32
    %77 = vector.broadcast %cst_27 : f32 to vector<8x128xf32>
    %78 = arith.subf %77, %70 : vector<8x128xf32>
    %79 = arith.mulf %78, %76 : vector<8x128xf32>
    %80 = arith.mulf %70, %46 : vector<8x128xf32>
    %81 = arith.addf %79, %80 : vector<8x128xf32>
    %c0_28 = arith.constant 0 : index
    %c2 = arith.constant 2 : index
    %82 = vector.load %arg0[%c0_28, %c2] : memref<8x8xi32, #tpu.memory_space<vmem>>, vector<8x1xi32>
    %83 = vector.broadcast %82 : vector<8x1xi32> to vector<8x32xi32>
    %84 = arith.cmpi eq, %10, %83 : vector<8x32xi32>
    %cst_29 = arith.constant 1.000000e+00 : f32
    %cst_30 = arith.constant 0.000000e+00 : f32
    %85 = vector.broadcast %cst_29 : f32 to vector<8x32xf32>
    %86 = vector.broadcast %cst_30 : f32 to vector<8x32xf32>
    %87 = arith.select %84, %85, %86 : vector<8x32xi1>, vector<8x32xf32>
    %cst_31 = arith.constant dense<0.000000e+00> : vector<8x384xf32>
    %88 = tpu.matmul %87, %0, %cst_31 {dimension_numbers = #tpu.dot_dimension_numbers<[1], [0], [0], [1], [0, 0, 1, 1], [], []>} : vector<8x32xf32>, vector<32x384xf32>, vector<8x384xf32> -> vector<8x384xf32>
    %cst_32 = arith.constant dense<0.000000e+00> : vector<8x384xf32>
    %89 = tpu.matmul %81, %2, %cst_32 {dimension_numbers = #tpu.dot_dimension_numbers<[1], [0], [0], [1], [0, 0, 1, 1], [], []>} : vector<8x128xf32>, vector<128x384xf32>, vector<8x384xf32> -> vector<8x384xf32>
    %90 = vector.extract_strided_slice %88 {offsets = [0, 0], sizes = [8, 128], strides = [1, 1]} : vector<8x384xf32> to vector<8x128xf32>
    %91 = vector.extract_strided_slice %89 {offsets = [0, 0], sizes = [8, 128], strides = [1, 1]} : vector<8x384xf32> to vector<8x128xf32>
    %92 = arith.addf %90, %91 : vector<8x128xf32>
    %93 = arith.negf %92 : vector<8x128xf32>
    %94 = math.exp %93 : vector<8x128xf32>
    %cst_33 = arith.constant 1.000000e+00 : f32
    %95 = vector.broadcast %cst_33 : f32 to vector<8x128xf32>
    %96 = arith.addf %95, %94 : vector<8x128xf32>
    %97 = arith.divf %95, %96 : vector<8x128xf32>
    %98 = vector.extract_strided_slice %88 {offsets = [0, 256], sizes = [8, 128], strides = [1, 1]} : vector<8x384xf32> to vector<8x128xf32>
    %99 = vector.extract_strided_slice %89 {offsets = [0, 256], sizes = [8, 128], strides = [1, 1]} : vector<8x384xf32> to vector<8x128xf32>
    %100 = arith.addf %98, %99 : vector<8x128xf32>
    %101 = arith.negf %100 : vector<8x128xf32>
    %102 = math.exp %101 : vector<8x128xf32>
    %cst_34 = arith.constant 1.000000e+00 : f32
    %103 = vector.broadcast %cst_34 : f32 to vector<8x128xf32>
    %104 = arith.addf %103, %102 : vector<8x128xf32>
    %105 = arith.divf %103, %104 : vector<8x128xf32>
    %106 = vector.extract_strided_slice %88 {offsets = [0, 128], sizes = [8, 128], strides = [1, 1]} : vector<8x384xf32> to vector<8x128xf32>
    %107 = vector.extract_strided_slice %89 {offsets = [0, 128], sizes = [8, 128], strides = [1, 1]} : vector<8x384xf32> to vector<8x128xf32>
    %108 = arith.addf %107, %6 : vector<8x128xf32>
    %109 = arith.mulf %97, %108 : vector<8x128xf32>
    %110 = arith.addf %106, %109 : vector<8x128xf32>
    %111 = math.tanh %110 : vector<8x128xf32>
    %cst_35 = arith.constant 1.000000e+00 : f32
    %112 = vector.broadcast %cst_35 : f32 to vector<8x128xf32>
    %113 = arith.subf %112, %105 : vector<8x128xf32>
    %114 = arith.mulf %113, %111 : vector<8x128xf32>
    %115 = arith.mulf %105, %81 : vector<8x128xf32>
    %116 = arith.addf %114, %115 : vector<8x128xf32>
    %c0_36 = arith.constant 0 : index
    %c3 = arith.constant 3 : index
    %117 = vector.load %arg0[%c0_36, %c3] : memref<8x8xi32, #tpu.memory_space<vmem>>, vector<8x1xi32>
    %118 = vector.broadcast %117 : vector<8x1xi32> to vector<8x32xi32>
    %119 = arith.cmpi eq, %10, %118 : vector<8x32xi32>
    %cst_37 = arith.constant 1.000000e+00 : f32
    %cst_38 = arith.constant 0.000000e+00 : f32
    %120 = vector.broadcast %cst_37 : f32 to vector<8x32xf32>
    %121 = vector.broadcast %cst_38 : f32 to vector<8x32xf32>
    %122 = arith.select %119, %120, %121 : vector<8x32xi1>, vector<8x32xf32>
    %cst_39 = arith.constant dense<0.000000e+00> : vector<8x384xf32>
    %123 = tpu.matmul %122, %0, %cst_39 {dimension_numbers = #tpu.dot_dimension_numbers<[1], [0], [0], [1], [0, 0, 1, 1], [], []>} : vector<8x32xf32>, vector<32x384xf32>, vector<8x384xf32> -> vector<8x384xf32>
    %cst_40 = arith.constant dense<0.000000e+00> : vector<8x384xf32>
    %124 = tpu.matmul %116, %2, %cst_40 {dimension_numbers = #tpu.dot_dimension_numbers<[1], [0], [0], [1], [0, 0, 1, 1], [], []>} : vector<8x128xf32>, vector<128x384xf32>, vector<8x384xf32> -> vector<8x384xf32>
    %125 = vector.extract_strided_slice %123 {offsets = [0, 0], sizes = [8, 128], strides = [1, 1]} : vector<8x384xf32> to vector<8x128xf32>
    %126 = vector.extract_strided_slice %124 {offsets = [0, 0], sizes = [8, 128], strides = [1, 1]} : vector<8x384xf32> to vector<8x128xf32>
    %127 = arith.addf %125, %126 : vector<8x128xf32>
    %128 = arith.negf %127 : vector<8x128xf32>
    %129 = math.exp %128 : vector<8x128xf32>
    %cst_41 = arith.constant 1.000000e+00 : f32
    %130 = vector.broadcast %cst_41 : f32 to vector<8x128xf32>
    %131 = arith.addf %130, %129 : vector<8x128xf32>
    %132 = arith.divf %130, %131 : vector<8x128xf32>
    %133 = vector.extract_strided_slice %123 {offsets = [0, 256], sizes = [8, 128], strides = [1, 1]} : vector<8x384xf32> to vector<8x128xf32>
    %134 = vector.extract_strided_slice %124 {offsets = [0, 256], sizes = [8, 128], strides = [1, 1]} : vector<8x384xf32> to vector<8x128xf32>
    %135 = arith.addf %133, %134 : vector<8x128xf32>
    %136 = arith.negf %135 : vector<8x128xf32>
    %137 = math.exp %136 : vector<8x128xf32>
    %cst_42 = arith.constant 1.000000e+00 : f32
    %138 = vector.broadcast %cst_42 : f32 to vector<8x128xf32>
    %139 = arith.addf %138, %137 : vector<8x128xf32>
    %140 = arith.divf %138, %139 : vector<8x128xf32>
    %141 = vector.extract_strided_slice %123 {offsets = [0, 128], sizes = [8, 128], strides = [1, 1]} : vector<8x384xf32> to vector<8x128xf32>
    %142 = vector.extract_strided_slice %124 {offsets = [0, 128], sizes = [8, 128], strides = [1, 1]} : vector<8x384xf32> to vector<8x128xf32>
    %143 = arith.addf %142, %6 : vector<8x128xf32>
    %144 = arith.mulf %132, %143 : vector<8x128xf32>
    %145 = arith.addf %141, %144 : vector<8x128xf32>
    %146 = math.tanh %145 : vector<8x128xf32>
    %cst_43 = arith.constant 1.000000e+00 : f32
    %147 = vector.broadcast %cst_43 : f32 to vector<8x128xf32>
    %148 = arith.subf %147, %140 : vector<8x128xf32>
    %149 = arith.mulf %148, %146 : vector<8x128xf32>
    %150 = arith.mulf %140, %116 : vector<8x128xf32>
    %151 = arith.addf %149, %150 : vector<8x128xf32>
    %c0_44 = arith.constant 0 : index
    %c4 = arith.constant 4 : index
    %152 = vector.load %arg0[%c0_44, %c4] : memref<8x8xi32, #tpu.memory_space<vmem>>, vector<8x1xi32>
    %153 = vector.broadcast %152 : vector<8x1xi32> to vector<8x32xi32>
    %154 = arith.cmpi eq, %10, %153 : vector<8x32xi32>
    %cst_45 = arith.constant 1.000000e+00 : f32
    %cst_46 = arith.constant 0.000000e+00 : f32
    %155 = vector.broadcast %cst_45 : f32 to vector<8x32xf32>
    %156 = vector.broadcast %cst_46 : f32 to vector<8x32xf32>
    %157 = arith.select %154, %155, %156 : vector<8x32xi1>, vector<8x32xf32>
    %cst_47 = arith.constant dense<0.000000e+00> : vector<8x384xf32>
    %158 = tpu.matmul %157, %0, %cst_47 {dimension_numbers = #tpu.dot_dimension_numbers<[1], [0], [0], [1], [0, 0, 1, 1], [], []>} : vector<8x32xf32>, vector<32x384xf32>, vector<8x384xf32> -> vector<8x384xf32>
    %cst_48 = arith.constant dense<0.000000e+00> : vector<8x384xf32>
    %159 = tpu.matmul %151, %2, %cst_48 {dimension_numbers = #tpu.dot_dimension_numbers<[1], [0], [0], [1], [0, 0, 1, 1], [], []>} : vector<8x128xf32>, vector<128x384xf32>, vector<8x384xf32> -> vector<8x384xf32>
    %160 = vector.extract_strided_slice %158 {offsets = [0, 0], sizes = [8, 128], strides = [1, 1]} : vector<8x384xf32> to vector<8x128xf32>
    %161 = vector.extract_strided_slice %159 {offsets = [0, 0], sizes = [8, 128], strides = [1, 1]} : vector<8x384xf32> to vector<8x128xf32>
    %162 = arith.addf %160, %161 : vector<8x128xf32>
    %163 = arith.negf %162 : vector<8x128xf32>
    %164 = math.exp %163 : vector<8x128xf32>
    %cst_49 = arith.constant 1.000000e+00 : f32
    %165 = vector.broadcast %cst_49 : f32 to vector<8x128xf32>
    %166 = arith.addf %165, %164 : vector<8x128xf32>
    %167 = arith.divf %165, %166 : vector<8x128xf32>
    %168 = vector.extract_strided_slice %158 {offsets = [0, 256], sizes = [8, 128], strides = [1, 1]} : vector<8x384xf32> to vector<8x128xf32>
    %169 = vector.extract_strided_slice %159 {offsets = [0, 256], sizes = [8, 128], strides = [1, 1]} : vector<8x384xf32> to vector<8x128xf32>
    %170 = arith.addf %168, %169 : vector<8x128xf32>
    %171 = arith.negf %170 : vector<8x128xf32>
    %172 = math.exp %171 : vector<8x128xf32>
    %cst_50 = arith.constant 1.000000e+00 : f32
    %173 = vector.broadcast %cst_50 : f32 to vector<8x128xf32>
    %174 = arith.addf %173, %172 : vector<8x128xf32>
    %175 = arith.divf %173, %174 : vector<8x128xf32>
    %176 = vector.extract_strided_slice %158 {offsets = [0, 128], sizes = [8, 128], strides = [1, 1]} : vector<8x384xf32> to vector<8x128xf32>
    %177 = vector.extract_strided_slice %159 {offsets = [0, 128], sizes = [8, 128], strides = [1, 1]} : vector<8x384xf32> to vector<8x128xf32>
    %178 = arith.addf %177, %6 : vector<8x128xf32>
    %179 = arith.mulf %167, %178 : vector<8x128xf32>
    %180 = arith.addf %176, %179 : vector<8x128xf32>
    %181 = math.tanh %180 : vector<8x128xf32>
    %cst_51 = arith.constant 1.000000e+00 : f32
    %182 = vector.broadcast %cst_51 : f32 to vector<8x128xf32>
    %183 = arith.subf %182, %175 : vector<8x128xf32>
    %184 = arith.mulf %183, %181 : vector<8x128xf32>
    %185 = arith.mulf %175, %151 : vector<8x128xf32>
    %186 = arith.addf %184, %185 : vector<8x128xf32>
    %c0_52 = arith.constant 0 : index
    %c5 = arith.constant 5 : index
    %187 = vector.load %arg0[%c0_52, %c5] : memref<8x8xi32, #tpu.memory_space<vmem>>, vector<8x1xi32>
    %188 = vector.broadcast %187 : vector<8x1xi32> to vector<8x32xi32>
    %189 = arith.cmpi eq, %10, %188 : vector<8x32xi32>
    %cst_53 = arith.constant 1.000000e+00 : f32
    %cst_54 = arith.constant 0.000000e+00 : f32
    %190 = vector.broadcast %cst_53 : f32 to vector<8x32xf32>
    %191 = vector.broadcast %cst_54 : f32 to vector<8x32xf32>
    %192 = arith.select %189, %190, %191 : vector<8x32xi1>, vector<8x32xf32>
    %cst_55 = arith.constant dense<0.000000e+00> : vector<8x384xf32>
    %193 = tpu.matmul %192, %0, %cst_55 {dimension_numbers = #tpu.dot_dimension_numbers<[1], [0], [0], [1], [0, 0, 1, 1], [], []>} : vector<8x32xf32>, vector<32x384xf32>, vector<8x384xf32> -> vector<8x384xf32>
    %cst_56 = arith.constant dense<0.000000e+00> : vector<8x384xf32>
    %194 = tpu.matmul %186, %2, %cst_56 {dimension_numbers = #tpu.dot_dimension_numbers<[1], [0], [0], [1], [0, 0, 1, 1], [], []>} : vector<8x128xf32>, vector<128x384xf32>, vector<8x384xf32> -> vector<8x384xf32>
    %195 = vector.extract_strided_slice %193 {offsets = [0, 0], sizes = [8, 128], strides = [1, 1]} : vector<8x384xf32> to vector<8x128xf32>
    %196 = vector.extract_strided_slice %194 {offsets = [0, 0], sizes = [8, 128], strides = [1, 1]} : vector<8x384xf32> to vector<8x128xf32>
    %197 = arith.addf %195, %196 : vector<8x128xf32>
    %198 = arith.negf %197 : vector<8x128xf32>
    %199 = math.exp %198 : vector<8x128xf32>
    %cst_57 = arith.constant 1.000000e+00 : f32
    %200 = vector.broadcast %cst_57 : f32 to vector<8x128xf32>
    %201 = arith.addf %200, %199 : vector<8x128xf32>
    %202 = arith.divf %200, %201 : vector<8x128xf32>
    %203 = vector.extract_strided_slice %193 {offsets = [0, 256], sizes = [8, 128], strides = [1, 1]} : vector<8x384xf32> to vector<8x128xf32>
    %204 = vector.extract_strided_slice %194 {offsets = [0, 256], sizes = [8, 128], strides = [1, 1]} : vector<8x384xf32> to vector<8x128xf32>
    %205 = arith.addf %203, %204 : vector<8x128xf32>
    %206 = arith.negf %205 : vector<8x128xf32>
    %207 = math.exp %206 : vector<8x128xf32>
    %cst_58 = arith.constant 1.000000e+00 : f32
    %208 = vector.broadcast %cst_58 : f32 to vector<8x128xf32>
    %209 = arith.addf %208, %207 : vector<8x128xf32>
    %210 = arith.divf %208, %209 : vector<8x128xf32>
    %211 = vector.extract_strided_slice %193 {offsets = [0, 128], sizes = [8, 128], strides = [1, 1]} : vector<8x384xf32> to vector<8x128xf32>
    %212 = vector.extract_strided_slice %194 {offsets = [0, 128], sizes = [8, 128], strides = [1, 1]} : vector<8x384xf32> to vector<8x128xf32>
    %213 = arith.addf %212, %6 : vector<8x128xf32>
    %214 = arith.mulf %202, %213 : vector<8x128xf32>
    %215 = arith.addf %211, %214 : vector<8x128xf32>
    %216 = math.tanh %215 : vector<8x128xf32>
    %cst_59 = arith.constant 1.000000e+00 : f32
    %217 = vector.broadcast %cst_59 : f32 to vector<8x128xf32>
    %218 = arith.subf %217, %210 : vector<8x128xf32>
    %219 = arith.mulf %218, %216 : vector<8x128xf32>
    %220 = arith.mulf %210, %186 : vector<8x128xf32>
    %221 = arith.addf %219, %220 : vector<8x128xf32>
    %c0_60 = arith.constant 0 : index
    %c6 = arith.constant 6 : index
    %222 = vector.load %arg0[%c0_60, %c6] : memref<8x8xi32, #tpu.memory_space<vmem>>, vector<8x1xi32>
    %223 = vector.broadcast %222 : vector<8x1xi32> to vector<8x32xi32>
    %224 = arith.cmpi eq, %10, %223 : vector<8x32xi32>
    %cst_61 = arith.constant 1.000000e+00 : f32
    %cst_62 = arith.constant 0.000000e+00 : f32
    %225 = vector.broadcast %cst_61 : f32 to vector<8x32xf32>
    %226 = vector.broadcast %cst_62 : f32 to vector<8x32xf32>
    %227 = arith.select %224, %225, %226 : vector<8x32xi1>, vector<8x32xf32>
    %cst_63 = arith.constant dense<0.000000e+00> : vector<8x384xf32>
    %228 = tpu.matmul %227, %0, %cst_63 {dimension_numbers = #tpu.dot_dimension_numbers<[1], [0], [0], [1], [0, 0, 1, 1], [], []>} : vector<8x32xf32>, vector<32x384xf32>, vector<8x384xf32> -> vector<8x384xf32>
    %cst_64 = arith.constant dense<0.000000e+00> : vector<8x384xf32>
    %229 = tpu.matmul %221, %2, %cst_64 {dimension_numbers = #tpu.dot_dimension_numbers<[1], [0], [0], [1], [0, 0, 1, 1], [], []>} : vector<8x128xf32>, vector<128x384xf32>, vector<8x384xf32> -> vector<8x384xf32>
    %230 = vector.extract_strided_slice %228 {offsets = [0, 0], sizes = [8, 128], strides = [1, 1]} : vector<8x384xf32> to vector<8x128xf32>
    %231 = vector.extract_strided_slice %229 {offsets = [0, 0], sizes = [8, 128], strides = [1, 1]} : vector<8x384xf32> to vector<8x128xf32>
    %232 = arith.addf %230, %231 : vector<8x128xf32>
    %233 = arith.negf %232 : vector<8x128xf32>
    %234 = math.exp %233 : vector<8x128xf32>
    %cst_65 = arith.constant 1.000000e+00 : f32
    %235 = vector.broadcast %cst_65 : f32 to vector<8x128xf32>
    %236 = arith.addf %235, %234 : vector<8x128xf32>
    %237 = arith.divf %235, %236 : vector<8x128xf32>
    %238 = vector.extract_strided_slice %228 {offsets = [0, 256], sizes = [8, 128], strides = [1, 1]} : vector<8x384xf32> to vector<8x128xf32>
    %239 = vector.extract_strided_slice %229 {offsets = [0, 256], sizes = [8, 128], strides = [1, 1]} : vector<8x384xf32> to vector<8x128xf32>
    %240 = arith.addf %238, %239 : vector<8x128xf32>
    %241 = arith.negf %240 : vector<8x128xf32>
    %242 = math.exp %241 : vector<8x128xf32>
    %cst_66 = arith.constant 1.000000e+00 : f32
    %243 = vector.broadcast %cst_66 : f32 to vector<8x128xf32>
    %244 = arith.addf %243, %242 : vector<8x128xf32>
    %245 = arith.divf %243, %244 : vector<8x128xf32>
    %246 = vector.extract_strided_slice %228 {offsets = [0, 128], sizes = [8, 128], strides = [1, 1]} : vector<8x384xf32> to vector<8x128xf32>
    %247 = vector.extract_strided_slice %229 {offsets = [0, 128], sizes = [8, 128], strides = [1, 1]} : vector<8x384xf32> to vector<8x128xf32>
    %248 = arith.addf %247, %6 : vector<8x128xf32>
    %249 = arith.mulf %237, %248 : vector<8x128xf32>
    %250 = arith.addf %246, %249 : vector<8x128xf32>
    %251 = math.tanh %250 : vector<8x128xf32>
    %cst_67 = arith.constant 1.000000e+00 : f32
    %252 = vector.broadcast %cst_67 : f32 to vector<8x128xf32>
    %253 = arith.subf %252, %245 : vector<8x128xf32>
    %254 = arith.mulf %253, %251 : vector<8x128xf32>
    %255 = arith.mulf %245, %221 : vector<8x128xf32>
    %256 = arith.addf %254, %255 : vector<8x128xf32>
    %c0_68 = arith.constant 0 : index
    %c7 = arith.constant 7 : index
    %257 = vector.load %arg0[%c0_68, %c7] : memref<8x8xi32, #tpu.memory_space<vmem>>, vector<8x1xi32>
    %258 = vector.broadcast %257 : vector<8x1xi32> to vector<8x32xi32>
    %259 = arith.cmpi eq, %10, %258 : vector<8x32xi32>
    %cst_69 = arith.constant 1.000000e+00 : f32
    %cst_70 = arith.constant 0.000000e+00 : f32
    %260 = vector.broadcast %cst_69 : f32 to vector<8x32xf32>
    %261 = vector.broadcast %cst_70 : f32 to vector<8x32xf32>
    %262 = arith.select %259, %260, %261 : vector<8x32xi1>, vector<8x32xf32>
    %cst_71 = arith.constant dense<0.000000e+00> : vector<8x384xf32>
    %263 = tpu.matmul %262, %0, %cst_71 {dimension_numbers = #tpu.dot_dimension_numbers<[1], [0], [0], [1], [0, 0, 1, 1], [], []>} : vector<8x32xf32>, vector<32x384xf32>, vector<8x384xf32> -> vector<8x384xf32>
    %cst_72 = arith.constant dense<0.000000e+00> : vector<8x384xf32>
    %264 = tpu.matmul %256, %2, %cst_72 {dimension_numbers = #tpu.dot_dimension_numbers<[1], [0], [0], [1], [0, 0, 1, 1], [], []>} : vector<8x128xf32>, vector<128x384xf32>, vector<8x384xf32> -> vector<8x384xf32>
    %265 = vector.extract_strided_slice %263 {offsets = [0, 0], sizes = [8, 128], strides = [1, 1]} : vector<8x384xf32> to vector<8x128xf32>
    %266 = vector.extract_strided_slice %264 {offsets = [0, 0], sizes = [8, 128], strides = [1, 1]} : vector<8x384xf32> to vector<8x128xf32>
    %267 = arith.addf %265, %266 : vector<8x128xf32>
    %268 = arith.negf %267 : vector<8x128xf32>
    %269 = math.exp %268 : vector<8x128xf32>
    %cst_73 = arith.constant 1.000000e+00 : f32
    %270 = vector.broadcast %cst_73 : f32 to vector<8x128xf32>
    %271 = arith.addf %270, %269 : vector<8x128xf32>
    %272 = arith.divf %270, %271 : vector<8x128xf32>
    %273 = vector.extract_strided_slice %263 {offsets = [0, 256], sizes = [8, 128], strides = [1, 1]} : vector<8x384xf32> to vector<8x128xf32>
    %274 = vector.extract_strided_slice %264 {offsets = [0, 256], sizes = [8, 128], strides = [1, 1]} : vector<8x384xf32> to vector<8x128xf32>
    %275 = arith.addf %273, %274 : vector<8x128xf32>
    %276 = arith.negf %275 : vector<8x128xf32>
    %277 = math.exp %276 : vector<8x128xf32>
    %cst_74 = arith.constant 1.000000e+00 : f32
    %278 = vector.broadcast %cst_74 : f32 to vector<8x128xf32>
    %279 = arith.addf %278, %277 : vector<8x128xf32>
    %280 = arith.divf %278, %279 : vector<8x128xf32>
    %281 = vector.extract_strided_slice %263 {offsets = [0, 128], sizes = [8, 128], strides = [1, 1]} : vector<8x384xf32> to vector<8x128xf32>
    %282 = vector.extract_strided_slice %264 {offsets = [0, 128], sizes = [8, 128], strides = [1, 1]} : vector<8x384xf32> to vector<8x128xf32>
    %283 = arith.addf %282, %6 : vector<8x128xf32>
    %284 = arith.mulf %272, %283 : vector<8x128xf32>
    %285 = arith.addf %281, %284 : vector<8x128xf32>
    %286 = math.tanh %285 : vector<8x128xf32>
    %cst_75 = arith.constant 1.000000e+00 : f32
    %287 = vector.broadcast %cst_75 : f32 to vector<8x128xf32>
    %288 = arith.subf %287, %280 : vector<8x128xf32>
    %289 = arith.mulf %288, %286 : vector<8x128xf32>
    %290 = arith.mulf %280, %256 : vector<8x128xf32>
    %291 = arith.addf %289, %290 : vector<8x128xf32>
    %c0_76 = arith.constant 0 : index
    %c0_77 = arith.constant 0 : index
    %292 = vector.load %arg1[%c0_76, %c0_77] : memref<8x8xi32, #tpu.memory_space<vmem>>, vector<8x1xi32>
    %293 = vector.broadcast %292 : vector<8x1xi32> to vector<8x32xi32>
    %294 = arith.cmpi eq, %10, %293 : vector<8x32xi32>
    %cst_78 = arith.constant 1.000000e+00 : f32
    %cst_79 = arith.constant 0.000000e+00 : f32
    %295 = vector.broadcast %cst_78 : f32 to vector<8x32xf32>
    %296 = vector.broadcast %cst_79 : f32 to vector<8x32xf32>
    %297 = arith.select %294, %295, %296 : vector<8x32xi1>, vector<8x32xf32>
    %cst_80 = arith.constant dense<0.000000e+00> : vector<8x384xf32>
    %298 = tpu.matmul %297, %1, %cst_80 {dimension_numbers = #tpu.dot_dimension_numbers<[1], [0], [0], [1], [0, 0, 1, 1], [], []>} : vector<8x32xf32>, vector<32x384xf32>, vector<8x384xf32> -> vector<8x384xf32>
    %cst_81 = arith.constant dense<0.000000e+00> : vector<8x384xf32>
    %299 = tpu.matmul %291, %3, %cst_81 {dimension_numbers = #tpu.dot_dimension_numbers<[1], [0], [0], [1], [0, 0, 1, 1], [], []>} : vector<8x128xf32>, vector<128x384xf32>, vector<8x384xf32> -> vector<8x384xf32>
    %300 = vector.extract_strided_slice %298 {offsets = [0, 0], sizes = [8, 128], strides = [1, 1]} : vector<8x384xf32> to vector<8x128xf32>
    %301 = vector.extract_strided_slice %299 {offsets = [0, 0], sizes = [8, 128], strides = [1, 1]} : vector<8x384xf32> to vector<8x128xf32>
    %302 = arith.addf %300, %301 : vector<8x128xf32>
    %303 = arith.negf %302 : vector<8x128xf32>
    %304 = math.exp %303 : vector<8x128xf32>
    %cst_82 = arith.constant 1.000000e+00 : f32
    %305 = vector.broadcast %cst_82 : f32 to vector<8x128xf32>
    %306 = arith.addf %305, %304 : vector<8x128xf32>
    %307 = arith.divf %305, %306 : vector<8x128xf32>
    %308 = vector.extract_strided_slice %298 {offsets = [0, 256], sizes = [8, 128], strides = [1, 1]} : vector<8x384xf32> to vector<8x128xf32>
    %309 = vector.extract_strided_slice %299 {offsets = [0, 256], sizes = [8, 128], strides = [1, 1]} : vector<8x384xf32> to vector<8x128xf32>
    %310 = arith.addf %308, %309 : vector<8x128xf32>
    %311 = arith.negf %310 : vector<8x128xf32>
    %312 = math.exp %311 : vector<8x128xf32>
    %cst_83 = arith.constant 1.000000e+00 : f32
    %313 = vector.broadcast %cst_83 : f32 to vector<8x128xf32>
    %314 = arith.addf %313, %312 : vector<8x128xf32>
    %315 = arith.divf %313, %314 : vector<8x128xf32>
    %316 = vector.extract_strided_slice %298 {offsets = [0, 128], sizes = [8, 128], strides = [1, 1]} : vector<8x384xf32> to vector<8x128xf32>
    %317 = vector.extract_strided_slice %299 {offsets = [0, 128], sizes = [8, 128], strides = [1, 1]} : vector<8x384xf32> to vector<8x128xf32>
    %318 = arith.addf %317, %9 : vector<8x128xf32>
    %319 = arith.mulf %307, %318 : vector<8x128xf32>
    %320 = arith.addf %316, %319 : vector<8x128xf32>
    %321 = math.tanh %320 : vector<8x128xf32>
    %cst_84 = arith.constant 1.000000e+00 : f32
    %322 = vector.broadcast %cst_84 : f32 to vector<8x128xf32>
    %323 = arith.subf %322, %315 : vector<8x128xf32>
    %324 = arith.mulf %323, %321 : vector<8x128xf32>
    %325 = arith.mulf %315, %291 : vector<8x128xf32>
    %326 = arith.addf %324, %325 : vector<8x128xf32>
    %c0_85 = arith.constant 0 : index
    %c0_86 = arith.constant 0 : index
    %327 = vector.load %arg11[%c0_85, %c0_86] : memref<64x128xf32, #tpu.memory_space<vmem>>, vector<8x128xf32>
    tpu.vector_store %arg11[%c0_85, %c0_86], %326 {strides = array<i32>} : memref<64x128xf32, #tpu.memory_space<vmem>>, vector<8x128xf32>,
    %c0_87 = arith.constant 0 : index
    %c1_88 = arith.constant 1 : index
    %328 = vector.load %arg1[%c0_87, %c1_88] : memref<8x8xi32, #tpu.memory_space<vmem>>, vector<8x1xi32>
    %329 = vector.broadcast %328 : vector<8x1xi32> to vector<8x32xi32>
    %330 = arith.cmpi eq, %10, %329 : vector<8x32xi32>
    %cst_89 = arith.constant 1.000000e+00 : f32
    %cst_90 = arith.constant 0.000000e+00 : f32
    %331 = vector.broadcast %cst_89 : f32 to vector<8x32xf32>
    %332 = vector.broadcast %cst_90 : f32 to vector<8x32xf32>
    %333 = arith.select %330, %331, %332 : vector<8x32xi1>, vector<8x32xf32>
    %cst_91 = arith.constant dense<0.000000e+00> : vector<8x384xf32>
    %334 = tpu.matmul %333, %1, %cst_91 {dimension_numbers = #tpu.dot_dimension_numbers<[1], [0], [0], [1], [0, 0, 1, 1], [], []>} : vector<8x32xf32>, vector<32x384xf32>, vector<8x384xf32> -> vector<8x384xf32>
    %cst_92 = arith.constant dense<0.000000e+00> : vector<8x384xf32>
    %335 = tpu.matmul %326, %3, %cst_92 {dimension_numbers = #tpu.dot_dimension_numbers<[1], [0], [0], [1], [0, 0, 1, 1], [], []>} : vector<8x128xf32>, vector<128x384xf32>, vector<8x384xf32> -> vector<8x384xf32>
    %336 = vector.extract_strided_slice %334 {offsets = [0, 0], sizes = [8, 128], strides = [1, 1]} : vector<8x384xf32> to vector<8x128xf32>
    %337 = vector.extract_strided_slice %335 {offsets = [0, 0], sizes = [8, 128], strides = [1, 1]} : vector<8x384xf32> to vector<8x128xf32>
    %338 = arith.addf %336, %337 : vector<8x128xf32>
    %339 = arith.negf %338 : vector<8x128xf32>
    %340 = math.exp %339 : vector<8x128xf32>
    %cst_93 = arith.constant 1.000000e+00 : f32
    %341 = vector.broadcast %cst_93 : f32 to vector<8x128xf32>
    %342 = arith.addf %341, %340 : vector<8x128xf32>
    %343 = arith.divf %341, %342 : vector<8x128xf32>
    %344 = vector.extract_strided_slice %334 {offsets = [0, 256], sizes = [8, 128], strides = [1, 1]} : vector<8x384xf32> to vector<8x128xf32>
    %345 = vector.extract_strided_slice %335 {offsets = [0, 256], sizes = [8, 128], strides = [1, 1]} : vector<8x384xf32> to vector<8x128xf32>
    %346 = arith.addf %344, %345 : vector<8x128xf32>
    %347 = arith.negf %346 : vector<8x128xf32>
    %348 = math.exp %347 : vector<8x128xf32>
    %cst_94 = arith.constant 1.000000e+00 : f32
    %349 = vector.broadcast %cst_94 : f32 to vector<8x128xf32>
    %350 = arith.addf %349, %348 : vector<8x128xf32>
    %351 = arith.divf %349, %350 : vector<8x128xf32>
    %352 = vector.extract_strided_slice %334 {offsets = [0, 128], sizes = [8, 128], strides = [1, 1]} : vector<8x384xf32> to vector<8x128xf32>
    %353 = vector.extract_strided_slice %335 {offsets = [0, 128], sizes = [8, 128], strides = [1, 1]} : vector<8x384xf32> to vector<8x128xf32>
    %354 = arith.addf %353, %9 : vector<8x128xf32>
    %355 = arith.mulf %343, %354 : vector<8x128xf32>
    %356 = arith.addf %352, %355 : vector<8x128xf32>
    %357 = math.tanh %356 : vector<8x128xf32>
    %cst_95 = arith.constant 1.000000e+00 : f32
    %358 = vector.broadcast %cst_95 : f32 to vector<8x128xf32>
    %359 = arith.subf %358, %351 : vector<8x128xf32>
    %360 = arith.mulf %359, %357 : vector<8x128xf32>
    %361 = arith.mulf %351, %326 : vector<8x128xf32>
    %362 = arith.addf %360, %361 : vector<8x128xf32>
    %c8 = arith.constant 8 : index
    %c0_96 = arith.constant 0 : index
    %363 = vector.load %arg11[%c8, %c0_96] : memref<64x128xf32, #tpu.memory_space<vmem>>, vector<8x128xf32>
    tpu.vector_store %arg11[%c8, %c0_96], %362 {strides = array<i32>} : memref<64x128xf32, #tpu.memory_space<vmem>>, vector<8x128xf32>,
    %c0_97 = arith.constant 0 : index
    %c2_98 = arith.constant 2 : index
    %364 = vector.load %arg1[%c0_97, %c2_98] : memref<8x8xi32, #tpu.memory_space<vmem>>, vector<8x1xi32>
    %365 = vector.broadcast %364 : vector<8x1xi32> to vector<8x32xi32>
    %366 = arith.cmpi eq, %10, %365 : vector<8x32xi32>
    %cst_99 = arith.constant 1.000000e+00 : f32
    %cst_100 = arith.constant 0.000000e+00 : f32
    %367 = vector.broadcast %cst_99 : f32 to vector<8x32xf32>
    %368 = vector.broadcast %cst_100 : f32 to vector<8x32xf32>
    %369 = arith.select %366, %367, %368 : vector<8x32xi1>, vector<8x32xf32>
    %cst_101 = arith.constant dense<0.000000e+00> : vector<8x384xf32>
    %370 = tpu.matmul %369, %1, %cst_101 {dimension_numbers = #tpu.dot_dimension_numbers<[1], [0], [0], [1], [0, 0, 1, 1], [], []>} : vector<8x32xf32>, vector<32x384xf32>, vector<8x384xf32> -> vector<8x384xf32>
    %cst_102 = arith.constant dense<0.000000e+00> : vector<8x384xf32>
    %371 = tpu.matmul %362, %3, %cst_102 {dimension_numbers = #tpu.dot_dimension_numbers<[1], [0], [0], [1], [0, 0, 1, 1], [], []>} : vector<8x128xf32>, vector<128x384xf32>, vector<8x384xf32> -> vector<8x384xf32>
    %372 = vector.extract_strided_slice %370 {offsets = [0, 0], sizes = [8, 128], strides = [1, 1]} : vector<8x384xf32> to vector<8x128xf32>
    %373 = vector.extract_strided_slice %371 {offsets = [0, 0], sizes = [8, 128], strides = [1, 1]} : vector<8x384xf32> to vector<8x128xf32>
    %374 = arith.addf %372, %373 : vector<8x128xf32>
    %375 = arith.negf %374 : vector<8x128xf32>
    %376 = math.exp %375 : vector<8x128xf32>
    %cst_103 = arith.constant 1.000000e+00 : f32
    %377 = vector.broadcast %cst_103 : f32 to vector<8x128xf32>
    %378 = arith.addf %377, %376 : vector<8x128xf32>
    %379 = arith.divf %377, %378 : vector<8x128xf32>
    %380 = vector.extract_strided_slice %370 {offsets = [0, 256], sizes = [8, 128], strides = [1, 1]} : vector<8x384xf32> to vector<8x128xf32>
    %381 = vector.extract_strided_slice %371 {offsets = [0, 256], sizes = [8, 128], strides = [1, 1]} : vector<8x384xf32> to vector<8x128xf32>
    %382 = arith.addf %380, %381 : vector<8x128xf32>
    %383 = arith.negf %382 : vector<8x128xf32>
    %384 = math.exp %383 : vector<8x128xf32>
    %cst_104 = arith.constant 1.000000e+00 : f32
    %385 = vector.broadcast %cst_104 : f32 to vector<8x128xf32>
    %386 = arith.addf %385, %384 : vector<8x128xf32>
    %387 = arith.divf %385, %386 : vector<8x128xf32>
    %388 = vector.extract_strided_slice %370 {offsets = [0, 128], sizes = [8, 128], strides = [1, 1]} : vector<8x384xf32> to vector<8x128xf32>
    %389 = vector.extract_strided_slice %371 {offsets = [0, 128], sizes = [8, 128], strides = [1, 1]} : vector<8x384xf32> to vector<8x128xf32>
    %390 = arith.addf %389, %9 : vector<8x128xf32>
    %391 = arith.mulf %379, %390 : vector<8x128xf32>
    %392 = arith.addf %388, %391 : vector<8x128xf32>
    %393 = math.tanh %392 : vector<8x128xf32>
    %cst_105 = arith.constant 1.000000e+00 : f32
    %394 = vector.broadcast %cst_105 : f32 to vector<8x128xf32>
    %395 = arith.subf %394, %387 : vector<8x128xf32>
    %396 = arith.mulf %395, %393 : vector<8x128xf32>
    %397 = arith.mulf %387, %362 : vector<8x128xf32>
    %398 = arith.addf %396, %397 : vector<8x128xf32>
    %c16 = arith.constant 16 : index
    %c0_106 = arith.constant 0 : index
    %399 = vector.load %arg11[%c16, %c0_106] : memref<64x128xf32, #tpu.memory_space<vmem>>, vector<8x128xf32>
    tpu.vector_store %arg11[%c16, %c0_106], %398 {strides = array<i32>} : memref<64x128xf32, #tpu.memory_space<vmem>>, vector<8x128xf32>,
    %c0_107 = arith.constant 0 : index
    %c3_108 = arith.constant 3 : index
    %400 = vector.load %arg1[%c0_107, %c3_108] : memref<8x8xi32, #tpu.memory_space<vmem>>, vector<8x1xi32>
    %401 = vector.broadcast %400 : vector<8x1xi32> to vector<8x32xi32>
    %402 = arith.cmpi eq, %10, %401 : vector<8x32xi32>
    %cst_109 = arith.constant 1.000000e+00 : f32
    %cst_110 = arith.constant 0.000000e+00 : f32
    %403 = vector.broadcast %cst_109 : f32 to vector<8x32xf32>
    %404 = vector.broadcast %cst_110 : f32 to vector<8x32xf32>
    %405 = arith.select %402, %403, %404 : vector<8x32xi1>, vector<8x32xf32>
    %cst_111 = arith.constant dense<0.000000e+00> : vector<8x384xf32>
    %406 = tpu.matmul %405, %1, %cst_111 {dimension_numbers = #tpu.dot_dimension_numbers<[1], [0], [0], [1], [0, 0, 1, 1], [], []>} : vector<8x32xf32>, vector<32x384xf32>, vector<8x384xf32> -> vector<8x384xf32>
    %cst_112 = arith.constant dense<0.000000e+00> : vector<8x384xf32>
    %407 = tpu.matmul %398, %3, %cst_112 {dimension_numbers = #tpu.dot_dimension_numbers<[1], [0], [0], [1], [0, 0, 1, 1], [], []>} : vector<8x128xf32>, vector<128x384xf32>, vector<8x384xf32> -> vector<8x384xf32>
    %408 = vector.extract_strided_slice %406 {offsets = [0, 0], sizes = [8, 128], strides = [1, 1]} : vector<8x384xf32> to vector<8x128xf32>
    %409 = vector.extract_strided_slice %407 {offsets = [0, 0], sizes = [8, 128], strides = [1, 1]} : vector<8x384xf32> to vector<8x128xf32>
    %410 = arith.addf %408, %409 : vector<8x128xf32>
    %411 = arith.negf %410 : vector<8x128xf32>
    %412 = math.exp %411 : vector<8x128xf32>
    %cst_113 = arith.constant 1.000000e+00 : f32
    %413 = vector.broadcast %cst_113 : f32 to vector<8x128xf32>
    %414 = arith.addf %413, %412 : vector<8x128xf32>
    %415 = arith.divf %413, %414 : vector<8x128xf32>
    %416 = vector.extract_strided_slice %406 {offsets = [0, 256], sizes = [8, 128], strides = [1, 1]} : vector<8x384xf32> to vector<8x128xf32>
    %417 = vector.extract_strided_slice %407 {offsets = [0, 256], sizes = [8, 128], strides = [1, 1]} : vector<8x384xf32> to vector<8x128xf32>
    %418 = arith.addf %416, %417 : vector<8x128xf32>
    %419 = arith.negf %418 : vector<8x128xf32>
    %420 = math.exp %419 : vector<8x128xf32>
    %cst_114 = arith.constant 1.000000e+00 : f32
    %421 = vector.broadcast %cst_114 : f32 to vector<8x128xf32>
    %422 = arith.addf %421, %420 : vector<8x128xf32>
    %423 = arith.divf %421, %422 : vector<8x128xf32>
    %424 = vector.extract_strided_slice %406 {offsets = [0, 128], sizes = [8, 128], strides = [1, 1]} : vector<8x384xf32> to vector<8x128xf32>
    %425 = vector.extract_strided_slice %407 {offsets = [0, 128], sizes = [8, 128], strides = [1, 1]} : vector<8x384xf32> to vector<8x128xf32>
    %426 = arith.addf %425, %9 : vector<8x128xf32>
    %427 = arith.mulf %415, %426 : vector<8x128xf32>
    %428 = arith.addf %424, %427 : vector<8x128xf32>
    %429 = math.tanh %428 : vector<8x128xf32>
    %cst_115 = arith.constant 1.000000e+00 : f32
    %430 = vector.broadcast %cst_115 : f32 to vector<8x128xf32>
    %431 = arith.subf %430, %423 : vector<8x128xf32>
    %432 = arith.mulf %431, %429 : vector<8x128xf32>
    %433 = arith.mulf %423, %398 : vector<8x128xf32>
    %434 = arith.addf %432, %433 : vector<8x128xf32>
    %c24 = arith.constant 24 : index
    %c0_116 = arith.constant 0 : index
    %435 = vector.load %arg11[%c24, %c0_116] : memref<64x128xf32, #tpu.memory_space<vmem>>, vector<8x128xf32>
    tpu.vector_store %arg11[%c24, %c0_116], %434 {strides = array<i32>} : memref<64x128xf32, #tpu.memory_space<vmem>>, vector<8x128xf32>,
    %c0_117 = arith.constant 0 : index
    %c4_118 = arith.constant 4 : index
    %436 = vector.load %arg1[%c0_117, %c4_118] : memref<8x8xi32, #tpu.memory_space<vmem>>, vector<8x1xi32>
    %437 = vector.broadcast %436 : vector<8x1xi32> to vector<8x32xi32>
    %438 = arith.cmpi eq, %10, %437 : vector<8x32xi32>
    %cst_119 = arith.constant 1.000000e+00 : f32
    %cst_120 = arith.constant 0.000000e+00 : f32
    %439 = vector.broadcast %cst_119 : f32 to vector<8x32xf32>
    %440 = vector.broadcast %cst_120 : f32 to vector<8x32xf32>
    %441 = arith.select %438, %439, %440 : vector<8x32xi1>, vector<8x32xf32>
    %cst_121 = arith.constant dense<0.000000e+00> : vector<8x384xf32>
    %442 = tpu.matmul %441, %1, %cst_121 {dimension_numbers = #tpu.dot_dimension_numbers<[1], [0], [0], [1], [0, 0, 1, 1], [], []>} : vector<8x32xf32>, vector<32x384xf32>, vector<8x384xf32> -> vector<8x384xf32>
    %cst_122 = arith.constant dense<0.000000e+00> : vector<8x384xf32>
    %443 = tpu.matmul %434, %3, %cst_122 {dimension_numbers = #tpu.dot_dimension_numbers<[1], [0], [0], [1], [0, 0, 1, 1], [], []>} : vector<8x128xf32>, vector<128x384xf32>, vector<8x384xf32> -> vector<8x384xf32>
    %444 = vector.extract_strided_slice %442 {offsets = [0, 0], sizes = [8, 128], strides = [1, 1]} : vector<8x384xf32> to vector<8x128xf32>
    %445 = vector.extract_strided_slice %443 {offsets = [0, 0], sizes = [8, 128], strides = [1, 1]} : vector<8x384xf32> to vector<8x128xf32>
    %446 = arith.addf %444, %445 : vector<8x128xf32>
    %447 = arith.negf %446 : vector<8x128xf32>
    %448 = math.exp %447 : vector<8x128xf32>
    %cst_123 = arith.constant 1.000000e+00 : f32
    %449 = vector.broadcast %cst_123 : f32 to vector<8x128xf32>
    %450 = arith.addf %449, %448 : vector<8x128xf32>
    %451 = arith.divf %449, %450 : vector<8x128xf32>
    %452 = vector.extract_strided_slice %442 {offsets = [0, 256], sizes = [8, 128], strides = [1, 1]} : vector<8x384xf32> to vector<8x128xf32>
    %453 = vector.extract_strided_slice %443 {offsets = [0, 256], sizes = [8, 128], strides = [1, 1]} : vector<8x384xf32> to vector<8x128xf32>
    %454 = arith.addf %452, %453 : vector<8x128xf32>
    %455 = arith.negf %454 : vector<8x128xf32>
    %456 = math.exp %455 : vector<8x128xf32>
    %cst_124 = arith.constant 1.000000e+00 : f32
    %457 = vector.broadcast %cst_124 : f32 to vector<8x128xf32>
    %458 = arith.addf %457, %456 : vector<8x128xf32>
    %459 = arith.divf %457, %458 : vector<8x128xf32>
    %460 = vector.extract_strided_slice %442 {offsets = [0, 128], sizes = [8, 128], strides = [1, 1]} : vector<8x384xf32> to vector<8x128xf32>
    %461 = vector.extract_strided_slice %443 {offsets = [0, 128], sizes = [8, 128], strides = [1, 1]} : vector<8x384xf32> to vector<8x128xf32>
    %462 = arith.addf %461, %9 : vector<8x128xf32>
    %463 = arith.mulf %451, %462 : vector<8x128xf32>
    %464 = arith.addf %460, %463 : vector<8x128xf32>
    %465 = math.tanh %464 : vector<8x128xf32>
    %cst_125 = arith.constant 1.000000e+00 : f32
    %466 = vector.broadcast %cst_125 : f32 to vector<8x128xf32>
    %467 = arith.subf %466, %459 : vector<8x128xf32>
    %468 = arith.mulf %467, %465 : vector<8x128xf32>
    %469 = arith.mulf %459, %434 : vector<8x128xf32>
    %470 = arith.addf %468, %469 : vector<8x128xf32>
    %c32 = arith.constant 32 : index
    %c0_126 = arith.constant 0 : index
    %471 = vector.load %arg11[%c32, %c0_126] : memref<64x128xf32, #tpu.memory_space<vmem>>, vector<8x128xf32>
    tpu.vector_store %arg11[%c32, %c0_126], %470 {strides = array<i32>} : memref<64x128xf32, #tpu.memory_space<vmem>>, vector<8x128xf32>,
    %c0_127 = arith.constant 0 : index
    %c5_128 = arith.constant 5 : index
    %472 = vector.load %arg1[%c0_127, %c5_128] : memref<8x8xi32, #tpu.memory_space<vmem>>, vector<8x1xi32>
    %473 = vector.broadcast %472 : vector<8x1xi32> to vector<8x32xi32>
    %474 = arith.cmpi eq, %10, %473 : vector<8x32xi32>
    %cst_129 = arith.constant 1.000000e+00 : f32
    %cst_130 = arith.constant 0.000000e+00 : f32
    %475 = vector.broadcast %cst_129 : f32 to vector<8x32xf32>
    %476 = vector.broadcast %cst_130 : f32 to vector<8x32xf32>
    %477 = arith.select %474, %475, %476 : vector<8x32xi1>, vector<8x32xf32>
    %cst_131 = arith.constant dense<0.000000e+00> : vector<8x384xf32>
    %478 = tpu.matmul %477, %1, %cst_131 {dimension_numbers = #tpu.dot_dimension_numbers<[1], [0], [0], [1], [0, 0, 1, 1], [], []>} : vector<8x32xf32>, vector<32x384xf32>, vector<8x384xf32> -> vector<8x384xf32>
    %cst_132 = arith.constant dense<0.000000e+00> : vector<8x384xf32>
    %479 = tpu.matmul %470, %3, %cst_132 {dimension_numbers = #tpu.dot_dimension_numbers<[1], [0], [0], [1], [0, 0, 1, 1], [], []>} : vector<8x128xf32>, vector<128x384xf32>, vector<8x384xf32> -> vector<8x384xf32>
    %480 = vector.extract_strided_slice %478 {offsets = [0, 0], sizes = [8, 128], strides = [1, 1]} : vector<8x384xf32> to vector<8x128xf32>
    %481 = vector.extract_strided_slice %479 {offsets = [0, 0], sizes = [8, 128], strides = [1, 1]} : vector<8x384xf32> to vector<8x128xf32>
    %482 = arith.addf %480, %481 : vector<8x128xf32>
    %483 = arith.negf %482 : vector<8x128xf32>
    %484 = math.exp %483 : vector<8x128xf32>
    %cst_133 = arith.constant 1.000000e+00 : f32
    %485 = vector.broadcast %cst_133 : f32 to vector<8x128xf32>
    %486 = arith.addf %485, %484 : vector<8x128xf32>
    %487 = arith.divf %485, %486 : vector<8x128xf32>
    %488 = vector.extract_strided_slice %478 {offsets = [0, 256], sizes = [8, 128], strides = [1, 1]} : vector<8x384xf32> to vector<8x128xf32>
    %489 = vector.extract_strided_slice %479 {offsets = [0, 256], sizes = [8, 128], strides = [1, 1]} : vector<8x384xf32> to vector<8x128xf32>
    %490 = arith.addf %488, %489 : vector<8x128xf32>
    %491 = arith.negf %490 : vector<8x128xf32>
    %492 = math.exp %491 : vector<8x128xf32>
    %cst_134 = arith.constant 1.000000e+00 : f32
    %493 = vector.broadcast %cst_134 : f32 to vector<8x128xf32>
    %494 = arith.addf %493, %492 : vector<8x128xf32>
    %495 = arith.divf %493, %494 : vector<8x128xf32>
    %496 = vector.extract_strided_slice %478 {offsets = [0, 128], sizes = [8, 128], strides = [1, 1]} : vector<8x384xf32> to vector<8x128xf32>
    %497 = vector.extract_strided_slice %479 {offsets = [0, 128], sizes = [8, 128], strides = [1, 1]} : vector<8x384xf32> to vector<8x128xf32>
    %498 = arith.addf %497, %9 : vector<8x128xf32>
    %499 = arith.mulf %487, %498 : vector<8x128xf32>
    %500 = arith.addf %496, %499 : vector<8x128xf32>
    %501 = math.tanh %500 : vector<8x128xf32>
    %cst_135 = arith.constant 1.000000e+00 : f32
    %502 = vector.broadcast %cst_135 : f32 to vector<8x128xf32>
    %503 = arith.subf %502, %495 : vector<8x128xf32>
    %504 = arith.mulf %503, %501 : vector<8x128xf32>
    %505 = arith.mulf %495, %470 : vector<8x128xf32>
    %506 = arith.addf %504, %505 : vector<8x128xf32>
    %c40 = arith.constant 40 : index
    %c0_136 = arith.constant 0 : index
    %507 = vector.load %arg11[%c40, %c0_136] : memref<64x128xf32, #tpu.memory_space<vmem>>, vector<8x128xf32>
    tpu.vector_store %arg11[%c40, %c0_136], %506 {strides = array<i32>} : memref<64x128xf32, #tpu.memory_space<vmem>>, vector<8x128xf32>,
    %c0_137 = arith.constant 0 : index
    %c6_138 = arith.constant 6 : index
    %508 = vector.load %arg1[%c0_137, %c6_138] : memref<8x8xi32, #tpu.memory_space<vmem>>, vector<8x1xi32>
    %509 = vector.broadcast %508 : vector<8x1xi32> to vector<8x32xi32>
    %510 = arith.cmpi eq, %10, %509 : vector<8x32xi32>
    %cst_139 = arith.constant 1.000000e+00 : f32
    %cst_140 = arith.constant 0.000000e+00 : f32
    %511 = vector.broadcast %cst_139 : f32 to vector<8x32xf32>
    %512 = vector.broadcast %cst_140 : f32 to vector<8x32xf32>
    %513 = arith.select %510, %511, %512 : vector<8x32xi1>, vector<8x32xf32>
    %cst_141 = arith.constant dense<0.000000e+00> : vector<8x384xf32>
    %514 = tpu.matmul %513, %1, %cst_141 {dimension_numbers = #tpu.dot_dimension_numbers<[1], [0], [0], [1], [0, 0, 1, 1], [], []>} : vector<8x32xf32>, vector<32x384xf32>, vector<8x384xf32> -> vector<8x384xf32>
    %cst_142 = arith.constant dense<0.000000e+00> : vector<8x384xf32>
    %515 = tpu.matmul %506, %3, %cst_142 {dimension_numbers = #tpu.dot_dimension_numbers<[1], [0], [0], [1], [0, 0, 1, 1], [], []>} : vector<8x128xf32>, vector<128x384xf32>, vector<8x384xf32> -> vector<8x384xf32>
    %516 = vector.extract_strided_slice %514 {offsets = [0, 0], sizes = [8, 128], strides = [1, 1]} : vector<8x384xf32> to vector<8x128xf32>
    %517 = vector.extract_strided_slice %515 {offsets = [0, 0], sizes = [8, 128], strides = [1, 1]} : vector<8x384xf32> to vector<8x128xf32>
    %518 = arith.addf %516, %517 : vector<8x128xf32>
    %519 = arith.negf %518 : vector<8x128xf32>
    %520 = math.exp %519 : vector<8x128xf32>
    %cst_143 = arith.constant 1.000000e+00 : f32
    %521 = vector.broadcast %cst_143 : f32 to vector<8x128xf32>
    %522 = arith.addf %521, %520 : vector<8x128xf32>
    %523 = arith.divf %521, %522 : vector<8x128xf32>
    %524 = vector.extract_strided_slice %514 {offsets = [0, 256], sizes = [8, 128], strides = [1, 1]} : vector<8x384xf32> to vector<8x128xf32>
    %525 = vector.extract_strided_slice %515 {offsets = [0, 256], sizes = [8, 128], strides = [1, 1]} : vector<8x384xf32> to vector<8x128xf32>
    %526 = arith.addf %524, %525 : vector<8x128xf32>
    %527 = arith.negf %526 : vector<8x128xf32>
    %528 = math.exp %527 : vector<8x128xf32>
    %cst_144 = arith.constant 1.000000e+00 : f32
    %529 = vector.broadcast %cst_144 : f32 to vector<8x128xf32>
    %530 = arith.addf %529, %528 : vector<8x128xf32>
    %531 = arith.divf %529, %530 : vector<8x128xf32>
    %532 = vector.extract_strided_slice %514 {offsets = [0, 128], sizes = [8, 128], strides = [1, 1]} : vector<8x384xf32> to vector<8x128xf32>
    %533 = vector.extract_strided_slice %515 {offsets = [0, 128], sizes = [8, 128], strides = [1, 1]} : vector<8x384xf32> to vector<8x128xf32>
    %534 = arith.addf %533, %9 : vector<8x128xf32>
    %535 = arith.mulf %523, %534 : vector<8x128xf32>
    %536 = arith.addf %532, %535 : vector<8x128xf32>
    %537 = math.tanh %536 : vector<8x128xf32>
    %cst_145 = arith.constant 1.000000e+00 : f32
    %538 = vector.broadcast %cst_145 : f32 to vector<8x128xf32>
    %539 = arith.subf %538, %531 : vector<8x128xf32>
    %540 = arith.mulf %539, %537 : vector<8x128xf32>
    %541 = arith.mulf %531, %506 : vector<8x128xf32>
    %542 = arith.addf %540, %541 : vector<8x128xf32>
    %c48 = arith.constant 48 : index
    %c0_146 = arith.constant 0 : index
    %543 = vector.load %arg11[%c48, %c0_146] : memref<64x128xf32, #tpu.memory_space<vmem>>, vector<8x128xf32>
    tpu.vector_store %arg11[%c48, %c0_146], %542 {strides = array<i32>} : memref<64x128xf32, #tpu.memory_space<vmem>>, vector<8x128xf32>,
    %c0_147 = arith.constant 0 : index
    %c7_148 = arith.constant 7 : index
    %544 = vector.load %arg1[%c0_147, %c7_148] : memref<8x8xi32, #tpu.memory_space<vmem>>, vector<8x1xi32>
    %545 = vector.broadcast %544 : vector<8x1xi32> to vector<8x32xi32>
    %546 = arith.cmpi eq, %10, %545 : vector<8x32xi32>
    %cst_149 = arith.constant 1.000000e+00 : f32
    %cst_150 = arith.constant 0.000000e+00 : f32
    %547 = vector.broadcast %cst_149 : f32 to vector<8x32xf32>
    %548 = vector.broadcast %cst_150 : f32 to vector<8x32xf32>
    %549 = arith.select %546, %547, %548 : vector<8x32xi1>, vector<8x32xf32>
    %cst_151 = arith.constant dense<0.000000e+00> : vector<8x384xf32>
    %550 = tpu.matmul %549, %1, %cst_151 {dimension_numbers = #tpu.dot_dimension_numbers<[1], [0], [0], [1], [0, 0, 1, 1], [], []>} : vector<8x32xf32>, vector<32x384xf32>, vector<8x384xf32> -> vector<8x384xf32>
    %cst_152 = arith.constant dense<0.000000e+00> : vector<8x384xf32>
    %551 = tpu.matmul %542, %3, %cst_152 {dimension_numbers = #tpu.dot_dimension_numbers<[1], [0], [0], [1], [0, 0, 1, 1], [], []>} : vector<8x128xf32>, vector<128x384xf32>, vector<8x384xf32> -> vector<8x384xf32>
    %552 = vector.extract_strided_slice %550 {offsets = [0, 0], sizes = [8, 128], strides = [1, 1]} : vector<8x384xf32> to vector<8x128xf32>
    %553 = vector.extract_strided_slice %551 {offsets = [0, 0], sizes = [8, 128], strides = [1, 1]} : vector<8x384xf32> to vector<8x128xf32>
    %554 = arith.addf %552, %553 : vector<8x128xf32>
    %555 = arith.negf %554 : vector<8x128xf32>
    %556 = math.exp %555 : vector<8x128xf32>
    %cst_153 = arith.constant 1.000000e+00 : f32
    %557 = vector.broadcast %cst_153 : f32 to vector<8x128xf32>
    %558 = arith.addf %557, %556 : vector<8x128xf32>
    %559 = arith.divf %557, %558 : vector<8x128xf32>
    %560 = vector.extract_strided_slice %550 {offsets = [0, 256], sizes = [8, 128], strides = [1, 1]} : vector<8x384xf32> to vector<8x128xf32>
    %561 = vector.extract_strided_slice %551 {offsets = [0, 256], sizes = [8, 128], strides = [1, 1]} : vector<8x384xf32> to vector<8x128xf32>
    %562 = arith.addf %560, %561 : vector<8x128xf32>
    %563 = arith.negf %562 : vector<8x128xf32>
    %564 = math.exp %563 : vector<8x128xf32>
    %cst_154 = arith.constant 1.000000e+00 : f32
    %565 = vector.broadcast %cst_154 : f32 to vector<8x128xf32>
    %566 = arith.addf %565, %564 : vector<8x128xf32>
    %567 = arith.divf %565, %566 : vector<8x128xf32>
    %568 = vector.extract_strided_slice %550 {offsets = [0, 128], sizes = [8, 128], strides = [1, 1]} : vector<8x384xf32> to vector<8x128xf32>
    %569 = vector.extract_strided_slice %551 {offsets = [0, 128], sizes = [8, 128], strides = [1, 1]} : vector<8x384xf32> to vector<8x128xf32>
    %570 = arith.addf %569, %9 : vector<8x128xf32>
    %571 = arith.mulf %559, %570 : vector<8x128xf32>
    %572 = arith.addf %568, %571 : vector<8x128xf32>
    %573 = math.tanh %572 : vector<8x128xf32>
    %cst_155 = arith.constant 1.000000e+00 : f32
    %574 = vector.broadcast %cst_155 : f32 to vector<8x128xf32>
    %575 = arith.subf %574, %567 : vector<8x128xf32>
    %576 = arith.mulf %575, %573 : vector<8x128xf32>
    %577 = arith.mulf %567, %542 : vector<8x128xf32>
    %578 = arith.addf %576, %577 : vector<8x128xf32>
    %c56 = arith.constant 56 : index
    %c0_156 = arith.constant 0 : index
    %579 = vector.load %arg11[%c56, %c0_156] : memref<64x128xf32, #tpu.memory_space<vmem>>, vector<8x128xf32>
    tpu.vector_store %arg11[%c56, %c0_156], %578 {strides = array<i32>} : memref<64x128xf32, #tpu.memory_space<vmem>>, vector<8x128xf32>,
    %c0_157 = arith.constant 0 : index
    %c0_158 = arith.constant 0 : index
    %580 = vector.load %arg11[%c0_157, %c0_158] : memref<64x128xf32, #tpu.memory_space<vmem>>, vector<64x128xf32>
    %c0_159 = arith.constant 0 : index
    %c0_160 = arith.constant 0 : index
    %581 = vector.load %arg8[%c0_159, %c0_160] : memref<128x128xf32, #tpu.memory_space<vmem>>, vector<128x128xf32>
    %cst_161 = arith.constant dense<0.000000e+00> : vector<64x128xf32>
    %582 = tpu.matmul %580, %581, %cst_161 {dimension_numbers = #tpu.dot_dimension_numbers<[1], [0], [0], [1], [0, 0, 1, 1], [], []>} : vector<64x128xf32>, vector<128x128xf32>, vector<64x128xf32> -> vector<64x128xf32>
    %c0_162 = arith.constant 0 : index
    %c0_163 = arith.constant 0 : index
    %583 = vector.load %arg9[%c0_162, %c0_163] : memref<1x128xf32, #tpu.memory_space<vmem>>, vector<1x128xf32>
    %584 = vector.broadcast %583 : vector<1x128xf32> to vector<64x128xf32>
    %585 = arith.addf %582, %584 : vector<64x128xf32>
    %c0_164 = arith.constant 0 : index
    %c0_165 = arith.constant 0 : index
    %586 = vector.load %arg10[%c0_164, %c0_165] : memref<64x128xf32, #tpu.memory_space<vmem>>, vector<64x128xf32>
    tpu.vector_store %arg10[%c0_164, %c0_165], %585 {strides = array<i32>} : memref<64x128xf32, #tpu.memory_space<vmem>>, vector<64x128xf32>,
    return
  }
}

</mosaic_0001>

<bundles_post_ra>
// kernel: seq2seq_forward.1
= control target key start
LH: loop header
LB: loop body
LE: loop exit
PB: predicated region body
PF: predicated region fallthrough
CT: control target
= control target key end

     0   :  { %15 = vsyncpa [#allocation4], 0  ;;  %s9396_s0 = inlined_call_operand.vmem [shape: s32[8,8], index: 0, kind: input, shape index: {}]   ;;  %s9397_s1 = inlined_call_operand.vmem [shape: s32[8,8], index: 1, kind: input, shape index: {}]   ;;  %s9398_s2 = inlined_call_operand.hbm [shape: f32[32,384], index: 2, kind: input, shape index: {}]   ;;  %s9399_s3 = inlined_call_operand.hbm [shape: f32[128,384], index: 3, kind: input, shape index: {}]   ;;  %s9400_s4 = inlined_call_operand.vmem [shape: f32[1,128], index: 4, kind: input, shape index: {}]   ;;  %s9401_s5 = inlined_call_operand.hbm [shape: f32[32,384], index: 5, kind: input, shape index: {}]   ;;  %s9402_s6 = inlined_call_operand.hbm [shape: f32[128,384], index: 6, kind: input, shape index: {}]   ;;  %s9403_s7 = inlined_call_operand.vmem [shape: f32[1,128], index: 7, kind: input, shape index: {}]   ;;  %s9404_s8 = inlined_call_operand.hbm [shape: f32[128,128], index: 8, kind: input, shape index: {}]   ;;  %s9405_s9 = inlined_call_operand.vmem [shape: f32[1,128], index: 9, kind: input, shape index: {}]   ;;  %s9406_s10 = inlined_call_operand.vmem [shape: f32[64,128], index: 10, kind: output, shape index: {}]  }
   0x1   :  { %16 = vsyncpa [#allocation6], 0 }
   0x2   :  { %17 = vsyncpa [#allocation9], 0  ;;  %s8122_s13 = smov [#allocation5]   ;;  %s8123_s15 = smov [#allocation8]  }
   0x3   :  { %s39_s14 = sshll.u32 %s8122_s13, 4  ;;  %s65_s16 = sshll.u32 %s8123_s15, 4  ;;  %s40_s14 = int_to_ptr.vmem [resolvable:$true] %s39_s14  ;;  %s8197_s16 = int_to_ptr.vmem [resolvable:$true] %s65_s16 }
   0x4   :  { %s8006_s19 = scalar_lea.hbm %s9399_s3, 6144 }
   0x5   :  { %p8007_p0 = scmp.ne.s32.totalorder %s9399_s3, %s8006_s19  ;;  %p8010_p1 = scmp.lt.u32.totalorder %s8006_s19, %s9399_s3 }
   0x7   :  { %p8012_p2 = pnand %p8010_p1, %p8007_p0 }
   0x9   :  { %8015 = shalt.err (!%p8012_p2)
}
   0xa   :  { %s8016_s24 = scalar_lea.vmem %s40_s14, 6144  ;;  %p8021_p4 = scmp.lt.s32.totalorder %s40_s14, %s40_s14 }
   0xb   :  { %p8017_p3 = scmp.ne.s32.totalorder %s40_s14, %s8016_s24  ;;  %p8022_p5 = scmp.lt.s32.totalorder %s8016_s24, %s8016_s24 }
   0xd   :  { %p8023_p6 = por %p8022_p5, %p8021_p4 }
   0xf   :  { %p8024_p7 = pnand %p8023_p6, %p8017_p3 }
  0x11   :  { %8027 = shalt.err (!%p8024_p7)
}
  0x12   :  { %s8124_s25 = smov 384   ;;  %s8125_s26 = smov 24  }
  0x13   :  { %45 = dma.hbm_to_vmem [thread:$0]  %s9399_s3, 6144, %s40_s14, [#allocation6], %s8124_s25, %s8124_s25, %s8125_s26  }
  0x14   :  { %s8028_s11 = scalar_lea.hbm %s9402_s6, 6144 }
  0x15   :  { %p8029_p8 = scmp.ne.s32.totalorder %s9402_s6, %s8028_s11  ;;  %p8032_p9 = scmp.lt.u32.totalorder %s8028_s11, %s9402_s6 }
  0x17   :  { %p8034_p10 = pnand %p8032_p9, %p8029_p8 }
  0x19   :  { %8037 = shalt.err (!%p8034_p10)
}
  0x1a   :  { %s8038_s18 = scalar_lea.vmem %s8197_s16, 6144  ;;  %p8043_p12 = scmp.lt.s32.totalorder %s8197_s16, %s8197_s16 }
  0x1b   :  { %p8039_p11 = scmp.ne.s32.totalorder %s8197_s16, %s8038_s18  ;;  %p8044_p13 = scmp.lt.s32.totalorder %s8038_s18, %s8038_s18 }
  0x1d   :  { %p8045_p0 = por %p8044_p13, %p8043_p12 }
  0x1f   :  { %p8046_p1 = pnand %p8045_p0, %p8039_p11 }
  0x21   :  { %8049 = shalt.err (!%p8046_p1)
}
  0x22   :  { %71 = dma.hbm_to_vmem [thread:$0]  %s9402_s6, 6144, %s8197_s16, [#allocation9], %s8124_s25, %s8124_s25, %s8125_s26  }
  0x23   :  { %s8126_s19 = smov [#allocation3]   ;;  %s8127_s21 = smov [#allocation7]  }
  0x24   :  { %s27_s20 = sshll.u32 %s8126_s19, 4  ;;  %s53_s22 = sshll.u32 %s8127_s21, 4  ;;  %s28_s20 = int_to_ptr.vmem [resolvable:$true] %s27_s20  ;;  %s8234_s22 = int_to_ptr.vmem [resolvable:$true] %s53_s22 }
  0x25   :  { %s8050_s27 = scalar_lea.hbm %s9398_s2, 1536 }
  0x26   :  { %p8051_p2 = scmp.ne.s32.totalorder %s9398_s2, %s8050_s27  ;;  %p8054_p3 = scmp.lt.u32.totalorder %s8050_s27, %s9398_s2 }
  0x28   :  { %p8056_p4 = pnand %p8054_p3, %p8051_p2 }
  0x2a   :  { %8059 = shalt.err (!%p8056_p4)
}
  0x2b   :  { %s8060_s6 = scalar_lea.vmem %s28_s20, 1536  ;;  %p8065_p6 = scmp.lt.s32.totalorder %s28_s20, %s28_s20 }
  0x2c   :  { %p8061_p5 = scmp.ne.s32.totalorder %s28_s20, %s8060_s6  ;;  %p8066_p7 = scmp.lt.s32.totalorder %s8060_s6, %s8060_s6 }
  0x2e   :  { %p8067_p8 = por %p8066_p7, %p8065_p6 }
  0x30   :  { %p8068_p9 = pnand %p8067_p8, %p8061_p5 }
  0x32   :  { %8071 = shalt.err (!%p8068_p9)
}
  0x33   :  { %33 = dma.hbm_to_vmem [thread:$0]  %s9398_s2, 1536, %s28_s20, [#allocation4], %s8124_s25, %s8124_s25, %s8125_s26  }
  0x34   :  { %s8072_s17 = scalar_lea.hbm %s9401_s5, 1536 }
  0x35   :  { %p8073_p10 = scmp.ne.s32.totalorder %s9401_s5, %s8072_s17  ;;  %p8076_p11 = scmp.lt.u32.totalorder %s8072_s17, %s9401_s5 }
  0x37   :  { %p8078_p12 = pnand %p8076_p11, %p8073_p10 }
  0x39   :  { %8081 = shalt.err (!%p8078_p12)
}
  0x3a   :  { %s8082_s21 = scalar_lea.vmem %s8234_s22, 1536  ;;  %p8087_p0 = scmp.lt.s32.totalorder %s8234_s22, %s8234_s22 }
  0x3b   :  { %p8083_p13 = scmp.ne.s32.totalorder %s8234_s22, %s8082_s21  ;;  %p8088_p1 = scmp.lt.s32.totalorder %s8082_s21, %s8082_s21 }
  0x3d   :  { %p8089_p2 = por %p8088_p1, %p8087_p0 }
  0x3f   :  { %p8090_p3 = pnand %p8089_p2, %p8083_p13 }
  0x41   :  { %8093 = shalt.err (!%p8090_p3)
}
  0x42   :  { %59 = dma.hbm_to_vmem [thread:$0]  %s9401_s5, 1536, %s8234_s22, [#allocation6], %s8124_s25, %s8124_s25, %s8125_s26  }
  0x43   :  { %s8128_s23 = smov [#allocation10]   ;;  %s8094_s29 = scalar_lea.hbm %s9404_s8, 2048 }
  0x44   :  { %s79_s24 = sshll.u32 %s8128_s23, 4  ;;  %p8095_p4 = scmp.ne.s32.totalorder %s9404_s8, %s8094_s29  ;;  %s80_s24 = int_to_ptr.vmem [resolvable:$true] %s79_s24 }
  0x45   :  { %p8098_p5 = scmp.lt.u32.totalorder %s8094_s29, %s9404_s8 }
  0x47   :  { %p8100_p6 = pnand %p8098_p5, %p8095_p4 }
  0x49   :  { %8103 = shalt.err (!%p8100_p6)
}
  0x4a   :  { %s8104_s12 = scalar_lea.vmem %s80_s24, 2048  ;;  %p8109_p8 = scmp.lt.s32.totalorder %s80_s24, %s80_s24 }
  0x4b   :  { %p8105_p7 = scmp.ne.s32.totalorder %s80_s24, %s8104_s12  ;;  %p8110_p9 = scmp.lt.s32.totalorder %s8104_s12, %s8104_s12 }
  0x4d   :  { %p8111_p10 = por %p8110_p9, %p8109_p8 }
  0x4f   :  { %p8112_p11 = pnand %p8111_p10, %p8105_p7 }
  0x51   :  { %8115 = shalt.err (!%p8112_p11)
}
  0x52   :  { %s8129_s5 = smov 128   ;;  %s8130_s25 = smov 8  }
  0x53   :  { %85 = dma.hbm_to_vmem [thread:$0]  %s9404_s8, 2048, %s80_s24, [#allocation9], %s8129_s5, %s8129_s5, %s8130_s25  }
  0x54   :  { %8116 = dma.done.wait [#allocation4], 1536  }
  0x55   :  { %8117 = vsyncadd [#allocation4], 4294965760 }
  0x56   :  { %8118 = dma.done.wait [#allocation6], 7680  }
  0x57   :  { %8119 = vsyncadd [#allocation6], 4294959616 }
  0x58   :  { %8120 = dma.done.wait [#allocation9], 8192  }
  0x59   :  { %8121 = vsyncadd [#allocation9], 4294959104  ;;  %v8131_v0 = vmov 0   ;;  %v8132_v1 = vmov 0.0   ;;  %v8289_v2 = vld [vmem:[%s9396_s0] sm:$0xff]  ;;  %v128_v3 = vld [vmem:[#allocation5 + $0x8] sm:$0xff] }
  0x5a   :  { %7826 = vset.pattern.permute.xlu0 %v8131_v0  ;;  %454 = vmatprep.mubr.f32.mxu1 %v8132_v1  ;;  %v131_v4 = vld [vmem:[#allocation5 + $0x20] sm:$0xff]  ;;  %v130_v7 = vld [vmem:[#allocation5 + $0x18] sm:$0xff]  ;;  %v137_v10 = vld [vmem:[#allocation5 + $0x50] sm:$0xff]  ;;  %v8133_v31 = vmov 1   ;;  %v8134_v59 = vmov 0.0|0.0   ;;  %vm8135_vm0 = vmmov 0  }
  0x5b   :  { %313 = vmatprep.mubr.f32.mxu0 %v8132_v1  ;;  %241 = vperm.xlu0 %7826, %v8289_v2   ;;  %v8292_v5 = vpack.c.bf16 %v131_v4, %v128_v3  ;;  %v127_v6 = vld [vmem:[#allocation5] sm:$0xff]  ;;  %v134_v8 = vld [vmem:[#allocation5 + $0x38] sm:$0xff]  ;;  %v133_v11 = vld [vmem:[#allocation5 + $0x30] sm:$0xff]  ;;  %vm245_vm1 = vcmask 261120  }
  0x5c   :  { %v8294_v9 = vpack.c.bf16 %v130_v7, %v127_v6  ;;  %v136_v12 = vld [vmem:[#allocation5 + $0x48] sm:$0xff]  ;;  %v8297_v13 = vpack.c.bf16 %v137_v10, %v134_v8  ;;  %v143_v15 = vld [vmem:[#allocation5 + $0x80] sm:$0xff]  ;;  %v142_v19 = vld [vmem:[#allocation5 + $0x78] sm:$0xff] }
  0x5d   :  { %6638 = vmatprep.subr.bf16.mxu1 %v8292_v5  ;;  %v140_v14 = vld [vmem:[#allocation5 + $0x68] sm:$0xff]  ;;  %v8300_v16 = vpack.c.bf16 %v136_v12, %v133_v11  ;;  %v139_v18 = vld [vmem:[#allocation5 + $0x60] sm:$0xff]  ;;  %v146_v20 = vld [vmem:[#allocation5 + $0x98] sm:$0xff] }
  0x5e   :  { %6640 = vmatpush1.bf16.msra.mxu1 %v8294_v9  ;;  %v8303_v17 = vpack.c.bf16 %v143_v15, %v140_v14  ;;  %v149_v21 = vld [vmem:[#allocation5 + $0xb0] sm:$0xff]  ;;  %v8306_v22 = vpack.c.bf16 %v142_v19, %v139_v18  ;;  %v148_v25 = vld [vmem:[#allocation5 + $0xa8] sm:$0xff]  ;;  %v155_v27 = vld [vmem:[#allocation5 + $0xe0] sm:$0xff] }
  0x5f   :  { %6642 = vmatprep.subr.bf16.mxu1 %v8297_v13  ;;  %v8309_v23 = vpack.c.bf16 %v149_v21, %v146_v20  ;;  %v145_v24 = vld [vmem:[#allocation5 + $0x90] sm:$0xff]  ;;  %v152_v26 = vld [vmem:[#allocation5 + $0xc8] sm:$0xff]  ;;  %v151_v29 = vld [vmem:[#allocation5 + $0xc0] sm:$0xff]  ;;  %7827 = vset.pattern.permute.xlu0 %v8133_v31 }
  0x60   :  { %v8312_v28 = vpack.c.bf16 %v148_v25, %v145_v24  ;;  %v154_v30 = vld [vmem:[#allocation5 + $0xd8] sm:$0xff]  ;;  %v8316_v32 = vpack.c.bf16 %v155_v27, %v152_v26  ;;  %v161_v34 = vld [vmem:[#allocation5 + $0x110] sm:$0xff]  ;;  %v104_v35 = vld [vmem:[#allocation3 + $0x8] sm:$0xff]  ;;  %554 = vperm.xlu0 %7827, %v8289_v2  }
  0x61   :  { %v158_v33 = vld [vmem:[#allocation5 + $0xf8] sm:$0xff]  ;;  %v107_v36 = vld [vmem:[#allocation3 + $0x20] sm:$0xff]  ;;  %v8324_v42 = vpack.c.bf16 %v154_v30, %v151_v29  ;;  %v113_v43 = vld [vmem:[#allocation3 + $0x50] sm:$0xff] }
  0x62   :  { %6644 = vmatpush1.bf16.msra.mxu1 %v8300_v16  ;;  %v103_v37 = vld [vmem:[#allocation3] sm:$0xff]  ;;  %v106_v38 = vld [vmem:[#allocation3 + $0x18] sm:$0xff]  ;;  %v8319_v39 = vpack.c.bf16 %v107_v36, %v104_v35  ;;  %v109_v44 = vld [vmem:[#allocation3 + $0x30] sm:$0xff]  ;;  %v8327_v46 = vpack.c.bf16 %v161_v34, %v158_v33 }
  0x63   :  { %6646 = vmatprep.subr.bf16.mxu1 %v8303_v17  ;;  %v8321_v40 = vpack.c.bf16 %v106_v38, %v103_v37  ;;  %v110_v41 = vld [vmem:[#allocation3 + $0x38] sm:$0xff]  ;;  %v112_v45 = vld [vmem:[#allocation3 + $0x48] sm:$0xff]  ;;  %v157_v47 = vld [vmem:[#allocation5 + $0xf0] sm:$0xff] }
  0x64   :  { %v160_v48 = vld [vmem:[#allocation5 + $0x108] sm:$0xff]  ;;  %6624 = vmatprep.subr.bf16.mxu0 %v8319_v39  ;;  %v8330_v49 = vpack.c.bf16 %v113_v43, %v110_v41  ;;  %v167_v51 = vld [vmem:[#allocation5 + $0x140] sm:$0xff]  ;;  %v8333_v52 = vpack.c.bf16 %v112_v45, %v109_v44  ;;  %v166_v56 = vld [vmem:[#allocation5 + $0x138] sm:$0xff] }
  0x65   :  { %v164_v50 = vld [vmem:[#allocation5 + $0x128] sm:$0xff]  ;;  %6626 = vmatpush1.bf16.msra.mxu0 %v8321_v40  ;;  %v8337_v53 = vpack.c.bf16 %v160_v48, %v157_v47  ;;  %v163_v55 = vld [vmem:[#allocation5 + $0x120] sm:$0xff]  ;;  %v170_v57 = vld [vmem:[#allocation5 + $0x158] sm:$0xff]  ;;  %v237_v48 = vlaneseq }
  0x66   :  { %6648 = vmatpush1.bf16.msra.mxu1 %v8306_v22  ;;  %6628 = vmatprep.subr.bf16.mxu0 %v8330_v49  ;;  %v8340_v54 = vpack.c.bf16 %v167_v51, %v164_v50  ;;  %v173_v58 = vld [vmem:[#allocation5 + $0x170] sm:$0xff]  ;;  %v8345_v60 = vpack.c.bf16 %v166_v56, %v163_v55  ;;  %v172_v63 = vld [vmem:[#allocation5 + $0x168] sm:$0xff]  ;;  %v135_v8 = vld [vmem:[#allocation5 + $0x40] sm:$0xff] }
  0x67   :  { %6650 = vmatprep.subr.bf16.mxu1 %v8309_v23  ;;  %v8348_v61 = vpack.c.bf16 %v173_v58, %v170_v57  ;;  %v169_v62 = vld [vmem:[#allocation5 + $0x150] sm:$0xff]  ;;  %v132_v6 = vld [vmem:[#allocation5 + $0x28] sm:$0xff]  ;;  %v138_v10 = vld [vmem:[#allocation5 + $0x58] sm:$0xff]  ;;  %v8402_v50 = vand.u32 127, %v237_v48 }
  0x68   :  { %v8351_v3 = vpack.c.bf16 %v172_v63, %v169_v62  ;;  %v129_v4 = vld [vmem:[#allocation5 + $0x10] sm:$0xff]  ;;  %v8360_v11 = vpack.c.bf16 %v138_v10, %v135_v8  ;;  %v144_v14 = vld [vmem:[#allocation5 + $0x88] sm:$0xff]  ;;  %v147_v18 = vld [vmem:[#allocation5 + $0xa0] sm:$0xff]  ;;  %v8136_v63 = vmov 2  }
  0x69   :  { %6630 = vmatpush1.bf16.msra.mxu0 %v8333_v52  ;;  %v8355_v7 = vpack.c.bf16 %v132_v6, %v129_v4  ;;  %v141_v12 = vld [vmem:[#allocation5 + $0x70] sm:$0xff]  ;;  %v150_v19 = vld [vmem:[#allocation5 + $0xb8] sm:$0xff]  ;;  %v156_v24 = vld [vmem:[#allocation5 + $0xe8] sm:$0xff]  ;;  %7828 = vset.pattern.permute.xlu1 %v8136_v63 }
  0x6a   :  { %6652 = vmatpush1.bf16.msra.mxu1 %v8312_v28  ;;  %6631 = vmatprep.subr.bf16.mxu0 %v8134_v59  ;;  %v8366_v15 = vpack.c.bf16 %v144_v14, %v141_v12  ;;  %v8370_v20 = vpack.c.bf16 %v150_v19, %v147_v18  ;;  %v153_v21 = vld [vmem:[#allocation5 + $0xd0] sm:$0xff]  ;;  %v159_v26 = vld [vmem:[#allocation5 + $0x100] sm:$0xff]  ;;  %v162_v27 = vld [vmem:[#allocation5 + $0x118] sm:$0xff] }
  0x6b   :  { %6654 = vmatprep.subr.bf16.mxu1 %v8316_v32  ;;  %v8374_v25 = vpack.c.bf16 %v156_v24, %v153_v21  ;;  %v8378_v29 = vpack.c.bf16 %v162_v27, %v159_v26  ;;  %v165_v30 = vld [vmem:[#allocation5 + $0x130] sm:$0xff]  ;;  %v168_v33 = vld [vmem:[#allocation5 + $0x148] sm:$0xff]  ;;  %v171_v35 = vld [vmem:[#allocation5 + $0x160] sm:$0xff]  ;;  %866 = vperm.xlu1 %7828, %v8289_v2  }
  0x6c   :  { %v8382_v34 = vpack.c.bf16 %v168_v33, %v165_v30  ;;  %v174_v36 = vld [vmem:[#allocation5 + $0x178] sm:$0xff]  ;;  %v105_v38 = vld [vmem:[#allocation3 + $0x10] sm:$0xff]  ;;  %v108_v41 = vld [vmem:[#allocation3 + $0x28] sm:$0xff] }
  0x6d   :  { %v8386_v37 = vpack.c.bf16 %v174_v36, %v171_v35  ;;  %v8391_v43 = vpack.c.bf16 %v108_v41, %v105_v38  ;;  %v111_v44 = vld [vmem:[#allocation3 + $0x40] sm:$0xff]  ;;  %v114_v45 = vld [vmem:[#allocation3 + $0x58] sm:$0xff] }
  0x6e   :  { %6656 = vmatpush1.bf16.msra.mxu1 %v8324_v42  ;;  %v8398_v47 = vpack.c.bf16 %v114_v45, %v111_v44  ;;  %v8463_v33 = vld [vmem:[%s9400_s4] ss:$0 sm:$0xff] }
  0x6f   :  { %6658 = vmatprep.subr.bf16.mxu1 %v8327_v46 }
  0x72   :  { %6660 = vmatpush1.bf16.msra.mxu1 %v8337_v53 }
  0x73   :  { %6662 = vmatprep.subr.bf16.mxu1 %v8340_v54 }
  0x76   :  { %6664 = vmatpush1.bf16.msra.mxu1 %v8345_v60 }
  0x77   :  { %6666 = vmatprep.subr.bf16.mxu1 %v8348_v61 }
  0x7a   :  { %6668 = vmatpush1.bf16.msra.mxu1 %v8351_v3 }
  0x7b   :  { %6669 = vmatprep.subr.bf16.mxu1 %v8134_v59 }
  0x7d   :  { %455 = vmatmul.mubr.f32.vlgmr.msra.gmra.mrb[0].mxu1 %v8132_v1 }
  0x7e   :  { %6671 = vmatpush3.bf16.msra.mxu1 %v8355_v7  ;;  %5886 = vmatprep.mubr.msk.f32.mxu1 %vm8135_vm0, %v8132_v1 }
  0x7f   :  { %6672 = vmatprep.subr.bf16.mxu1 %v8134_v59 }
  0x82   :  { %6674 = vmatpush3.bf16.msra.mxu1 %v8360_v11 }
  0x83   :  { %6675 = vmatprep.subr.bf16.mxu1 %v8134_v59 }
  0x86   :  { %6677 = vmatpush3.bf16.msra.mxu1 %v8366_v15 }
  0x87   :  { %6678 = vmatprep.subr.bf16.mxu1 %v8134_v59 }
  0x8a   :  { %6680 = vmatpush3.bf16.msra.mxu1 %v8370_v20 }
  0x8b   :  { %6681 = vmatprep.subr.bf16.mxu1 %v8134_v59 }
  0x8e   :  { %6683 = vmatpush3.bf16.msra.mxu1 %v8374_v25 }
  0x8f   :  { %6684 = vmatprep.subr.bf16.mxu1 %v8134_v59 }
  0x92   :  { %6686 = vmatpush3.bf16.msra.mxu1 %v8378_v29 }
  0x93   :  { %6687 = vmatprep.subr.bf16.mxu1 %v8134_v59 }
  0x96   :  { %6689 = vmatpush3.bf16.msra.mxu1 %v8382_v34 }
  0x97   :  { %6690 = vmatprep.subr.bf16.mxu1 %v8134_v59 }
  0x9a   :  { %6692 = vmatpush3.bf16.msra.mxu1 %v8386_v37 }
  0x9b   :  { %6701 = vmatprep.subr.bf16.mxu1 %v8134_v59 }
  0x9d   :  { %5887 = vmatmul.mubr.f32.vlgmr.msra.gmra.mrb[2].mxu1 %v8132_v1 }
  0x9e   :  { %6703 = vmatpush3.bf16.msra.mxu1 %v8391_v43  ;;  %5897 = vmatprep.mubr.msk.f32.mxu1 %vm8135_vm0, %v8132_v1 }
  0x9f   :  { %6704 = vmatprep.subr.bf16.mxu1 %v8134_v59 }
  0xa2   :  { %6706 = vmatpush3.bf16.msra.mxu1 %v8398_v47 }
  0xa3   :  { %6739 = vmatprep.subr.bf16.mxu1 %v8134_v59 }
  0xda   :  { %v242_v51 = vpop.permute.xlu0 %241 }
  0xdb   :  { %vm243_vm2 = vcmp.eq.s32.totalorder %v8402_v50, %v242_v51 }
  0xdc   :  { %v244_v55 = vsel %vm243_vm2, 1.0, %v8132_v1 }
  0xdd   :  { %5402 = vmatmul.mubr.msk.f32.vlgmr.msra.gmra.mrb[0].mxu0 %vm245_vm1, %v244_v55 }
  0xde   :  { %6633 = vmatpush3.bf16.msra.mxu0 %v8391_v43  ;;  %5851 = vmatprep.mubr.msk.f32.mxu0 %vm8135_vm0, %v8132_v1 }
  0xdf   :  { %6634 = vmatprep.subr.bf16.mxu0 %v8134_v59  ;;  %v555_v56 = vpop.permute.xlu0 %554 }
  0xe0   :  { %vm556_vm3 = vcmp.eq.s32.totalorder %v8402_v50, %v555_v56 }
  0xe1   :  { %v557_v57 = vsel %vm556_vm3, 1.0, %v8132_v1 }
  0xe2   :  { %6636 = vmatpush3.bf16.msra.mxu0 %v8398_v47  ;;  %5898 = vmatmul.mubr.msk.f32.vlgmr.msra.gmra.mrb[4].mxu1 %vm245_vm1, %v557_v57 }
  0xe3   :  { %6694 = vmatprep.subr.bf16.mxu0 %v8319_v39  ;;  %6741 = vmatpush3.bf16.msra.mxu1 %v8355_v7 }
  0xe4   :  { %6742 = vmatprep.subr.bf16.mxu1 %v8134_v59  ;;  %5932 = vmatprep.mubr.msk.f32.mxu1 %vm8135_vm0, %v8132_v1 }
  0xe5   :  { %5852 = vmatmul.mubr.msk.f32.vlgmr.msra.gmra.mrb[2].mxu0 %vm245_vm1, %v244_v55 }
  0xe6   :  { %6696 = vmatpush1.bf16.msra.mxu0 %v8321_v40  ;;  %625 = vmatprep.mubr.f32.mxu0 %v8132_v1 }
  0xe7   :  { %6698 = vmatprep.subr.bf16.mxu0 %v8330_v49  ;;  %6744 = vmatpush3.bf16.msra.mxu1 %v8360_v11 }
  0xe8   :  { %6745 = vmatprep.subr.bf16.mxu1 %v8134_v59 }
  0xea   :  { %6700 = vmatpush1.bf16.msra.mxu0 %v8333_v52 }
  0xeb   :  { %6708 = vmatprep.subr.bf16.mxu0 %v8292_v5  ;;  %6747 = vmatpush3.bf16.msra.mxu1 %v8366_v15 }
  0xec   :  { %6748 = vmatprep.subr.bf16.mxu1 %v8134_v59 }
  0xed   :  { %5406 = vmatmul.mubr.msk.f32.vlgmr.msra.gmra.mrb[4].mxu0 %vm245_vm1, %v557_v57 }
  0xee   :  { %6710 = vmatpush1.bf16.msra.mxu0 %v8294_v9  ;;  %766 = vmatprep.mubr.f32.mxu0 %v8132_v1 }
  0xef   :  { %6712 = vmatprep.subr.bf16.mxu0 %v8297_v13  ;;  %6750 = vmatpush3.bf16.msra.mxu1 %v8370_v20 }
  0xf0   :  { %6751 = vmatprep.subr.bf16.mxu1 %v8134_v59 }
  0xf2   :  { %6714 = vmatpush1.bf16.msra.mxu0 %v8300_v16 }
  0xf3   :  { %6716 = vmatprep.subr.bf16.mxu0 %v8303_v17  ;;  %6753 = vmatpush3.bf16.msra.mxu1 %v8374_v25 }
  0xf4   :  { %6754 = vmatprep.subr.bf16.mxu1 %v8134_v59 }
  0xf6   :  { %6718 = vmatpush1.bf16.msra.mxu0 %v8306_v22 }
  0xf7   :  { %6720 = vmatprep.subr.bf16.mxu0 %v8309_v23  ;;  %6756 = vmatpush3.bf16.msra.mxu1 %v8378_v29 }
  0xf8   :  { %6757 = vmatprep.subr.bf16.mxu1 %v8134_v59 }
  0xfa   :  { %6722 = vmatpush1.bf16.msra.mxu0 %v8312_v28 }
  0xfb   :  { %6724 = vmatprep.subr.bf16.mxu0 %v8316_v32  ;;  %6759 = vmatpush3.bf16.msra.mxu1 %v8382_v34 }
  0xfc   :  { %6760 = vmatprep.subr.bf16.mxu1 %v8134_v59 }
  0xfe   :  { %6726 = vmatpush1.bf16.msra.mxu0 %v8324_v42 }
  0xff   :  { %6728 = vmatprep.subr.bf16.mxu0 %v8327_v46  ;;  %6762 = vmatpush3.bf16.msra.mxu1 %v8386_v37 }
 0x100   :  { %6771 = vmatprep.subr.bf16.mxu1 %v8134_v59 }
 0x102   :  { %6730 = vmatpush1.bf16.msra.mxu0 %v8337_v53 }
 0x103   :  { %6732 = vmatprep.subr.bf16.mxu0 %v8340_v54 }
 0x106   :  { %6734 = vmatpush1.bf16.msra.mxu0 %v8345_v60 }
 0x107   :  { %6736 = vmatprep.subr.bf16.mxu0 %v8348_v61 }
 0x10a   :  { %6738 = vmatpush1.bf16.msra.mxu0 %v8351_v3 }
 0x10b   :  { %6764 = vmatprep.subr.bf16.mxu0 %v8319_v39 }
 0x150   :  { %v456_v58 = vpop.f32.mrb[0].mxu1 }
 0x151   :  { %v458_v62 = vpop.f32.mrb[1].mxu1 }
 0x152   :  { %v545_v36 = vadd.f32 %v8463_v33, %v458_v62 }
 0x170   :  { %v527_v4 = vpop.f32.mrb[2].mxu1 }
 0x171   :  { %v5888_v6 = vpop.f32.mrb[3].mxu1 }
 0x1b0   :  { %v315_v8 = vpop.f32.mrb[0].mxu0 }
 0x1b1   :  { %v531_v10 = vadd.f32 %v456_v58, %v315_v8  ;;  %v317_v12 = vpop.f32.mrb[1].mxu0  ;;  %v8137_v8 = vmov 3  }
 0x1b2   :  { %7829 = vset.pattern.permute.xlu1 %v8137_v8 }
 0x1b3   :  { %v5404_v14 = vmul.f32 -1.442695, %v531_v10  ;;  %1178 = vperm.xlu1 %7829, %v8289_v2  }
 0x1b5   :  { %7843 = vpow2.f32 %v5404_v14 }
 0x1b8   :  { %v386_v18 = vpop.f32.mrb[2].mxu0 }
 0x1b9   :  { %v538_v19 = vadd.f32 %v527_v4, %v386_v18  ;;  %v5853_v21 = vpop.f32.mrb[3].mxu0  ;;  %v867_v4 = vpop.permute.xlu1 %866 }
 0x1ba   :  { %vm868_vm4 = vcmp.eq.s32.totalorder %v8402_v50, %v867_v4 }
 0x1bb   :  { %v5405_v24 = vmul.f32 -1.442695, %v538_v19  ;;  %v869_v6 = vsel %vm868_vm4, 1.0, %v8132_v1 }
 0x1bd   :  { %7845 = vpow2.f32 %v5405_v24 }
 0x1bf   :  { %v7844_v26 = vpop.eup %7843 }
 0x1c0   :  { %v535_v27 = vadd.f32 1.0, %v7844_v26  ;;  %v627_v58 = vpop.f32.mrb[4].mxu0 }
 0x1c1   :  { %v629_v62 = vpop.f32.mrb[5].mxu0 }
 0x1c2   :  { %7847 = vrcp.f32 %v535_v27 }
 0x1c7   :  { %v7846_v30 = vpop.eup %7845 }
 0x1c8   :  { %v542_v35 = vadd.f32 1.0, %v7846_v30 }
 0x1ca   :  { %7849 = vrcp.f32 %v542_v35 }
 0x1cc   :  { %v7848_v38 = vpop.eup %7847 }
 0x1cd   :  { %v546_v41 = vmul.f32 %v7848_v38, %v545_v36 }
 0x1cf   :  { %v547_v44 = vadd.f32 %v546_v41, %v317_v12 }
 0x1d1   :  { %7851 = vtanh.f32 %v547_v44 }
 0x1d4   :  { %v7850_v45 = vpop.eup %7849 }
 0x1d5   :  { %v549_v48 = vsub.f32 1.0, %v7850_v45  ;;  %v551_v56 = vmul.f32 0.0, %v7850_v45 }
 0x1db   :  { %v7852_v51 = vpop.eup %7851 }
 0x1dc   :  { %v550_v55 = vmul.f32 %v7852_v51, %v549_v48 }
 0x1de   :  { %v8466_v57 = vadd.f32 %v551_v56, %v550_v55 }
 0x1e0   :  { %767 = vmatmul.mubr.f32.vlgmr.msra.gmra.mrb[6].mxu0 %v8466_v57  ;;  %5933 = vmatmul.mubr.f32.vlgmr.msra.gmra.mrb[4].mxu1 %v8466_v57 }
 0x1e1   :  { %6766 = vmatpush1.bf16.msra.mxu0 %v8321_v40  ;;  %6773 = vmatpush3.bf16.msra.mxu1 %v8391_v43 }
 0x1e2   :  { %6768 = vmatprep.subr.bf16.mxu0 %v8330_v49  ;;  %6774 = vmatprep.subr.bf16.mxu1 %v8134_v59 }
 0x1e3   :  { %937 = vmatprep.mubr.f32.mxu0 %v8132_v1  ;;  %5943 = vmatprep.mubr.msk.f32.mxu1 %vm8135_vm0, %v8132_v1 }
 0x1e5   :  { %6770 = vmatpush1.bf16.msra.mxu0 %v8333_v52  ;;  %6776 = vmatpush3.bf16.msra.mxu1 %v8398_v47 }
 0x1e6   :  { %6778 = vmatprep.subr.bf16.mxu0 %v8292_v5  ;;  %6809 = vmatprep.subr.bf16.mxu1 %v8134_v59 }
 0x1e8   :  { %5410 = vmatmul.mubr.msk.f32.vlgmr.msra.gmra.mrb[8].mxu0 %vm245_vm1, %v869_v6  ;;  %5944 = vmatmul.mubr.msk.f32.vlgmr.msra.gmra.mrb[6].mxu1 %vm245_vm1, %v869_v6 }
 0x1e9   :  { %6780 = vmatpush1.bf16.msra.mxu0 %v8294_v9  ;;  %6811 = vmatpush3.bf16.msra.mxu1 %v8355_v7 }
 0x1ea   :  { %6782 = vmatprep.subr.bf16.mxu0 %v8297_v13  ;;  %6812 = vmatprep.subr.bf16.mxu1 %v8134_v59 }
 0x1eb   :  { %1078 = vmatprep.mubr.f32.mxu0 %v8132_v1  ;;  %5978 = vmatprep.mubr.msk.f32.mxu1 %vm8135_vm0, %v8132_v1 }
 0x1ed   :  { %6784 = vmatpush1.bf16.msra.mxu0 %v8300_v16  ;;  %6814 = vmatpush3.bf16.msra.mxu1 %v8360_v11 }
 0x1ee   :  { %6786 = vmatprep.subr.bf16.mxu0 %v8303_v17  ;;  %6815 = vmatprep.subr.bf16.mxu1 %v8134_v59 }
 0x1f1   :  { %6788 = vmatpush1.bf16.msra.mxu0 %v8306_v22  ;;  %6817 = vmatpush3.bf16.msra.mxu1 %v8366_v15 }
 0x1f2   :  { %6790 = vmatprep.subr.bf16.mxu0 %v8309_v23  ;;  %6818 = vmatprep.subr.bf16.mxu1 %v8134_v59 }
 0x1f5   :  { %6792 = vmatpush1.bf16.msra.mxu0 %v8312_v28  ;;  %6820 = vmatpush3.bf16.msra.mxu1 %v8370_v20 }
 0x1f6   :  { %6794 = vmatprep.subr.bf16.mxu0 %v8316_v32  ;;  %6821 = vmatprep.subr.bf16.mxu1 %v8134_v59 }
 0x1f9   :  { %6796 = vmatpush1.bf16.msra.mxu0 %v8324_v42  ;;  %6823 = vmatpush3.bf16.msra.mxu1 %v8374_v25 }
 0x1fa   :  { %6798 = vmatprep.subr.bf16.mxu0 %v8327_v46  ;;  %6824 = vmatprep.subr.bf16.mxu1 %v8134_v59 }
 0x1fd   :  { %6800 = vmatpush1.bf16.msra.mxu0 %v8337_v53  ;;  %6826 = vmatpush3.bf16.msra.mxu1 %v8378_v29 }
 0x1fe   :  { %6802 = vmatprep.subr.bf16.mxu0 %v8340_v54  ;;  %6827 = vmatprep.subr.bf16.mxu1 %v8134_v59 }
 0x201   :  { %6804 = vmatpush1.bf16.msra.mxu0 %v8345_v60  ;;  %6829 = vmatpush3.bf16.msra.mxu1 %v8382_v34 }
 0x202   :  { %6806 = vmatprep.subr.bf16.mxu0 %v8348_v61  ;;  %6830 = vmatprep.subr.bf16.mxu1 %v8134_v59 }
 0x205   :  { %6808 = vmatpush1.bf16.msra.mxu0 %v8351_v3  ;;  %6832 = vmatpush3.bf16.msra.mxu1 %v8386_v37 }
 0x206   :  { %6834 = vmatprep.subr.bf16.mxu0 %v8319_v39  ;;  %6841 = vmatprep.subr.bf16.mxu1 %v8134_v59 }
 0x232   :  { %v1179_v4 = vpop.permute.xlu1 %1178 }
 0x233   :  { %vm1180_vm5 = vcmp.eq.s32.totalorder %v8402_v50, %v1179_v4 }
 0x234   :  { %v1181_v6 = vsel %vm1180_vm5, 1.0, %v8132_v1 }
 0x2b3   :  { %v768_v10 = vpop.f32.mrb[6].mxu0  ;;  %v839_v12 = vpop.f32.mrb[4].mxu1 }
 0x2b4   :  { %v843_v14 = vadd.f32 %v768_v10, %v627_v58  ;;  %v770_v18 = vpop.f32.mrb[7].mxu0  ;;  %v5934_v19 = vpop.f32.mrb[5].mxu1  ;;  %v5409_v24 = vmul.f32 -1.442695, %v839_v12  ;;  %v8138_v10 = vmov 4  }
 0x2b5   :  { %v857_v36 = vadd.f32 %v8463_v33, %v770_v18  ;;  %7830 = vset.pattern.permute.xlu1 %v8138_v10 }
 0x2b6   :  { %v5408_v21 = vmul.f32 -1.442695, %v843_v14  ;;  %1490 = vperm.xlu1 %7830, %v8289_v2  }
 0x2b8   :  { %7853 = vpow2.f32 %v5408_v21 }
 0x2b9   :  { %7855 = vpow2.f32 %v5409_v24 }
 0x2c2   :  { %v7854_v26 = vpop.eup %7853 }
 0x2c3   :  { %v847_v27 = vadd.f32 1.0, %v7854_v26  ;;  %v7856_v30 = vpop.eup %7855 }
 0x2c4   :  { %v854_v35 = vadd.f32 1.0, %v7856_v30 }
 0x2c5   :  { %7857 = vrcp.f32 %v847_v27 }
 0x2c6   :  { %7859 = vrcp.f32 %v854_v35 }
 0x2cf   :  { %v7858_v38 = vpop.eup %7857 }
 0x2d0   :  { %v858_v41 = vmul.f32 %v7858_v38, %v857_v36  ;;  %v7860_v45 = vpop.eup %7859 }
 0x2d1   :  { %v861_v48 = vsub.f32 1.0, %v7860_v45  ;;  %v863_v56 = vmul.f32 %v7860_v45, %v8466_v57  ;;  %v939_v57 = vpop.f32.mrb[8].mxu0 }
 0x2d2   :  { %v859_v44 = vadd.f32 %v858_v41, %v629_v62  ;;  %v941_v62 = vpop.f32.mrb[9].mxu0 }
 0x2d4   :  { %7861 = vtanh.f32 %v859_v44 }
 0x2de   :  { %v7862_v51 = vpop.eup %7861 }
 0x2df   :  { %v862_v55 = vmul.f32 %v7862_v51, %v861_v48 }
 0x2e1   :  { %v8524_v58 = vadd.f32 %v863_v56, %v862_v55 }
 0x2e3   :  { %1079 = vmatmul.mubr.f32.vlgmr.msra.gmra.mrb[10].mxu0 %v8524_v58  ;;  %5979 = vmatmul.mubr.f32.vlgmr.msra.gmra.mrb[6].mxu1 %v8524_v58 }
 0x2e4   :  { %6836 = vmatpush1.bf16.msra.mxu0 %v8321_v40  ;;  %6843 = vmatpush3.bf16.msra.mxu1 %v8391_v43 }
 0x2e5   :  { %6838 = vmatprep.subr.bf16.mxu0 %v8330_v49  ;;  %6844 = vmatprep.subr.bf16.mxu1 %v8134_v59 }
 0x2e6   :  { %1249 = vmatprep.mubr.f32.mxu0 %v8132_v1  ;;  %5989 = vmatprep.mubr.msk.f32.mxu1 %vm8135_vm0, %v8132_v1 }
 0x2e8   :  { %6840 = vmatpush1.bf16.msra.mxu0 %v8333_v52  ;;  %6846 = vmatpush3.bf16.msra.mxu1 %v8398_v47 }
 0x2e9   :  { %6848 = vmatprep.subr.bf16.mxu0 %v8292_v5  ;;  %6879 = vmatprep.subr.bf16.mxu1 %v8134_v59 }
 0x2eb   :  { %5414 = vmatmul.mubr.msk.f32.vlgmr.msra.gmra.mrb[12].mxu0 %vm245_vm1, %v1181_v6  ;;  %5990 = vmatmul.mubr.msk.f32.vlgmr.msra.gmra.mrb[8].mxu1 %vm245_vm1, %v1181_v6 }
 0x2ec   :  { %6850 = vmatpush1.bf16.msra.mxu0 %v8294_v9  ;;  %6881 = vmatpush3.bf16.msra.mxu1 %v8355_v7 }
 0x2ed   :  { %6852 = vmatprep.subr.bf16.mxu0 %v8297_v13  ;;  %6882 = vmatprep.subr.bf16.mxu1 %v8134_v59 }
 0x2ee   :  { %1390 = vmatprep.mubr.f32.mxu0 %v8132_v1  ;;  %6024 = vmatprep.mubr.msk.f32.mxu1 %vm8135_vm0, %v8132_v1 }
 0x2f0   :  { %6854 = vmatpush1.bf16.msra.mxu0 %v8300_v16  ;;  %6884 = vmatpush3.bf16.msra.mxu1 %v8360_v11 }
 0x2f1   :  { %6856 = vmatprep.subr.bf16.mxu0 %v8303_v17  ;;  %6885 = vmatprep.subr.bf16.mxu1 %v8134_v59 }
 0x2f4   :  { %6858 = vmatpush1.bf16.msra.mxu0 %v8306_v22  ;;  %6887 = vmatpush3.bf16.msra.mxu1 %v8366_v15 }
 0x2f5   :  { %6860 = vmatprep.subr.bf16.mxu0 %v8309_v23  ;;  %6888 = vmatprep.subr.bf16.mxu1 %v8134_v59 }
 0x2f8   :  { %6862 = vmatpush1.bf16.msra.mxu0 %v8312_v28  ;;  %6890 = vmatpush3.bf16.msra.mxu1 %v8370_v20 }
 0x2f9   :  { %6864 = vmatprep.subr.bf16.mxu0 %v8316_v32  ;;  %6891 = vmatprep.subr.bf16.mxu1 %v8134_v59 }
 0x2fc   :  { %6866 = vmatpush1.bf16.msra.mxu0 %v8324_v42  ;;  %6893 = vmatpush3.bf16.msra.mxu1 %v8374_v25 }
 0x2fd   :  { %6868 = vmatprep.subr.bf16.mxu0 %v8327_v46  ;;  %6894 = vmatprep.subr.bf16.mxu1 %v8134_v59 }
 0x300   :  { %6870 = vmatpush1.bf16.msra.mxu0 %v8337_v53  ;;  %6896 = vmatpush3.bf16.msra.mxu1 %v8378_v29 }
 0x301   :  { %6872 = vmatprep.subr.bf16.mxu0 %v8340_v54  ;;  %6897 = vmatprep.subr.bf16.mxu1 %v8134_v59 }
 0x304   :  { %6874 = vmatpush1.bf16.msra.mxu0 %v8345_v60  ;;  %6899 = vmatpush3.bf16.msra.mxu1 %v8382_v34 }
 0x305   :  { %6876 = vmatprep.subr.bf16.mxu0 %v8348_v61  ;;  %6900 = vmatprep.subr.bf16.mxu1 %v8134_v59 }
 0x308   :  { %6878 = vmatpush1.bf16.msra.mxu0 %v8351_v3  ;;  %6902 = vmatpush3.bf16.msra.mxu1 %v8386_v37 }
 0x309   :  { %6904 = vmatprep.subr.bf16.mxu0 %v8319_v39  ;;  %6911 = vmatprep.subr.bf16.mxu1 %v8134_v59 }
 0x335   :  { %v1491_v6 = vpop.permute.xlu1 %1490 }
 0x336   :  { %vm1492_vm6 = vcmp.eq.s32.totalorder %v8402_v50, %v1491_v6 }
 0x3b6   :  { %v1080_v12 = vpop.f32.mrb[10].mxu0  ;;  %v1151_v14 = vpop.f32.mrb[6].mxu1 }
 0x3b7   :  { %v1155_v18 = vadd.f32 %v1080_v12, %v939_v57  ;;  %v1082_v19 = vpop.f32.mrb[11].mxu0  ;;  %v5980_v21 = vpop.f32.mrb[7].mxu1  ;;  %v5413_v26 = vmul.f32 -1.442695, %v1151_v14  ;;  %v1493_v12 = vsel %vm1492_vm6, 1.0, %v8132_v1  ;;  %v8139_v14 = vmov 5  }
 0x3b8   :  { %v1169_v38 = vadd.f32 %v8463_v33, %v1082_v19  ;;  %7831 = vset.pattern.permute.xlu0 %v8139_v14 }
 0x3b9   :  { %v5412_v24 = vmul.f32 -1.442695, %v1155_v18  ;;  %1802 = vperm.xlu0 %7831, %v8289_v2  }
 0x3bb   :  { %7863 = vpow2.f32 %v5412_v24 }
 0x3bc   :  { %7865 = vpow2.f32 %v5413_v26 }
 0x3bd   :  { %7834 = vset.pattern.permute.xlu0 %v8131_v0 }
 0x3c5   :  { %v7864_v27 = vpop.eup %7863 }
 0x3c6   :  { %v1159_v30 = vadd.f32 1.0, %v7864_v27  ;;  %v7866_v35 = vpop.eup %7865 }
 0x3c7   :  { %v1166_v36 = vadd.f32 1.0, %v7866_v35 }
 0x3c8   :  { %7867 = vrcp.f32 %v1159_v30 }
 0x3c9   :  { %7869 = vrcp.f32 %v1166_v36 }
 0x3d2   :  { %v7868_v41 = vpop.eup %7867 }
 0x3d3   :  { %v1170_v44 = vmul.f32 %v7868_v41, %v1169_v38  ;;  %v7870_v48 = vpop.eup %7869 }
 0x3d4   :  { %v1173_v51 = vsub.f32 1.0, %v7870_v48  ;;  %v1175_v57 = vmul.f32 %v7870_v48, %v8524_v58  ;;  %v1251_v58 = vpop.f32.mrb[12].mxu0 }
 0x3d5   :  { %v1171_v45 = vadd.f32 %v1170_v44, %v941_v62  ;;  %v1253_v62 = vpop.f32.mrb[13].mxu0 }
 0x3d7   :  { %7871 = vtanh.f32 %v1171_v45 }
 0x3e1   :  { %v7872_v55 = vpop.eup %7871 }
 0x3e2   :  { %v1174_v56 = vmul.f32 %v7872_v55, %v1173_v51 }
 0x3e4   :  { %v8582_v4 = vadd.f32 %v1175_v57, %v1174_v56 }
 0x3e6   :  { %1391 = vmatmul.mubr.f32.vlgmr.msra.gmra.mrb[14].mxu0 %v8582_v4  ;;  %6025 = vmatmul.mubr.f32.vlgmr.msra.gmra.mrb[8].mxu1 %v8582_v4 }
 0x3e7   :  { %6906 = vmatpush1.bf16.msra.mxu0 %v8321_v40  ;;  %6913 = vmatpush3.bf16.msra.mxu1 %v8391_v43 }
 0x3e8   :  { %6908 = vmatprep.subr.bf16.mxu0 %v8330_v49  ;;  %6914 = vmatprep.subr.bf16.mxu1 %v8134_v59 }
 0x3e9   :  { %1561 = vmatprep.mubr.f32.mxu0 %v8132_v1  ;;  %6035 = vmatprep.mubr.msk.f32.mxu1 %vm8135_vm0, %v8132_v1 }
 0x3eb   :  { %6910 = vmatpush1.bf16.msra.mxu0 %v8333_v52  ;;  %6916 = vmatpush3.bf16.msra.mxu1 %v8398_v47 }
 0x3ec   :  { %6918 = vmatprep.subr.bf16.mxu0 %v8292_v5  ;;  %6949 = vmatprep.subr.bf16.mxu1 %v8134_v59 }
 0x3ee   :  { %5418 = vmatmul.mubr.msk.f32.vlgmr.msra.gmra.mrb[16].mxu0 %vm245_vm1, %v1493_v12  ;;  %6036 = vmatmul.mubr.msk.f32.vlgmr.msra.gmra.mrb[10].mxu1 %vm245_vm1, %v1493_v12 }
 0x3ef   :  { %6920 = vmatpush1.bf16.msra.mxu0 %v8294_v9  ;;  %6951 = vmatpush3.bf16.msra.mxu1 %v8355_v7 }
 0x3f0   :  { %6922 = vmatprep.subr.bf16.mxu0 %v8297_v13  ;;  %6952 = vmatprep.subr.bf16.mxu1 %v8134_v59 }
 0x3f1   :  { %1702 = vmatprep.mubr.f32.mxu0 %v8132_v1  ;;  %6070 = vmatprep.mubr.msk.f32.mxu1 %vm8135_vm0, %v8132_v1 }
 0x3f3   :  { %6924 = vmatpush1.bf16.msra.mxu0 %v8300_v16  ;;  %6954 = vmatpush3.bf16.msra.mxu1 %v8360_v11 }
 0x3f4   :  { %6926 = vmatprep.subr.bf16.mxu0 %v8303_v17  ;;  %6955 = vmatprep.subr.bf16.mxu1 %v8134_v59 }
 0x3f7   :  { %6928 = vmatpush1.bf16.msra.mxu0 %v8306_v22  ;;  %6957 = vmatpush3.bf16.msra.mxu1 %v8366_v15 }
 0x3f8   :  { %6930 = vmatprep.subr.bf16.mxu0 %v8309_v23  ;;  %6958 = vmatprep.subr.bf16.mxu1 %v8134_v59 }
 0x3fb   :  { %6932 = vmatpush1.bf16.msra.mxu0 %v8312_v28  ;;  %6960 = vmatpush3.bf16.msra.mxu1 %v8370_v20 }
 0x3fc   :  { %6934 = vmatprep.subr.bf16.mxu0 %v8316_v32  ;;  %6961 = vmatprep.subr.bf16.mxu1 %v8134_v59 }
 0x3ff   :  { %6936 = vmatpush1.bf16.msra.mxu0 %v8324_v42  ;;  %6963 = vmatpush3.bf16.msra.mxu1 %v8374_v25 }
 0x400   :  { %6938 = vmatprep.subr.bf16.mxu0 %v8327_v46  ;;  %6964 = vmatprep.subr.bf16.mxu1 %v8134_v59 }
 0x403   :  { %6940 = vmatpush1.bf16.msra.mxu0 %v8337_v53  ;;  %6966 = vmatpush3.bf16.msra.mxu1 %v8378_v29 }
 0x404   :  { %6942 = vmatprep.subr.bf16.mxu0 %v8340_v54  ;;  %6967 = vmatprep.subr.bf16.mxu1 %v8134_v59 }
 0x407   :  { %6944 = vmatpush1.bf16.msra.mxu0 %v8345_v60  ;;  %6969 = vmatpush3.bf16.msra.mxu1 %v8382_v34 }
 0x408   :  { %6946 = vmatprep.subr.bf16.mxu0 %v8348_v61  ;;  %6970 = vmatprep.subr.bf16.mxu1 %v8134_v59 }
 0x40b   :  { %6948 = vmatpush1.bf16.msra.mxu0 %v8351_v3  ;;  %6972 = vmatpush3.bf16.msra.mxu1 %v8386_v37 }
 0x40c   :  { %6974 = vmatprep.subr.bf16.mxu0 %v8319_v39  ;;  %6981 = vmatprep.subr.bf16.mxu1 %v8134_v59 }
 0x438   :  { %v1803_v6 = vpop.permute.xlu0 %1802 }
 0x439   :  { %vm1804_vm7 = vcmp.eq.s32.totalorder %v8402_v50, %v1803_v6 }
 0x43a   :  { %v1805_v12 = vsel %vm1804_vm7, 1.0, %v8132_v1 }
 0x4b9   :  { %v1392_v18 = vpop.f32.mrb[14].mxu0  ;;  %v1463_v19 = vpop.f32.mrb[8].mxu1 }
 0x4ba   :  { %v1467_v21 = vadd.f32 %v1392_v18, %v1251_v58  ;;  %v1394_v24 = vpop.f32.mrb[15].mxu0  ;;  %v6026_v26 = vpop.f32.mrb[9].mxu1  ;;  %v5417_v30 = vmul.f32 -1.442695, %v1463_v19  ;;  %v8140_v18 = vmov 6   ;;  %v8699_v19 = vld [vmem:[%s9396_s0] sm:$0xff] }
 0x4bb   :  { %v1481_v44 = vadd.f32 %v8463_v33, %v1394_v24  ;;  %7832 = vset.pattern.permute.xlu1 %v8140_v18 }
 0x4bc   :  { %v5416_v27 = vmul.f32 -1.442695, %v1467_v21  ;;  %2114 = vperm.xlu1 %7832, %v8699_v19  }
 0x4be   :  { %7873 = vpow2.f32 %v5416_v27 }
 0x4bf   :  { %7875 = vpow2.f32 %v5417_v30 }
 0x4c8   :  { %v7874_v35 = vpop.eup %7873 }
 0x4c9   :  { %v1471_v36 = vadd.f32 1.0, %v7874_v35  ;;  %v7876_v38 = vpop.eup %7875 }
 0x4ca   :  { %v1478_v41 = vadd.f32 1.0, %v7876_v38 }
 0x4cb   :  { %7877 = vrcp.f32 %v1471_v36 }
 0x4cc   :  { %7879 = vrcp.f32 %v1478_v41 }
 0x4d5   :  { %v7878_v45 = vpop.eup %7877 }
 0x4d6   :  { %v1482_v2 = vmul.f32 %v7878_v45, %v1481_v44  ;;  %v7880_v48 = vpop.eup %7879 }
 0x4d7   :  { %v1485_v51 = vsub.f32 1.0, %v7880_v48  ;;  %v1487_v57 = vmul.f32 %v7880_v48, %v8582_v4  ;;  %v1563_v4 = vpop.f32.mrb[16].mxu0 }
 0x4d8   :  { %v1483_v0 = vadd.f32 %v1482_v2, %v1253_v62  ;;  %v1565_v62 = vpop.f32.mrb[17].mxu0 }
 0x4da   :  { %7881 = vtanh.f32 %v1483_v0 }
 0x4e4   :  { %v7882_v55 = vpop.eup %7881 }
 0x4e5   :  { %v1486_v56 = vmul.f32 %v7882_v55, %v1485_v51 }
 0x4e7   :  { %v8641_v58 = vadd.f32 %v1487_v57, %v1486_v56 }
 0x4e9   :  { %1703 = vmatmul.mubr.f32.vlgmr.msra.gmra.mrb[18].mxu0 %v8641_v58  ;;  %6071 = vmatmul.mubr.f32.vlgmr.msra.gmra.mrb[10].mxu1 %v8641_v58 }
 0x4ea   :  { %6976 = vmatpush1.bf16.msra.mxu0 %v8321_v40  ;;  %6983 = vmatpush3.bf16.msra.mxu1 %v8391_v43 }
 0x4eb   :  { %6978 = vmatprep.subr.bf16.mxu0 %v8330_v49  ;;  %6984 = vmatprep.subr.bf16.mxu1 %v8134_v59 }
 0x4ec   :  { %1873 = vmatprep.mubr.f32.mxu0 %v8132_v1  ;;  %6081 = vmatprep.mubr.msk.f32.mxu1 %vm8135_vm0, %v8132_v1 }
 0x4ee   :  { %6980 = vmatpush1.bf16.msra.mxu0 %v8333_v52  ;;  %6986 = vmatpush3.bf16.msra.mxu1 %v8398_v47 }
 0x4ef   :  { %6988 = vmatprep.subr.bf16.mxu0 %v8292_v5  ;;  %7019 = vmatprep.subr.bf16.mxu1 %v8134_v59 }
 0x4f1   :  { %5422 = vmatmul.mubr.msk.f32.vlgmr.msra.gmra.mrb[20].mxu0 %vm245_vm1, %v1805_v12  ;;  %6082 = vmatmul.mubr.msk.f32.vlgmr.msra.gmra.mrb[12].mxu1 %vm245_vm1, %v1805_v12 }
 0x4f2   :  { %6990 = vmatpush1.bf16.msra.mxu0 %v8294_v9  ;;  %7021 = vmatpush3.bf16.msra.mxu1 %v8355_v7 }
 0x4f3   :  { %6992 = vmatprep.subr.bf16.mxu0 %v8297_v13  ;;  %7022 = vmatprep.subr.bf16.mxu1 %v8134_v59 }
 0x4f4   :  { %2014 = vmatprep.mubr.f32.mxu0 %v8132_v1  ;;  %6116 = vmatprep.mubr.msk.f32.mxu1 %vm8135_vm0, %v8132_v1 }
 0x4f6   :  { %6994 = vmatpush1.bf16.msra.mxu0 %v8300_v16  ;;  %7024 = vmatpush3.bf16.msra.mxu1 %v8360_v11 }
 0x4f7   :  { %6996 = vmatprep.subr.bf16.mxu0 %v8303_v17  ;;  %7025 = vmatprep.subr.bf16.mxu1 %v8134_v59 }
 0x4fa   :  { %6998 = vmatpush1.bf16.msra.mxu0 %v8306_v22  ;;  %7027 = vmatpush3.bf16.msra.mxu1 %v8366_v15 }
 0x4fb   :  { %7000 = vmatprep.subr.bf16.mxu0 %v8309_v23  ;;  %7028 = vmatprep.subr.bf16.mxu1 %v8134_v59 }
 0x4fe   :  { %7002 = vmatpush1.bf16.msra.mxu0 %v8312_v28  ;;  %7030 = vmatpush3.bf16.msra.mxu1 %v8370_v20 }
 0x4ff   :  { %7004 = vmatprep.subr.bf16.mxu0 %v8316_v32  ;;  %7031 = vmatprep.subr.bf16.mxu1 %v8134_v59 }
 0x502   :  { %7006 = vmatpush1.bf16.msra.mxu0 %v8324_v42  ;;  %7033 = vmatpush3.bf16.msra.mxu1 %v8374_v25 }
 0x503   :  { %7008 = vmatprep.subr.bf16.mxu0 %v8327_v46  ;;  %7034 = vmatprep.subr.bf16.mxu1 %v8134_v59 }
 0x506   :  { %7010 = vmatpush1.bf16.msra.mxu0 %v8337_v53  ;;  %7036 = vmatpush3.bf16.msra.mxu1 %v8378_v29 }
 0x507   :  { %7012 = vmatprep.subr.bf16.mxu0 %v8340_v54  ;;  %7037 = vmatprep.subr.bf16.mxu1 %v8134_v59 }
 0x50a   :  { %7014 = vmatpush1.bf16.msra.mxu0 %v8345_v60  ;;  %7039 = vmatpush3.bf16.msra.mxu1 %v8382_v34 }
 0x50b   :  { %7016 = vmatprep.subr.bf16.mxu0 %v8348_v61  ;;  %7040 = vmatprep.subr.bf16.mxu1 %v8134_v59 }
 0x50e   :  { %7018 = vmatpush1.bf16.msra.mxu0 %v8351_v3  ;;  %7042 = vmatpush3.bf16.msra.mxu1 %v8386_v37 }
 0x50f   :  { %7044 = vmatprep.subr.bf16.mxu0 %v8319_v39  ;;  %7051 = vmatprep.subr.bf16.mxu1 %v8134_v59 }
 0x5bc   :  { %v1704_v21 = vpop.f32.mrb[18].mxu0  ;;  %v1775_v24 = vpop.f32.mrb[10].mxu1 }
 0x5bd   :  { %v1779_v26 = vadd.f32 %v1704_v21, %v1563_v4  ;;  %v1706_v27 = vpop.f32.mrb[19].mxu0  ;;  %v6072_v30 = vpop.f32.mrb[11].mxu1  ;;  %v5421_v36 = vmul.f32 -1.442695, %v1775_v24 }
 0x5be   :  { %v1793_v2 = vadd.f32 %v8463_v33, %v1706_v27  ;;  %v2115_v21 = vpop.permute.xlu1 %2114 }
 0x5bf   :  { %v5420_v35 = vmul.f32 -1.442695, %v1779_v26  ;;  %vm2116_vm8 = vcmp.eq.s32.totalorder %v8402_v50, %v2115_v21  ;;  %v8141_v26 = vmov 7   ;;  %v122_v21 = vld [vmem:[#allocation7 + $0x38] sm:$0xff] }
 0x5c0   :  { %v2117_v24 = vsel %vm2116_vm8, 1.0, %v8132_v1  ;;  %7833 = vset.pattern.permute.xlu1 %v8141_v26 }
 0x5c1   :  { %7883 = vpow2.f32 %v5420_v35  ;;  %2426 = vperm.xlu1 %7833, %v8699_v19  }
 0x5c2   :  { %7885 = vpow2.f32 %v5421_v36 }
 0x5c5   :  { %7835 = vset.pattern.permute.xlu1 %v8133_v31 }
 0x5cb   :  { %v7884_v38 = vpop.eup %7883 }
 0x5cc   :  { %v1783_v41 = vadd.f32 1.0, %v7884_v38  ;;  %v7886_v44 = vpop.eup %7885 }
 0x5cd   :  { %v1790_v45 = vadd.f32 1.0, %v7886_v44 }
 0x5ce   :  { %7887 = vrcp.f32 %v1783_v41 }
 0x5cf   :  { %7889 = vrcp.f32 %v1790_v45 }
 0x5d8   :  { %v7888_v0 = vpop.eup %7887 }
 0x5d9   :  { %v1794_v48 = vmul.f32 %v7888_v0, %v1793_v2  ;;  %v7890_v55 = vpop.eup %7889 }
 0x5da   :  { %v1797_v56 = vsub.f32 1.0, %v7890_v55  ;;  %v1799_v6 = vmul.f32 %v7890_v55, %v8641_v58  ;;  %v1875_v58 = vpop.f32.mrb[20].mxu0 }
 0x5db   :  { %v1795_v51 = vadd.f32 %v1794_v48, %v1565_v62  ;;  %v1877_v62 = vpop.f32.mrb[21].mxu0 }
 0x5dd   :  { %7891 = vtanh.f32 %v1795_v51 }
 0x5e7   :  { %v7892_v57 = vpop.eup %7891 }
 0x5e8   :  { %v1798_v4 = vmul.f32 %v7892_v57, %v1797_v56 }
 0x5ea   :  { %v8704_v12 = vadd.f32 %v1799_v6, %v1798_v4 }
 0x5ec   :  { %2015 = vmatmul.mubr.f32.vlgmr.msra.gmra.mrb[22].mxu0 %v8704_v12  ;;  %6117 = vmatmul.mubr.f32.vlgmr.msra.gmra.mrb[12].mxu1 %v8704_v12 }
 0x5ed   :  { %7046 = vmatpush1.bf16.msra.mxu0 %v8321_v40  ;;  %7053 = vmatpush3.bf16.msra.mxu1 %v8391_v43 }
 0x5ee   :  { %7048 = vmatprep.subr.bf16.mxu0 %v8330_v49  ;;  %7054 = vmatprep.subr.bf16.mxu1 %v8134_v59 }
 0x5ef   :  { %2185 = vmatprep.mubr.f32.mxu0 %v8132_v1  ;;  %6127 = vmatprep.mubr.msk.f32.mxu1 %vm8135_vm0, %v8132_v1 }
 0x5f1   :  { %7050 = vmatpush1.bf16.msra.mxu0 %v8333_v52  ;;  %7056 = vmatpush3.bf16.msra.mxu1 %v8398_v47 }
 0x5f2   :  { %7058 = vmatprep.subr.bf16.mxu0 %v8292_v5  ;;  %7089 = vmatprep.subr.bf16.mxu1 %v8134_v59 }
 0x5f4   :  { %5426 = vmatmul.mubr.msk.f32.vlgmr.msra.gmra.mrb[24].mxu0 %vm245_vm1, %v2117_v24  ;;  %6128 = vmatmul.mubr.msk.f32.vlgmr.msra.gmra.mrb[14].mxu1 %vm245_vm1, %v2117_v24  ;;  %v125_v24 = vld [vmem:[#allocation7 + $0x50] sm:$0xff] }
 0x5f5   :  { %7060 = vmatpush1.bf16.msra.mxu0 %v8294_v9  ;;  %7091 = vmatpush3.bf16.msra.mxu1 %v8355_v7 }
 0x5f6   :  { %7062 = vmatprep.subr.bf16.mxu0 %v8297_v13  ;;  %7092 = vmatprep.subr.bf16.mxu1 %v8134_v59 }
 0x5f7   :  { %2326 = vmatprep.mubr.f32.mxu0 %v8132_v1  ;;  %6162 = vmatprep.mubr.msk.f32.mxu1 %vm8135_vm0, %v8132_v1 }
 0x5f9   :  { %7064 = vmatpush1.bf16.msra.mxu0 %v8300_v16  ;;  %7094 = vmatpush3.bf16.msra.mxu1 %v8360_v11 }
 0x5fa   :  { %7066 = vmatprep.subr.bf16.mxu0 %v8303_v17  ;;  %7095 = vmatprep.subr.bf16.mxu1 %v8134_v59 }
 0x5fd   :  { %7068 = vmatpush1.bf16.msra.mxu0 %v8306_v22  ;;  %7097 = vmatpush3.bf16.msra.mxu1 %v8366_v15 }
 0x5fe   :  { %7070 = vmatprep.subr.bf16.mxu0 %v8309_v23  ;;  %7098 = vmatprep.subr.bf16.mxu1 %v8134_v59 }
 0x601   :  { %7072 = vmatpush1.bf16.msra.mxu0 %v8312_v28  ;;  %7100 = vmatpush3.bf16.msra.mxu1 %v8370_v20 }
 0x602   :  { %7074 = vmatprep.subr.bf16.mxu0 %v8316_v32  ;;  %7101 = vmatprep.subr.bf16.mxu1 %v8134_v59 }
 0x605   :  { %7076 = vmatpush1.bf16.msra.mxu0 %v8324_v42  ;;  %7103 = vmatpush3.bf16.msra.mxu1 %v8374_v25 }
 0x606   :  { %7078 = vmatprep.subr.bf16.mxu0 %v8327_v46  ;;  %7104 = vmatprep.subr.bf16.mxu1 %v8134_v59 }
 0x609   :  { %7080 = vmatpush1.bf16.msra.mxu0 %v8337_v53  ;;  %7106 = vmatpush3.bf16.msra.mxu1 %v8378_v29 }
 0x60a   :  { %7082 = vmatprep.subr.bf16.mxu0 %v8340_v54  ;;  %7107 = vmatprep.subr.bf16.mxu1 %v8134_v59 }
 0x60d   :  { %7084 = vmatpush1.bf16.msra.mxu0 %v8345_v60  ;;  %7109 = vmatpush3.bf16.msra.mxu1 %v8382_v34 }
 0x60e   :  { %7086 = vmatprep.subr.bf16.mxu0 %v8348_v61  ;;  %7110 = vmatprep.subr.bf16.mxu1 %v8134_v59 }
 0x611   :  { %7088 = vmatpush1.bf16.msra.mxu0 %v8351_v3  ;;  %7112 = vmatpush3.bf16.msra.mxu1 %v8386_v37 }
 0x612   :  { %7114 = vmatprep.subr.bf16.mxu0 %v8319_v39  ;;  %7121 = vmatprep.subr.bf16.mxu1 %v8134_v59 }
 0x6bf   :  { %v2016_v27 = vpop.f32.mrb[22].mxu0  ;;  %v2087_v30 = vpop.f32.mrb[12].mxu1 }
 0x6c0   :  { %v2091_v35 = vadd.f32 %v2016_v27, %v1875_v58  ;;  %v2018_v36 = vpop.f32.mrb[23].mxu0  ;;  %v6118_v38 = vpop.f32.mrb[13].mxu1  ;;  %v5425_v44 = vmul.f32 -1.442695, %v2087_v30  ;;  %v8850_v27 = vpack.c.bf16 %v125_v24, %v122_v21  ;;  %v121_v30 = vld [vmem:[#allocation7 + $0x30] sm:$0xff]  ;;  %v204_v21 = vld [vmem:[#allocation8 + $0xe8] sm:$0xff] }
 0x6c1   :  { %v2105_v48 = vadd.f32 %v8463_v33, %v2018_v36  ;;  %v123_v36 = vld [vmem:[#allocation7 + $0x40] sm:$0xff] }
 0x6c2   :  { %v5424_v41 = vmul.f32 -1.442695, %v2091_v35  ;;  %v124_v35 = vld [vmem:[#allocation7 + $0x48] sm:$0xff] }
 0x6c3   :  { %v8853_v38 = vpack.c.bf16 %v124_v35, %v121_v30  ;;  %v206_v30 = vld [vmem:[#allocation8 + $0xf8] sm:$0xff]  ;;  %v209_v35 = vld [vmem:[#allocation8 + $0x110] sm:$0xff] }
 0x6c4   :  { %7893 = vpow2.f32 %v5424_v41  ;;  %v126_v41 = vld [vmem:[#allocation7 + $0x58] sm:$0xff] }
 0x6c5   :  { %7895 = vpow2.f32 %v5425_v44  ;;  %v8856_v44 = vpack.c.bf16 %v126_v41, %v123_v36  ;;  %v205_v36 = vld [vmem:[#allocation8 + $0xf0] sm:$0xff]  ;;  %v8916_v41 = vpack.c.bf16 %v209_v35, %v206_v30 }
 0x6ce   :  { %v7894_v45 = vpop.eup %7893 }
 0x6cf   :  { %v2095_v39 = vadd.f32 1.0, %v7894_v45  ;;  %v7896_v2 = vpop.eup %7895 }
 0x6d0   :  { %v2102_v0 = vadd.f32 1.0, %v7896_v2  ;;  %v179_v2 = vld [vmem:[#allocation8 + $0x20] sm:$0xff] }
 0x6d1   :  { %7897 = vrcp.f32 %v2095_v39  ;;  %v176_v39 = vld [vmem:[#allocation8 + $0x8] sm:$0xff] }
 0x6d2   :  { %7899 = vrcp.f32 %v2102_v0  ;;  %v8861_v0 = vpack.c.bf16 %v179_v2, %v176_v39  ;;  %v207_v39 = vld [vmem:[#allocation8 + $0x100] sm:$0xff]  ;;  %v210_v2 = vld [vmem:[#allocation8 + $0x118] sm:$0xff] }
 0x6db   :  { %v7898_v51 = vpop.eup %7897 }
 0x6dc   :  { %v2106_v19 = vmul.f32 %v7898_v51, %v2105_v48  ;;  %v7900_v55 = vpop.eup %7899  ;;  %v175_v48 = vld [vmem:[#allocation8] sm:$0xff]  ;;  %v178_v51 = vld [vmem:[#allocation8 + $0x18] sm:$0xff] }
 0x6dd   :  { %v2109_v56 = vsub.f32 1.0, %v7900_v55  ;;  %v2111_v6 = vmul.f32 %v7900_v55, %v8704_v12  ;;  %v8865_v55 = vpack.c.bf16 %v178_v51, %v175_v48  ;;  %v8921_v51 = vpack.c.bf16 %v210_v2, %v207_v39 }
 0x6de   :  { %v2107_v31 = vadd.f32 %v2106_v19, %v1877_v62  ;;  %v177_v19 = vld [vmem:[#allocation8 + $0x10] sm:$0xff] }
 0x6e0   :  { %7901 = vtanh.f32 %v2107_v31 }
 0x6ea   :  { %v7902_v57 = vpop.eup %7901 }
 0x6eb   :  { %v2110_v4 = vmul.f32 %v7902_v57, %v2109_v56  ;;  %v180_v56 = vld [vmem:[#allocation8 + $0x28] sm:$0xff] }
 0x6ec   :  { %v8869_v57 = vpack.c.bf16 %v180_v56, %v177_v19  ;;  %v212_v19 = vld [vmem:[#allocation8 + $0x128] sm:$0xff]  ;;  %v211_v56 = vld [vmem:[#allocation8 + $0x120] sm:$0xff] }
 0x6ed   :  { %v8763_v58 = vadd.f32 %v2111_v6, %v2110_v4  ;;  %v182_v4 = vld [vmem:[#allocation8 + $0x38] sm:$0xff]  ;;  %v185_v6 = vld [vmem:[#allocation8 + $0x50] sm:$0xff] }
 0x6ef   :  { %2327 = vmatmul.mubr.f32.vlgmr.msra.gmra.mrb[26].mxu0 %v8763_v58  ;;  %6163 = vmatmul.mubr.f32.vlgmr.msra.gmra.mrb[14].mxu1 %v8763_v58 }
 0x6f0   :  { %7116 = vmatpush1.bf16.msra.mxu0 %v8321_v40  ;;  %7123 = vmatpush3.bf16.msra.mxu1 %v8391_v43  ;;  %v2187_v40 = vpop.f32.mrb[24].mxu0  ;;  %v2427_v43 = vpop.permute.xlu1 %2426 }
 0x6f1   :  { %7118 = vmatprep.subr.bf16.mxu0 %v8330_v49  ;;  %7124 = vmatprep.subr.bf16.mxu1 %v8134_v59  ;;  %v8778_v12 = vpop.f32.mrb[25].mxu0  ;;  %vm2428_vm9 = vcmp.eq.s32.totalorder %v8402_v50, %v2427_v43  ;;  %v183_v43 = vld [vmem:[#allocation8 + $0x40] sm:$0xff] }
 0x6f2   :  { %2497 = vmatprep.mubr.f32.mxu0 %v8132_v1  ;;  %6173 = vmatprep.mubr.msk.f32.mxu1 %vm8135_vm0, %v8132_v1  ;;  %v2429_v49 = vsel %vm2428_vm9, 1.0, %v8132_v1 }
 0x6f4   :  { %7120 = vmatpush1.bf16.msra.mxu0 %v8333_v52  ;;  %7126 = vmatpush3.bf16.msra.mxu1 %v8398_v47  ;;  %v119_v47 = vld [vmem:[#allocation7 + $0x20] sm:$0xff] }
 0x6f5   :  { %7128 = vmatprep.subr.bf16.mxu0 %v8292_v5  ;;  %7159 = vmatprep.subr.bf16.mxu1 %v8134_v59  ;;  %v2737_v5 = vld [vmem:[%s9397_s1] sm:$0xff] }
 0x6f6   :  { %2739 = vperm.xlu0 %7834, %v2737_v5   ;;  %3053 = vperm.xlu1 %7835, %v2737_v5  }
 0x6f7   :  { %5430 = vmatmul.mubr.msk.f32.vlgmr.msra.gmra.mrb[28].mxu0 %vm245_vm1, %v2429_v49  ;;  %6174 = vmatmul.mubr.msk.f32.vlgmr.msra.gmra.mrb[16].mxu1 %vm245_vm1, %v2429_v49 }
 0x6f8   :  { %7130 = vmatpush1.bf16.msra.mxu0 %v8294_v9  ;;  %7161 = vmatpush3.bf16.msra.mxu1 %v8355_v7 }
 0x6f9   :  { %7132 = vmatprep.subr.bf16.mxu0 %v8297_v13  ;;  %7162 = vmatprep.subr.bf16.mxu1 %v8134_v59 }
 0x6fa   :  { %2638 = vmatprep.mubr.f32.mxu0 %v8132_v1  ;;  %6208 = vmatprep.mubr.msk.f32.mxu1 %vm8135_vm0, %v8132_v1 }
 0x6fb   :  { %7836 = vset.pattern.permute.xlu1 %v8136_v63  ;;  %7837 = vset.pattern.permute.xlu0 %v8137_v8  ;;  %v118_v8 = vld [vmem:[#allocation7 + $0x18] sm:$0xff] }
 0x6fc   :  { %7134 = vmatpush1.bf16.msra.mxu0 %v8300_v16  ;;  %7164 = vmatpush3.bf16.msra.mxu1 %v8360_v11 }
 0x6fd   :  { %7136 = vmatprep.subr.bf16.mxu0 %v8303_v17  ;;  %7165 = vmatprep.subr.bf16.mxu1 %v8134_v59 }
 0x6fe   :  { %3367 = vperm.xlu1 %7836, %v2737_v5   ;;  %3681 = vperm.xlu0 %7837, %v2737_v5  }
 0x700   :  { %7138 = vmatpush1.bf16.msra.mxu0 %v8306_v22  ;;  %7167 = vmatpush3.bf16.msra.mxu1 %v8366_v15 }
 0x701   :  { %7140 = vmatprep.subr.bf16.mxu0 %v8309_v23  ;;  %7168 = vmatprep.subr.bf16.mxu1 %v8134_v59 }
 0x702   :  { %7838 = vset.pattern.permute.xlu1 %v8138_v10  ;;  %7840 = vset.pattern.permute.xlu0 %v8140_v18  ;;  %v117_v10 = vld [vmem:[#allocation7 + $0x10] sm:$0xff]  ;;  %v120_v18 = vld [vmem:[#allocation7 + $0x28] sm:$0xff] }
 0x703   :  { %3995 = vperm.xlu1 %7838, %v2737_v5   ;;  %v8846_v62 = vpack.c.bf16 %v120_v18, %v117_v10  ;;  %v201_v10 = vld [vmem:[#allocation8 + $0xd0] sm:$0xff] }
 0x704   :  { %7142 = vmatpush1.bf16.msra.mxu0 %v8312_v28  ;;  %7170 = vmatpush3.bf16.msra.mxu1 %v8370_v20  ;;  %v8913_v24 = vpack.c.bf16 %v204_v21, %v201_v10 }
 0x705   :  { %7144 = vmatprep.subr.bf16.mxu0 %v8316_v32  ;;  %7171 = vmatprep.subr.bf16.mxu1 %v8134_v59 }
 0x707   :  { %7839 = vset.pattern.permute.xlu1 %v8139_v14 }
 0x708   :  { %7146 = vmatpush1.bf16.msra.mxu0 %v8324_v42  ;;  %7173 = vmatpush3.bf16.msra.mxu1 %v8374_v25 }
 0x709   :  { %7148 = vmatprep.subr.bf16.mxu0 %v8327_v46  ;;  %7174 = vmatprep.subr.bf16.mxu1 %v8134_v59 }
 0x70a   :  { %4309 = vperm.xlu1 %7839, %v2737_v5   ;;  %v186_v5 = vld [vmem:[#allocation8 + $0x58] sm:$0xff] }
 0x70c   :  { %7150 = vmatpush1.bf16.msra.mxu0 %v8337_v53  ;;  %7176 = vmatpush3.bf16.msra.mxu1 %v8378_v29 }
 0x70d   :  { %7152 = vmatprep.subr.bf16.mxu0 %v8340_v54  ;;  %7177 = vmatprep.subr.bf16.mxu1 %v8134_v59 }
 0x70e   :  { %7841 = vset.pattern.permute.xlu1 %v8141_v26 }
 0x710   :  { %7154 = vmatpush1.bf16.msra.mxu0 %v8345_v60  ;;  %7179 = vmatpush3.bf16.msra.mxu1 %v8382_v34 }
 0x711   :  { %7156 = vmatprep.subr.bf16.mxu0 %v8348_v61  ;;  %7180 = vmatprep.subr.bf16.mxu1 %v8134_v59 }
 0x714   :  { %7158 = vmatpush1.bf16.msra.mxu0 %v8351_v3  ;;  %7182 = vmatpush3.bf16.msra.mxu1 %v8386_v37  ;;  %v116_v37 = vld [vmem:[#allocation7 + $0x8] sm:$0xff] }
 0x715   :  { %7191 = vmatprep.subr.bf16.mxu1 %v8134_v59  ;;  %v8841_v63 = vpack.c.bf16 %v119_v47, %v116_v37  ;;  %v203_v37 = vld [vmem:[#allocation8 + $0xe0] sm:$0xff] }
 0x717   :  { %7184 = vmatprep.subr.bf16.mxu0 %v8841_v63 }
 0x775   :  { %v2740_v45 = vpop.permute.xlu0 %2739 }
 0x776   :  { %vm2741_vm10 = vcmp.eq.s32.totalorder %v8402_v50, %v2740_v45  ;;  %v208_v45 = vld [vmem:[#allocation8 + $0x108] sm:$0xff] }
 0x777   :  { %v2742_v31 = vsel %vm2741_vm10, 1.0, %v8132_v1  ;;  %v8919_v48 = vpack.c.bf16 %v208_v45, %v205_v36  ;;  %v8004_v36 = vld [vmem:[%s9400_s4] ss:$0 sm:$0xff] }
 0x7c2   :  { %v2328_v9 = vpop.f32.mrb[26].mxu0  ;;  %v2399_v13 = vpop.f32.mrb[14].mxu1 }
 0x7c3   :  { %v2403_v16 = vadd.f32 %v2328_v9, %v2187_v40  ;;  %v2330_v17 = vpop.f32.mrb[27].mxu0  ;;  %v6164_v22 = vpop.f32.mrb[15].mxu1  ;;  %v5429_v28 = vmul.f32 -1.442695, %v2399_v13  ;;  %v181_v40 = vld [vmem:[#allocation8 + $0x30] sm:$0xff]  ;;  %v8883_v9 = vpack.c.bf16 %v186_v5, %v183_v43  ;;  %v188_v13 = vld [vmem:[#allocation8 + $0x68] sm:$0xff] }
 0x7c4   :  { %v2417_v53 = vadd.f32 %v8463_v33, %v2330_v17  ;;  %v115_v33 = vld [vmem:[#allocation7] sm:$0xff]  ;;  %v218_v43 = vld [vmem:[#allocation8 + $0x158] sm:$0xff]  ;;  %v221_v5 = vld [vmem:[#allocation8 + $0x170] sm:$0xff] }
 0x7c5   :  { %v5428_v23 = vmul.f32 -1.442695, %v2403_v16  ;;  %v8843_v14 = vpack.c.bf16 %v118_v8, %v115_v33  ;;  %v191_v16 = vld [vmem:[#allocation8 + $0x80] sm:$0xff]  ;;  %v202_v8 = vld [vmem:[#allocation8 + $0xd8] sm:$0xff] }
 0x7c6   :  { %v8887_v17 = vpack.c.bf16 %v191_v16, %v188_v13  ;;  %v187_v22 = vld [vmem:[#allocation8 + $0x60] sm:$0xff] }
 0x7c7   :  { %7903 = vpow2.f32 %v5428_v23  ;;  %v190_v23 = vld [vmem:[#allocation8 + $0x78] sm:$0xff]  ;;  %v199_v33 = vld [vmem:[#allocation8 + $0xc0] sm:$0xff] }
 0x7c8   :  { %7905 = vpow2.f32 %v5429_v28  ;;  %v189_v28 = vld [vmem:[#allocation8 + $0x70] sm:$0xff]  ;;  %v8910_v18 = vpack.c.bf16 %v202_v8, %v199_v33 }
 0x7ca   :  { %v8837_v29 = vpop.f32.mrb[28].mxu0 }
 0x7cb   :  { %v8839_v34 = vpop.f32.mrb[29].mxu0 }
 0x7d1   :  { %v7904_v32 = vpop.eup %7903 }
 0x7d2   :  { %v2407_v42 = vadd.f32 1.0, %v7904_v32  ;;  %v7906_v46 = vpop.eup %7905  ;;  %v8890_v32 = vpack.c.bf16 %v190_v23, %v187_v22  ;;  %v8934_v22 = vpack.c.bf16 %v221_v5, %v218_v43  ;;  %v217_v23 = vld [vmem:[#allocation8 + $0x150] sm:$0xff]  ;;  %v3054_v43 = vpop.permute.xlu1 %3053 }
 0x7d3   :  { %v2414_v52 = vadd.f32 1.0, %v7906_v46  ;;  %vm3055_vm11 = vcmp.eq.s32.totalorder %v8402_v50, %v3054_v43 }
 0x7d4   :  { %7907 = vrcp.f32 %v2407_v42  ;;  %v192_v42 = vld [vmem:[#allocation8 + $0x88] sm:$0xff]  ;;  %v3056_v5 = vsel %vm3055_vm11, 1.0, %v8132_v1 }
 0x7d5   :  { %7909 = vrcp.f32 %v2414_v52  ;;  %v8893_v46 = vpack.c.bf16 %v192_v42, %v189_v28  ;;  %v194_v52 = vld [vmem:[#allocation8 + $0x98] sm:$0xff]  ;;  %v220_v28 = vld [vmem:[#allocation8 + $0x168] sm:$0xff]  ;;  %v219_v42 = vld [vmem:[#allocation8 + $0x160] sm:$0xff] }
 0x7de   :  { %v7908_v54 = vpop.eup %7907 }
 0x7df   :  { %v2418_v60 = vmul.f32 %v7908_v54, %v2417_v53  ;;  %v7910_v3 = vpop.eup %7909  ;;  %v197_v53 = vld [vmem:[#allocation8 + $0xb0] sm:$0xff] }
 0x7e0   :  { %v2421_v7 = vsub.f32 1.0, %v7910_v3  ;;  %v2423_v20 = vmul.f32 %v7910_v3, %v8763_v58  ;;  %v8874_v58 = vpack.c.bf16 %v185_v6, %v182_v4  ;;  %v8897_v54 = vpack.c.bf16 %v197_v53, %v194_v52  ;;  %v195_v3 = vld [vmem:[#allocation8 + $0xa0] sm:$0xff]  ;;  %v214_v6 = vld [vmem:[#allocation8 + $0x138] sm:$0xff] }
 0x7e1   :  { %v2419_v61 = vadd.f32 %v2418_v60, %v8778_v12  ;;  %v184_v12 = vld [vmem:[#allocation8 + $0x48] sm:$0xff]  ;;  %v193_v60 = vld [vmem:[#allocation8 + $0x90] sm:$0xff]  ;;  %v8928_v13 = vpack.c.bf16 %v214_v6, %v211_v56  ;;  %v222_v52 = vld [vmem:[#allocation8 + $0x178] sm:$0xff]  ;;  %v8938_v53 = vpack.c.bf16 %v220_v28, %v217_v23 }
 0x7e2   :  { %v8878_v49 = vpack.c.bf16 %v184_v12, %v181_v40  ;;  %v213_v40 = vld [vmem:[#allocation8 + $0x130] sm:$0xff]  ;;  %v216_v12 = vld [vmem:[#allocation8 + $0x148] sm:$0xff] }
 0x7e3   :  { %7911 = vtanh.f32 %v2419_v61  ;;  %v196_v61 = vld [vmem:[#allocation8 + $0xa8] sm:$0xff]  ;;  %v8932_v16 = vpack.c.bf16 %v216_v12, %v213_v40 }
 0x7ed   :  { %v7912_v11 = vpop.eup %7911 }
 0x7ee   :  { %v2422_v15 = vmul.f32 %v7912_v11, %v2421_v7  ;;  %v8900_v7 = vpack.c.bf16 %v196_v61, %v193_v60  ;;  %v198_v11 = vld [vmem:[#allocation8 + $0xb8] sm:$0xff]  ;;  %v8942_v60 = vpack.c.bf16 %v222_v52, %v219_v42 }
 0x7f0   :  { %v8830_v25 = vadd.f32 %v2423_v20, %v2422_v15  ;;  %v8903_v15 = vpack.c.bf16 %v198_v11, %v195_v3  ;;  %v200_v20 = vld [vmem:[#allocation8 + $0xc8] sm:$0xff] }
 0x7f1   :  { %v8907_v47 = vpack.c.bf16 %v203_v37, %v200_v20 }
 0x7f2   :  { %2639 = vmatmul.mubr.f32.vlgmr.msra.gmra.mrb[30].mxu0 %v8830_v25  ;;  %6209 = vmatmul.mubr.f32.vlgmr.msra.gmra.mrb[16].mxu1 %v8830_v25 }
 0x7f3   :  { %2810 = vmatprep.mubr.f32.mxu0 %v8132_v1  ;;  %6219 = vmatprep.mubr.msk.f32.mxu1 %vm8135_vm0, %v8132_v1 }
 0x7f4   :  { %7186 = vmatpush1.bf16.msra.mxu0 %v8843_v14  ;;  %7193 = vmatpush3.bf16.msra.mxu1 %v8846_v62 }
 0x7f5   :  { %7194 = vmatprep.subr.bf16.mxu1 %v8134_v59  ;;  %7188 = vmatprep.subr.bf16.mxu0 %v8850_v27 }
 0x7f8   :  { %7190 = vmatpush1.bf16.msra.mxu0 %v8853_v38  ;;  %7196 = vmatpush3.bf16.msra.mxu1 %v8856_v44 }
 0x7f9   :  { %7229 = vmatprep.subr.bf16.mxu1 %v8134_v59  ;;  %7198 = vmatprep.subr.bf16.mxu0 %v8861_v0 }
 0x7fb   :  { %5434 = vmatmul.mubr.msk.f32.vlgmr.msra.gmra.mrb[32].mxu0 %vm245_vm1, %v2742_v31  ;;  %6220 = vmatmul.mubr.msk.f32.vlgmr.msra.gmra.mrb[18].mxu1 %vm245_vm1, %v2742_v31  ;;  %v215_v31 = vld [vmem:[#allocation8 + $0x140] sm:$0xff] }
 0x7fc   :  { %7200 = vmatpush1.bf16.msra.mxu0 %v8865_v55  ;;  %7231 = vmatpush3.bf16.msra.mxu1 %v8869_v57  ;;  %v8925_v4 = vpack.c.bf16 %v215_v31, %v212_v19 }
 0x7fd   :  { %2951 = vmatprep.mubr.f32.mxu0 %v8132_v1  ;;  %7232 = vmatprep.subr.bf16.mxu1 %v8134_v59 }
 0x7fe   :  { %6254 = vmatprep.mubr.msk.f32.mxu1 %vm8135_vm0, %v8132_v1  ;;  %7202 = vmatprep.subr.bf16.mxu0 %v8874_v58 }
 0x800   :  { %7204 = vmatpush1.bf16.msra.mxu0 %v8878_v49  ;;  %7234 = vmatpush3.bf16.msra.mxu1 %v8883_v9 }
 0x801   :  { %7235 = vmatprep.subr.bf16.mxu1 %v8134_v59  ;;  %7206 = vmatprep.subr.bf16.mxu0 %v8887_v17 }
 0x804   :  { %7208 = vmatpush1.bf16.msra.mxu0 %v8890_v32  ;;  %7237 = vmatpush3.bf16.msra.mxu1 %v8893_v46 }
 0x805   :  { %7238 = vmatprep.subr.bf16.mxu1 %v8134_v59  ;;  %7210 = vmatprep.subr.bf16.mxu0 %v8897_v54 }
 0x808   :  { %7212 = vmatpush1.bf16.msra.mxu0 %v8900_v7  ;;  %7240 = vmatpush3.bf16.msra.mxu1 %v8903_v15 }
 0x809   :  { %7241 = vmatprep.subr.bf16.mxu1 %v8134_v59  ;;  %7214 = vmatprep.subr.bf16.mxu0 %v8907_v47 }
 0x80c   :  { %7216 = vmatpush1.bf16.msra.mxu0 %v8910_v18  ;;  %7243 = vmatpush3.bf16.msra.mxu1 %v8913_v24 }
 0x80d   :  { %7218 = vmatprep.subr.bf16.mxu0 %v8916_v41  ;;  %7244 = vmatprep.subr.bf16.mxu1 %v8134_v59 }
 0x810   :  { %7220 = vmatpush1.bf16.msra.mxu0 %v8919_v48  ;;  %7246 = vmatpush3.bf16.msra.mxu1 %v8921_v51 }
 0x811   :  { %7222 = vmatprep.subr.bf16.mxu0 %v8925_v4  ;;  %7247 = vmatprep.subr.bf16.mxu1 %v8134_v59 }
 0x814   :  { %7224 = vmatpush1.bf16.msra.mxu0 %v8928_v13  ;;  %7249 = vmatpush3.bf16.msra.mxu1 %v8932_v16 }
 0x815   :  { %7226 = vmatprep.subr.bf16.mxu0 %v8934_v22  ;;  %7250 = vmatprep.subr.bf16.mxu1 %v8134_v59 }
 0x818   :  { %7228 = vmatpush1.bf16.msra.mxu0 %v8938_v53  ;;  %7252 = vmatpush3.bf16.msra.mxu1 %v8942_v60 }
 0x819   :  { %7254 = vmatprep.subr.bf16.mxu0 %v8841_v63  ;;  %7261 = vmatprep.subr.bf16.mxu1 %v8134_v59 }
 0x8c5   :  { %v2640_v61 = vpop.f32.mrb[30].mxu0  ;;  %v2711_v3 = vpop.f32.mrb[16].mxu1 }
 0x8c6   :  { %v2715_v11 = vadd.f32 %v2640_v61, %v8837_v29  ;;  %v2642_v20 = vpop.f32.mrb[31].mxu0  ;;  %v6210_v37 = vpop.f32.mrb[17].mxu1  ;;  %v5433_v8 = vmul.f32 -1.442695, %v2711_v3 }
 0x8c7   :  { %v2729_v45 = vadd.f32 %v8004_v36, %v2642_v20 }
 0x8c8   :  { %v5432_v33 = vmul.f32 -1.442695, %v2715_v11 }
 0x8ca   :  { %7913 = vpow2.f32 %v5432_v33 }
 0x8cb   :  { %7915 = vpow2.f32 %v5433_v8  ;;  %v9012_v8 = vld [vmem:[%s9403_s7] ss:$0 sm:$0xff] }
 0x8d4   :  { %v7914_v10 = vpop.eup %7913 }
 0x8d5   :  { %v2719_v21 = vadd.f32 1.0, %v7914_v10  ;;  %v7916_v30 = vpop.eup %7915 }
 0x8d6   :  { %v2726_v35 = vadd.f32 1.0, %v7916_v30 }
 0x8d7   :  { %7917 = vrcp.f32 %v2719_v21 }
 0x8d8   :  { %7919 = vrcp.f32 %v2726_v35 }
 0x8e1   :  { %v7918_v39 = vpop.eup %7917 }
 0x8e2   :  { %v2730_v2 = vmul.f32 %v7918_v39, %v2729_v45  ;;  %v7920_v19 = vpop.eup %7919 }
 0x8e3   :  { %v2733_v31 = vsub.f32 1.0, %v7920_v19  ;;  %v2735_v40 = vmul.f32 %v7920_v19, %v8830_v25  ;;  %v2812_v25 = vpop.f32.mrb[32].mxu0 }
 0x8e4   :  { %v2731_v29 = vadd.f32 %v2730_v2, %v8839_v34  ;;  %v2814_v34 = vpop.f32.mrb[33].mxu0 }
 0x8e6   :  { %7921 = vtanh.f32 %v2731_v29 }
 0x8f0   :  { %v7922_v56 = vpop.eup %7921 }
 0x8f1   :  { %v2734_v6 = vmul.f32 %v7922_v56, %v2733_v31 }
 0x8f3   :  { %v8955_v12 = vadd.f32 %v2735_v40, %v2734_v6  ;;  %v3368_v40 = vpop.permute.xlu1 %3367 }
 0x8f4   :  { %vm3369_vm12 = vcmp.eq.s32.totalorder %v8402_v50, %v3368_v40 }
 0x8f5   :  { %2952 = vmatmul.mubr.f32.vlgmr.msra.gmra.mrb[34].mxu0 %v8955_v12  ;;  %6255 = vmatmul.mubr.f32.vlgmr.msra.gmra.mrb[18].mxu1 %v8955_v12 }
 0x8f6   :  { %7256 = vmatpush1.bf16.msra.mxu0 %v8843_v14  ;;  %7263 = vmatpush3.bf16.msra.mxu1 %v8846_v62 }
 0x8f7   :  { %7258 = vmatprep.subr.bf16.mxu0 %v8850_v27  ;;  %7264 = vmatprep.subr.bf16.mxu1 %v8134_v59 }
 0x8f8   :  { %3124 = vmatprep.mubr.f32.mxu0 %v8132_v1  ;;  %6265 = vmatprep.mubr.msk.f32.mxu1 %vm8135_vm0, %v8132_v1 }
 0x8fa   :  { %7260 = vmatpush1.bf16.msra.mxu0 %v8853_v38  ;;  %7266 = vmatpush3.bf16.msra.mxu1 %v8856_v44 }
 0x8fb   :  { %7268 = vmatprep.subr.bf16.mxu0 %v8861_v0  ;;  %7299 = vmatprep.subr.bf16.mxu1 %v8134_v59 }
 0x8fd   :  { %5438 = vmatmul.mubr.msk.f32.vlgmr.msra.gmra.mrb[36].mxu0 %vm245_vm1, %v3056_v5  ;;  %6266 = vmatmul.mubr.msk.f32.vlgmr.msra.gmra.mrb[20].mxu1 %vm245_vm1, %v3056_v5 }
 0x8fe   :  { %7270 = vmatpush1.bf16.msra.mxu0 %v8865_v55  ;;  %7301 = vmatpush3.bf16.msra.mxu1 %v8869_v57 }
 0x8ff   :  { %7272 = vmatprep.subr.bf16.mxu0 %v8874_v58  ;;  %7302 = vmatprep.subr.bf16.mxu1 %v8134_v59 }
 0x900   :  { %3265 = vmatprep.mubr.f32.mxu0 %v8132_v1  ;;  %6300 = vmatprep.mubr.msk.f32.mxu1 %vm8135_vm0, %v8132_v1 }
 0x902   :  { %7274 = vmatpush1.bf16.msra.mxu0 %v8878_v49  ;;  %7304 = vmatpush3.bf16.msra.mxu1 %v8883_v9 }
 0x903   :  { %7276 = vmatprep.subr.bf16.mxu0 %v8887_v17  ;;  %7305 = vmatprep.subr.bf16.mxu1 %v8134_v59 }
 0x906   :  { %7278 = vmatpush1.bf16.msra.mxu0 %v8890_v32  ;;  %7307 = vmatpush3.bf16.msra.mxu1 %v8893_v46 }
 0x907   :  { %7280 = vmatprep.subr.bf16.mxu0 %v8897_v54  ;;  %7308 = vmatprep.subr.bf16.mxu1 %v8134_v59 }
 0x90a   :  { %7282 = vmatpush1.bf16.msra.mxu0 %v8900_v7  ;;  %7310 = vmatpush3.bf16.msra.mxu1 %v8903_v15 }
 0x90b   :  { %7284 = vmatprep.subr.bf16.mxu0 %v8907_v47  ;;  %7311 = vmatprep.subr.bf16.mxu1 %v8134_v59 }
 0x90e   :  { %7286 = vmatpush1.bf16.msra.mxu0 %v8910_v18  ;;  %7313 = vmatpush3.bf16.msra.mxu1 %v8913_v24 }
 0x90f   :  { %7288 = vmatprep.subr.bf16.mxu0 %v8916_v41  ;;  %7314 = vmatprep.subr.bf16.mxu1 %v8134_v59 }
 0x912   :  { %7290 = vmatpush1.bf16.msra.mxu0 %v8919_v48  ;;  %7316 = vmatpush3.bf16.msra.mxu1 %v8921_v51 }
 0x913   :  { %7292 = vmatprep.subr.bf16.mxu0 %v8925_v4  ;;  %7317 = vmatprep.subr.bf16.mxu1 %v8134_v59 }
 0x916   :  { %7294 = vmatpush1.bf16.msra.mxu0 %v8928_v13  ;;  %7319 = vmatpush3.bf16.msra.mxu1 %v8932_v16 }
 0x917   :  { %7296 = vmatprep.subr.bf16.mxu0 %v8934_v22  ;;  %7320 = vmatprep.subr.bf16.mxu1 %v8134_v59 }
 0x91a   :  { %7298 = vmatpush1.bf16.msra.mxu0 %v8938_v53  ;;  %7322 = vmatpush3.bf16.msra.mxu1 %v8942_v60 }
 0x91b   :  { %7324 = vmatprep.subr.bf16.mxu0 %v8841_v63  ;;  %7331 = vmatprep.subr.bf16.mxu1 %v8134_v59 }
 0x9c8   :  { %v2953_v23 = vpop.f32.mrb[34].mxu0  ;;  %v3024_v28 = vpop.f32.mrb[18].mxu1 }
 0x9c9   :  { %v3028_v42 = vadd.f32 %v2953_v23, %v2812_v25  ;;  %v2955_v52 = vpop.f32.mrb[35].mxu0  ;;  %v6256_v61 = vpop.f32.mrb[19].mxu1  ;;  %v5437_v11 = vmul.f32 -1.442695, %v3024_v28 }
 0x9ca   :  { %v3042_v21 = vadd.f32 %v9012_v8, %v2955_v52 }
 0x9cb   :  { %v5436_v3 = vmul.f32 -1.442695, %v3028_v42 }
 0x9cd   :  { %7923 = vpow2.f32 %v5436_v3 }
 0x9ce   :  { %7925 = vpow2.f32 %v5437_v11 }
 0x9d0   :  { %v3126_v56 = vpop.f32.mrb[36].mxu0 }
 0x9d1   :  { %v3128_v6 = vpop.f32.mrb[37].mxu0 }
 0x9d7   :  { %v7924_v20 = vpop.eup %7923 }
 0x9d8   :  { %v3032_v37 = vadd.f32 1.0, %v7924_v20  ;;  %v7926_v33 = vpop.eup %7925 }
 0x9d9   :  { %v3039_v10 = vadd.f32 1.0, %v7926_v33 }
 0x9da   :  { %7927 = vrcp.f32 %v3032_v37 }
 0x9db   :  { %7929 = vrcp.f32 %v3039_v10 }
 0x9e4   :  { %v7928_v30 = vpop.eup %7927 }
 0x9e5   :  { %v3043_v35 = vmul.f32 %v7928_v30, %v3042_v21  ;;  %v7930_v45 = vpop.eup %7929 }
 0x9e6   :  { %v3046_v39 = vsub.f32 1.0, %v7930_v45  ;;  %v3048_v19 = vmul.f32 %v7930_v45, %v8955_v12  ;;  %v3370_v12 = vsel %vm3369_vm12, 1.0, %v8132_v1 }
 0x9e7   :  { %v3044_v36 = vadd.f32 %v3043_v35, %v2814_v34 }
 0x9e9   :  { %7931 = vtanh.f32 %v3044_v36 }
 0x9f3   :  { %v7932_v2 = vpop.eup %7931 }
 0x9f4   :  { %v3047_v29 = vmul.f32 %v7932_v2, %v3046_v39 }
 0x9f6   :  { %v9016_v31 = vadd.f32 %v3048_v19, %v3047_v29  ;;  %v3682_v19 = vpop.permute.xlu0 %3681 }
 0x9f7   :  { %vm3683_vm13 = vcmp.eq.s32.totalorder %v8402_v50, %v3682_v19 }
 0x9f8   :  { %3266 = vmatmul.mubr.f32.vlgmr.msra.gmra.mrb[38].mxu0 %v9016_v31  ;;  %6301 = vmatmul.mubr.f32.vlgmr.msra.gmra.mrb[20].mxu1 %v9016_v31 }
 0x9f9   :  { %7326 = vmatpush1.bf16.msra.mxu0 %v8843_v14  ;;  %7333 = vmatpush3.bf16.msra.mxu1 %v8846_v62 }
 0x9fa   :  { %7328 = vmatprep.subr.bf16.mxu0 %v8850_v27  ;;  %7334 = vmatprep.subr.bf16.mxu1 %v8134_v59 }
 0x9fb   :  { %3438 = vmatprep.mubr.f32.mxu0 %v8132_v1  ;;  %6311 = vmatprep.mubr.msk.f32.mxu1 %vm8135_vm0, %v8132_v1 }
 0x9fd   :  { %7330 = vmatpush1.bf16.msra.mxu0 %v8853_v38  ;;  %7336 = vmatpush3.bf16.msra.mxu1 %v8856_v44 }
 0x9fe   :  { %7338 = vmatprep.subr.bf16.mxu0 %v8861_v0  ;;  %7369 = vmatprep.subr.bf16.mxu1 %v8134_v59 }
 0xa00   :  { %5442 = vmatmul.mubr.msk.f32.vlgmr.msra.gmra.mrb[40].mxu0 %vm245_vm1, %v3370_v12  ;;  %6312 = vmatmul.mubr.msk.f32.vlgmr.msra.gmra.mrb[22].mxu1 %vm245_vm1, %v3370_v12 }
 0xa01   :  { %7340 = vmatpush1.bf16.msra.mxu0 %v8865_v55  ;;  %7371 = vmatpush3.bf16.msra.mxu1 %v8869_v57 }
 0xa02   :  { %7342 = vmatprep.subr.bf16.mxu0 %v8874_v58  ;;  %7372 = vmatprep.subr.bf16.mxu1 %v8134_v59 }
 0xa03   :  { %3579 = vmatprep.mubr.f32.mxu0 %v8132_v1  ;;  %6346 = vmatprep.mubr.msk.f32.mxu1 %vm8135_vm0, %v8132_v1 }
 0xa05   :  { %7344 = vmatpush1.bf16.msra.mxu0 %v8878_v49  ;;  %7374 = vmatpush3.bf16.msra.mxu1 %v8883_v9 }
 0xa06   :  { %7346 = vmatprep.subr.bf16.mxu0 %v8887_v17  ;;  %7375 = vmatprep.subr.bf16.mxu1 %v8134_v59 }
 0xa09   :  { %7348 = vmatpush1.bf16.msra.mxu0 %v8890_v32  ;;  %7377 = vmatpush3.bf16.msra.mxu1 %v8893_v46 }
 0xa0a   :  { %7350 = vmatprep.subr.bf16.mxu0 %v8897_v54  ;;  %7378 = vmatprep.subr.bf16.mxu1 %v8134_v59 }
 0xa0d   :  { %7352 = vmatpush1.bf16.msra.mxu0 %v8900_v7  ;;  %7380 = vmatpush3.bf16.msra.mxu1 %v8903_v15 }
 0xa0e   :  { %7354 = vmatprep.subr.bf16.mxu0 %v8907_v47  ;;  %7381 = vmatprep.subr.bf16.mxu1 %v8134_v59 }
 0xa11   :  { %7356 = vmatpush1.bf16.msra.mxu0 %v8910_v18  ;;  %7383 = vmatpush3.bf16.msra.mxu1 %v8913_v24 }
 0xa12   :  { %7358 = vmatprep.subr.bf16.mxu0 %v8916_v41  ;;  %7384 = vmatprep.subr.bf16.mxu1 %v8134_v59 }
 0xa15   :  { %7360 = vmatpush1.bf16.msra.mxu0 %v8919_v48  ;;  %7386 = vmatpush3.bf16.msra.mxu1 %v8921_v51 }
 0xa16   :  { %7362 = vmatprep.subr.bf16.mxu0 %v8925_v4  ;;  %7387 = vmatprep.subr.bf16.mxu1 %v8134_v59 }
 0xa19   :  { %7364 = vmatpush1.bf16.msra.mxu0 %v8928_v13  ;;  %7389 = vmatpush3.bf16.msra.mxu1 %v8932_v16 }
 0xa1a   :  { %7366 = vmatprep.subr.bf16.mxu0 %v8934_v22  ;;  %7390 = vmatprep.subr.bf16.mxu1 %v8134_v59 }
 0xa1d   :  { %7368 = vmatpush1.bf16.msra.mxu0 %v8938_v53  ;;  %7392 = vmatpush3.bf16.msra.mxu1 %v8942_v60 }
 0xa1e   :  { %7394 = vmatprep.subr.bf16.mxu0 %v8841_v63  ;;  %7401 = vmatprep.subr.bf16.mxu1 %v8134_v59 }
 0xacb   :  { %v3267_v25 = vpop.f32.mrb[38].mxu0  ;;  %v3338_v34 = vpop.f32.mrb[20].mxu1 }
 0xacc   :  { %v3342_v43 = vadd.f32 %v3267_v25, %v3126_v56  ;;  %v3269_v5 = vpop.f32.mrb[39].mxu0  ;;  %v6302_v23 = vpop.f32.mrb[21].mxu1  ;;  %v5441_v42 = vmul.f32 -1.442695, %v3338_v34  ;;  %v3684_v56 = vsel %vm3683_vm13, 1.0, %v8132_v1 }
 0xacd   :  { %v3356_v20 = vadd.f32 %v9012_v8, %v3269_v5 }
 0xace   :  { %v5440_v28 = vmul.f32 -1.442695, %v3342_v43 }
 0xad0   :  { %7933 = vpow2.f32 %v5440_v28 }
 0xad1   :  { %7935 = vpow2.f32 %v5441_v42 }
 0xad3   :  { %v3440_v2 = vpop.f32.mrb[40].mxu0 }
 0xad4   :  { %v3442_v29 = vpop.f32.mrb[41].mxu0 }
 0xada   :  { %v7934_v52 = vpop.eup %7933 }
 0xadb   :  { %v3346_v61 = vadd.f32 1.0, %v7934_v52  ;;  %v7936_v3 = vpop.eup %7935 }
 0xadc   :  { %v3353_v11 = vadd.f32 1.0, %v7936_v3 }
 0xadd   :  { %7937 = vrcp.f32 %v3346_v61 }
 0xade   :  { %7939 = vrcp.f32 %v3353_v11 }
 0xae7   :  { %v7938_v37 = vpop.eup %7937 }
 0xae8   :  { %v3357_v33 = vmul.f32 %v7938_v37, %v3356_v20  ;;  %v7940_v21 = vpop.eup %7939 }
 0xae9   :  { %v3360_v30 = vsub.f32 1.0, %v7940_v21  ;;  %v3362_v45 = vmul.f32 %v7940_v21, %v9016_v31 }
 0xaea   :  { %v3358_v10 = vadd.f32 %v3357_v33, %v3128_v6 }
 0xaec   :  { %7941 = vtanh.f32 %v3358_v10 }
 0xaf6   :  { %v7942_v35 = vpop.eup %7941 }
 0xaf7   :  { %v3361_v36 = vmul.f32 %v7942_v35, %v3360_v30 }
 0xaf9   :  { %v9072_v39 = vadd.f32 %v3362_v45, %v3361_v36 }
 0xafb   :  { %3580 = vmatmul.mubr.f32.vlgmr.msra.gmra.mrb[42].mxu0 %v9072_v39  ;;  %6347 = vmatmul.mubr.f32.vlgmr.msra.gmra.mrb[22].mxu1 %v9072_v39 }
 0xafc   :  { %7396 = vmatpush1.bf16.msra.mxu0 %v8843_v14  ;;  %7403 = vmatpush3.bf16.msra.mxu1 %v8846_v62 }
 0xafd   :  { %7398 = vmatprep.subr.bf16.mxu0 %v8850_v27  ;;  %7404 = vmatprep.subr.bf16.mxu1 %v8134_v59 }
 0xafe   :  { %3752 = vmatprep.mubr.f32.mxu0 %v8132_v1  ;;  %6357 = vmatprep.mubr.msk.f32.mxu1 %vm8135_vm0, %v8132_v1 }
 0xb00   :  { %7400 = vmatpush1.bf16.msra.mxu0 %v8853_v38  ;;  %7406 = vmatpush3.bf16.msra.mxu1 %v8856_v44 }
 0xb01   :  { %7408 = vmatprep.subr.bf16.mxu0 %v8861_v0  ;;  %7439 = vmatprep.subr.bf16.mxu1 %v8134_v59 }
 0xb03   :  { %5446 = vmatmul.mubr.msk.f32.vlgmr.msra.gmra.mrb[44].mxu0 %vm245_vm1, %v3684_v56  ;;  %6358 = vmatmul.mubr.msk.f32.vlgmr.msra.gmra.mrb[24].mxu1 %vm245_vm1, %v3684_v56 }
 0xb04   :  { %7410 = vmatpush1.bf16.msra.mxu0 %v8865_v55  ;;  %7441 = vmatpush3.bf16.msra.mxu1 %v8869_v57 }
 0xb05   :  { %7412 = vmatprep.subr.bf16.mxu0 %v8874_v58  ;;  %7442 = vmatprep.subr.bf16.mxu1 %v8134_v59 }
 0xb06   :  { %3893 = vmatprep.mubr.f32.mxu0 %v8132_v1  ;;  %6392 = vmatprep.mubr.msk.f32.mxu1 %vm8135_vm0, %v8132_v1 }
 0xb08   :  { %7414 = vmatpush1.bf16.msra.mxu0 %v8878_v49  ;;  %7444 = vmatpush3.bf16.msra.mxu1 %v8883_v9 }
 0xb09   :  { %7416 = vmatprep.subr.bf16.mxu0 %v8887_v17  ;;  %7445 = vmatprep.subr.bf16.mxu1 %v8134_v59 }
 0xb0c   :  { %7418 = vmatpush1.bf16.msra.mxu0 %v8890_v32  ;;  %7447 = vmatpush3.bf16.msra.mxu1 %v8893_v46 }
 0xb0d   :  { %7420 = vmatprep.subr.bf16.mxu0 %v8897_v54  ;;  %7448 = vmatprep.subr.bf16.mxu1 %v8134_v59 }
 0xb10   :  { %7422 = vmatpush1.bf16.msra.mxu0 %v8900_v7  ;;  %7450 = vmatpush3.bf16.msra.mxu1 %v8903_v15 }
 0xb11   :  { %7424 = vmatprep.subr.bf16.mxu0 %v8907_v47  ;;  %7451 = vmatprep.subr.bf16.mxu1 %v8134_v59 }
 0xb14   :  { %7426 = vmatpush1.bf16.msra.mxu0 %v8910_v18  ;;  %7453 = vmatpush3.bf16.msra.mxu1 %v8913_v24 }
 0xb15   :  { %7428 = vmatprep.subr.bf16.mxu0 %v8916_v41  ;;  %7454 = vmatprep.subr.bf16.mxu1 %v8134_v59 }
 0xb18   :  { %7430 = vmatpush1.bf16.msra.mxu0 %v8919_v48  ;;  %7456 = vmatpush3.bf16.msra.mxu1 %v8921_v51 }
 0xb19   :  { %7432 = vmatprep.subr.bf16.mxu0 %v8925_v4  ;;  %7457 = vmatprep.subr.bf16.mxu1 %v8134_v59 }
 0xb1c   :  { %7434 = vmatpush1.bf16.msra.mxu0 %v8928_v13  ;;  %7459 = vmatpush3.bf16.msra.mxu1 %v8932_v16 }
 0xb1d   :  { %7436 = vmatprep.subr.bf16.mxu0 %v8934_v22  ;;  %7460 = vmatprep.subr.bf16.mxu1 %v8134_v59 }
 0xb20   :  { %7438 = vmatpush1.bf16.msra.mxu0 %v8938_v53  ;;  %7462 = vmatpush3.bf16.msra.mxu1 %v8942_v60 }
 0xb21   :  { %7464 = vmatprep.subr.bf16.mxu0 %v8841_v63  ;;  %7471 = vmatprep.subr.bf16.mxu1 %v8134_v59 }
 0xbce   :  { %v3581_v6 = vpop.f32.mrb[42].mxu0  ;;  %v3652_v40 = vpop.f32.mrb[22].mxu1 }
 0xbcf   :  { %v3656_v12 = vadd.f32 %v3581_v6, %v3440_v2  ;;  %v3583_v25 = vpop.f32.mrb[43].mxu0  ;;  %v6348_v34 = vpop.f32.mrb[23].mxu1  ;;  %v5445_v5 = vmul.f32 -1.442695, %v3652_v40 }
 0xbd0   :  { %v3670_v61 = vadd.f32 %v9012_v8, %v3583_v25  ;;  %v3996_v2 = vpop.permute.xlu1 %3995 }
 0xbd1   :  { %v5444_v43 = vmul.f32 -1.442695, %v3656_v12  ;;  %vm3997_vm14 = vcmp.eq.s32.totalorder %v8402_v50, %v3996_v2 }
 0xbd3   :  { %7943 = vpow2.f32 %v5444_v43 }
 0xbd4   :  { %7945 = vpow2.f32 %v5445_v5 }
 0xbd6   :  { %v3754_v36 = vpop.f32.mrb[44].mxu0 }
 0xbd7   :  { %v3756_v45 = vpop.f32.mrb[45].mxu0 }
 0xbdd   :  { %v7944_v23 = vpop.eup %7943 }
 0xbde   :  { %v3660_v28 = vadd.f32 1.0, %v7944_v23  ;;  %v7946_v42 = vpop.eup %7945 }
 0xbdf   :  { %v3667_v52 = vadd.f32 1.0, %v7946_v42 }
 0xbe0   :  { %7947 = vrcp.f32 %v3660_v28 }
 0xbe1   :  { %7949 = vrcp.f32 %v3667_v52 }
 0xbea   :  { %v7948_v3 = vpop.eup %7947 }
 0xbeb   :  { %v3671_v11 = vmul.f32 %v7948_v3, %v3670_v61  ;;  %v7950_v37 = vpop.eup %7949 }
 0xbec   :  { %v3674_v33 = vsub.f32 1.0, %v7950_v37  ;;  %v3676_v30 = vmul.f32 %v7950_v37, %v9072_v39 }
 0xbed   :  { %v3672_v20 = vadd.f32 %v3671_v11, %v3442_v29  ;;  %v3998_v29 = vsel %vm3997_vm14, 1.0, %v8132_v1 }
 0xbef   :  { %7951 = vtanh.f32 %v3672_v20 }
 0xbf9   :  { %v7952_v10 = vpop.eup %7951 }
 0xbfa   :  { %v3675_v21 = vmul.f32 %v7952_v10, %v3674_v33 }
 0xbfc   :  { %v9128_v35 = vadd.f32 %v3676_v30, %v3675_v21 }
 0xbfe   :  { %3894 = vmatmul.mubr.f32.vlgmr.msra.gmra.mrb[46].mxu0 %v9128_v35  ;;  %6393 = vmatmul.mubr.f32.vlgmr.msra.gmra.mrb[24].mxu1 %v9128_v35 }
 0xbff   :  { %7466 = vmatpush1.bf16.msra.mxu0 %v8843_v14  ;;  %7473 = vmatpush3.bf16.msra.mxu1 %v8846_v62 }
 0xc00   :  { %7468 = vmatprep.subr.bf16.mxu0 %v8850_v27  ;;  %7474 = vmatprep.subr.bf16.mxu1 %v8134_v59 }
 0xc01   :  { %4066 = vmatprep.mubr.f32.mxu0 %v8132_v1  ;;  %6403 = vmatprep.mubr.msk.f32.mxu1 %vm8135_vm0, %v8132_v1 }
 0xc03   :  { %7470 = vmatpush1.bf16.msra.mxu0 %v8853_v38  ;;  %7476 = vmatpush3.bf16.msra.mxu1 %v8856_v44 }
 0xc04   :  { %7478 = vmatprep.subr.bf16.mxu0 %v8861_v0  ;;  %7509 = vmatprep.subr.bf16.mxu1 %v8134_v59 }
 0xc06   :  { %5450 = vmatmul.mubr.msk.f32.vlgmr.msra.gmra.mrb[48].mxu0 %vm245_vm1, %v3998_v29  ;;  %6404 = vmatmul.mubr.msk.f32.vlgmr.msra.gmra.mrb[26].mxu1 %vm245_vm1, %v3998_v29  ;;  %v4621_v29 = vld [vmem:[%s9397_s1] sm:$0xff] }
 0xc07   :  { %7480 = vmatpush1.bf16.msra.mxu0 %v8865_v55  ;;  %7511 = vmatpush3.bf16.msra.mxu1 %v8869_v57 }
 0xc08   :  { %7482 = vmatprep.subr.bf16.mxu0 %v8874_v58  ;;  %7512 = vmatprep.subr.bf16.mxu1 %v8134_v59 }
 0xc09   :  { %4207 = vmatprep.mubr.f32.mxu0 %v8132_v1  ;;  %6438 = vmatprep.mubr.msk.f32.mxu1 %vm8135_vm0, %v8132_v1 }
 0xc0a   :  { %4623 = vperm.xlu0 %7840, %v4621_v29   ;;  %4937 = vperm.xlu1 %7841, %v4621_v29  }
 0xc0b   :  { %7484 = vmatpush1.bf16.msra.mxu0 %v8878_v49  ;;  %7514 = vmatpush3.bf16.msra.mxu1 %v8883_v9 }
 0xc0c   :  { %7486 = vmatprep.subr.bf16.mxu0 %v8887_v17  ;;  %7515 = vmatprep.subr.bf16.mxu1 %v8134_v59 }
 0xc0e   :  { %7842 = vset.pattern.permute.xlu0 %v8141_v26 }
 0xc0f   :  { %7488 = vmatpush1.bf16.msra.mxu0 %v8890_v32  ;;  %7517 = vmatpush3.bf16.msra.mxu1 %v8893_v46 }
 0xc10   :  { %7490 = vmatprep.subr.bf16.mxu0 %v8897_v54  ;;  %7518 = vmatprep.subr.bf16.mxu1 %v8134_v59 }
 0xc13   :  { %7492 = vmatpush1.bf16.msra.mxu0 %v8900_v7  ;;  %7520 = vmatpush3.bf16.msra.mxu1 %v8903_v15 }
 0xc14   :  { %7494 = vmatprep.subr.bf16.mxu0 %v8907_v47  ;;  %7521 = vmatprep.subr.bf16.mxu1 %v8134_v59 }
 0xc17   :  { %7496 = vmatpush1.bf16.msra.mxu0 %v8910_v18  ;;  %7523 = vmatpush3.bf16.msra.mxu1 %v8913_v24 }
 0xc18   :  { %7498 = vmatprep.subr.bf16.mxu0 %v8916_v41  ;;  %7524 = vmatprep.subr.bf16.mxu1 %v8134_v59 }
 0xc1b   :  { %7500 = vmatpush1.bf16.msra.mxu0 %v8919_v48  ;;  %7526 = vmatpush3.bf16.msra.mxu1 %v8921_v51 }
 0xc1c   :  { %7502 = vmatprep.subr.bf16.mxu0 %v8925_v4  ;;  %7527 = vmatprep.subr.bf16.mxu1 %v8134_v59 }
 0xc1f   :  { %7504 = vmatpush1.bf16.msra.mxu0 %v8928_v13  ;;  %7529 = vmatpush3.bf16.msra.mxu1 %v8932_v16 }
 0xc20   :  { %7506 = vmatprep.subr.bf16.mxu0 %v8934_v22  ;;  %7530 = vmatprep.subr.bf16.mxu1 %v8134_v59 }
 0xc23   :  { %7508 = vmatpush1.bf16.msra.mxu0 %v8938_v53  ;;  %7532 = vmatpush3.bf16.msra.mxu1 %v8942_v60 }
 0xc24   :  { %7534 = vmatprep.subr.bf16.mxu0 %v8841_v63  ;;  %7541 = vmatprep.subr.bf16.mxu1 %v8134_v59 }
 0xcd1   :  { %v3895_v19 = vpop.f32.mrb[46].mxu0  ;;  %v3966_v56 = vpop.f32.mrb[24].mxu1 }
 0xcd2   :  { %v3970_v6 = vadd.f32 %v3895_v19, %v3754_v36  ;;  %v3897_v40 = vpop.f32.mrb[47].mxu0  ;;  %v6394_v12 = vpop.f32.mrb[25].mxu1  ;;  %v5449_v34 = vmul.f32 -1.442695, %v3966_v56 }
 0xcd3   :  { %v3984_v42 = vadd.f32 %v9012_v8, %v3897_v40 }
 0xcd4   :  { %v5448_v25 = vmul.f32 -1.442695, %v3970_v6 }
 0xcd6   :  { %7953 = vpow2.f32 %v5448_v25 }
 0xcd7   :  { %7955 = vpow2.f32 %v5449_v34 }
 0xcd9   :  { %v4068_v30 = vpop.f32.mrb[48].mxu0 }
 0xcda   :  { %v4070_v36 = vpop.f32.mrb[49].mxu0 }
 0xce0   :  { %v7954_v43 = vpop.eup %7953 }
 0xce1   :  { %v3974_v5 = vadd.f32 1.0, %v7954_v43  ;;  %v7956_v23 = vpop.eup %7955 }
 0xce2   :  { %v3981_v28 = vadd.f32 1.0, %v7956_v23 }
 0xce3   :  { %7957 = vrcp.f32 %v3974_v5 }
 0xce4   :  { %7959 = vrcp.f32 %v3981_v28 }
 0xced   :  { %v7958_v52 = vpop.eup %7957 }
 0xcee   :  { %v3985_v61 = vmul.f32 %v7958_v52, %v3984_v42  ;;  %v7960_v11 = vpop.eup %7959 }
 0xcef   :  { %v3988_v20 = vsub.f32 1.0, %v7960_v11  ;;  %v3990_v10 = vmul.f32 %v7960_v11, %v9128_v35 }
 0xcf0   :  { %v3986_v3 = vadd.f32 %v3985_v61, %v3756_v45  ;;  %v4310_v45 = vpop.permute.xlu1 %4309 }
 0xcf1   :  { %vm4311_vm15 = vcmp.eq.s32.totalorder %v8402_v50, %v4310_v45  ;;  %v4624_v45 = vpop.permute.xlu0 %4623 }
 0xcf2   :  { %7961 = vtanh.f32 %v3986_v3  ;;  %v4312_v2 = vsel %vm4311_vm15, 1.0, %v8132_v1  ;;  %vm4625_vm2 = vcmp.eq.s32.totalorder %v8402_v50, %v4624_v45 }
 0xcfc   :  { %v7962_v37 = vpop.eup %7961 }
 0xcfd   :  { %v3989_v33 = vmul.f32 %v7962_v37, %v3988_v20 }
 0xcff   :  { %v9184_v21 = vadd.f32 %v3990_v10, %v3989_v33 }
 0xd01   :  { %4208 = vmatmul.mubr.f32.vlgmr.msra.gmra.mrb[50].mxu0 %v9184_v21  ;;  %6439 = vmatmul.mubr.f32.vlgmr.msra.gmra.mrb[26].mxu1 %v9184_v21 }
 0xd02   :  { %7536 = vmatpush1.bf16.msra.mxu0 %v8843_v14  ;;  %7543 = vmatpush3.bf16.msra.mxu1 %v8846_v62 }
 0xd03   :  { %7538 = vmatprep.subr.bf16.mxu0 %v8850_v27  ;;  %7544 = vmatprep.subr.bf16.mxu1 %v8134_v59 }
 0xd04   :  { %4380 = vmatprep.mubr.f32.mxu0 %v8132_v1  ;;  %6449 = vmatprep.mubr.msk.f32.mxu1 %vm8135_vm0, %v8132_v1 }
 0xd06   :  { %7540 = vmatpush1.bf16.msra.mxu0 %v8853_v38  ;;  %7546 = vmatpush3.bf16.msra.mxu1 %v8856_v44 }
 0xd07   :  { %7548 = vmatprep.subr.bf16.mxu0 %v8861_v0  ;;  %7579 = vmatprep.subr.bf16.mxu1 %v8134_v59 }
 0xd09   :  { %5454 = vmatmul.mubr.msk.f32.vlgmr.msra.gmra.mrb[52].mxu0 %vm245_vm1, %v4312_v2  ;;  %6450 = vmatmul.mubr.msk.f32.vlgmr.msra.gmra.mrb[28].mxu1 %vm245_vm1, %v4312_v2  ;;  %v4626_v2 = vsel %vm4625_vm2, 1.0, %v8132_v1 }
 0xd0a   :  { %7550 = vmatpush1.bf16.msra.mxu0 %v8865_v55  ;;  %7581 = vmatpush3.bf16.msra.mxu1 %v8869_v57 }
 0xd0b   :  { %7552 = vmatprep.subr.bf16.mxu0 %v8874_v58  ;;  %7582 = vmatprep.subr.bf16.mxu1 %v8134_v59 }
 0xd0c   :  { %4521 = vmatprep.mubr.f32.mxu0 %v8132_v1  ;;  %6484 = vmatprep.mubr.msk.f32.mxu1 %vm8135_vm0, %v8132_v1 }
 0xd0e   :  { %7554 = vmatpush1.bf16.msra.mxu0 %v8878_v49  ;;  %7584 = vmatpush3.bf16.msra.mxu1 %v8883_v9 }
 0xd0f   :  { %7556 = vmatprep.subr.bf16.mxu0 %v8887_v17  ;;  %7585 = vmatprep.subr.bf16.mxu1 %v8134_v59 }
 0xd12   :  { %7558 = vmatpush1.bf16.msra.mxu0 %v8890_v32  ;;  %7587 = vmatpush3.bf16.msra.mxu1 %v8893_v46 }
 0xd13   :  { %7560 = vmatprep.subr.bf16.mxu0 %v8897_v54  ;;  %7588 = vmatprep.subr.bf16.mxu1 %v8134_v59 }
 0xd16   :  { %7562 = vmatpush1.bf16.msra.mxu0 %v8900_v7  ;;  %7590 = vmatpush3.bf16.msra.mxu1 %v8903_v15 }
 0xd17   :  { %7564 = vmatprep.subr.bf16.mxu0 %v8907_v47  ;;  %7591 = vmatprep.subr.bf16.mxu1 %v8134_v59 }
 0xd1a   :  { %7566 = vmatpush1.bf16.msra.mxu0 %v8910_v18  ;;  %7593 = vmatpush3.bf16.msra.mxu1 %v8913_v24 }
 0xd1b   :  { %7568 = vmatprep.subr.bf16.mxu0 %v8916_v41  ;;  %7594 = vmatprep.subr.bf16.mxu1 %v8134_v59 }
 0xd1e   :  { %7570 = vmatpush1.bf16.msra.mxu0 %v8919_v48  ;;  %7596 = vmatpush3.bf16.msra.mxu1 %v8921_v51 }
 0xd1f   :  { %7572 = vmatprep.subr.bf16.mxu0 %v8925_v4  ;;  %7597 = vmatprep.subr.bf16.mxu1 %v8134_v59 }
 0xd22   :  { %7574 = vmatpush1.bf16.msra.mxu0 %v8928_v13  ;;  %7599 = vmatpush3.bf16.msra.mxu1 %v8932_v16 }
 0xd23   :  { %7576 = vmatprep.subr.bf16.mxu0 %v8934_v22  ;;  %7600 = vmatprep.subr.bf16.mxu1 %v8134_v59 }
 0xd26   :  { %7578 = vmatpush1.bf16.msra.mxu0 %v8938_v53  ;;  %7602 = vmatpush3.bf16.msra.mxu1 %v8942_v60 }
 0xd27   :  { %7604 = vmatprep.subr.bf16.mxu0 %v8841_v63  ;;  %7611 = vmatprep.subr.bf16.mxu1 %v8134_v59 }
 0xdd4   :  { %v4209_v19 = vpop.f32.mrb[50].mxu0  ;;  %v4280_v56 = vpop.f32.mrb[26].mxu1 }
 0xdd5   :  { %v4284_v6 = vadd.f32 %v4209_v19, %v4068_v30  ;;  %v4211_v40 = vpop.f32.mrb[51].mxu0  ;;  %v6440_v12 = vpop.f32.mrb[27].mxu1  ;;  %v5453_v34 = vmul.f32 -1.442695, %v4280_v56 }
 0xdd6   :  { %v4298_v42 = vadd.f32 %v9012_v8, %v4211_v40 }
 0xdd7   :  { %v5452_v25 = vmul.f32 -1.442695, %v4284_v6 }
 0xdd9   :  { %7963 = vpow2.f32 %v5452_v25 }
 0xdda   :  { %7965 = vpow2.f32 %v5453_v34 }
 0xddc   :  { %v4382_v30 = vpop.f32.mrb[52].mxu0 }
 0xde3   :  { %v7964_v43 = vpop.eup %7963 }
 0xde4   :  { %v4288_v5 = vadd.f32 1.0, %v7964_v43  ;;  %v7966_v23 = vpop.eup %7965 }
 0xde5   :  { %v4295_v28 = vadd.f32 1.0, %v7966_v23 }
 0xde6   :  { %7967 = vrcp.f32 %v4288_v5 }
 0xde7   :  { %7969 = vrcp.f32 %v4295_v28 }
 0xdf0   :  { %v7968_v52 = vpop.eup %7967 }
 0xdf1   :  { %v4299_v61 = vmul.f32 %v7968_v52, %v4298_v42  ;;  %v7970_v3 = vpop.eup %7969 }
 0xdf2   :  { %v4302_v11 = vsub.f32 1.0, %v7970_v3  ;;  %v4304_v33 = vmul.f32 %v7970_v3, %v9184_v21 }
 0xdf3   :  { %v4300_v26 = vadd.f32 %v4299_v61, %v4070_v36  ;;  %v4384_v36 = vpop.f32.mrb[53].mxu0 }
 0xdf5   :  { %7971 = vtanh.f32 %v4300_v26 }
 0xdff   :  { %v7972_v20 = vpop.eup %7971 }
 0xe00   :  { %v4303_v37 = vmul.f32 %v7972_v20, %v4302_v11 }
 0xe02   :  { %v9244_v10 = vadd.f32 %v4304_v33, %v4303_v37 }
 0xe04   :  { %4522 = vmatmul.mubr.f32.vlgmr.msra.gmra.mrb[54].mxu0 %v9244_v10  ;;  %6485 = vmatmul.mubr.f32.vlgmr.msra.gmra.mrb[28].mxu1 %v9244_v10 }
 0xe05   :  { %7606 = vmatpush1.bf16.msra.mxu0 %v8843_v14  ;;  %7613 = vmatpush3.bf16.msra.mxu1 %v8846_v62 }
 0xe06   :  { %7608 = vmatprep.subr.bf16.mxu0 %v8850_v27  ;;  %7614 = vmatprep.subr.bf16.mxu1 %v8134_v59 }
 0xe07   :  { %4694 = vmatprep.mubr.f32.mxu0 %v8132_v1  ;;  %6495 = vmatprep.mubr.msk.f32.mxu1 %vm8135_vm0, %v8132_v1 }
 0xe09   :  { %7610 = vmatpush1.bf16.msra.mxu0 %v8853_v38  ;;  %7616 = vmatpush3.bf16.msra.mxu1 %v8856_v44 }
 0xe0a   :  { %7618 = vmatprep.subr.bf16.mxu0 %v8861_v0  ;;  %7649 = vmatprep.subr.bf16.mxu1 %v8134_v59 }
 0xe0c   :  { %5458 = vmatmul.mubr.msk.f32.vlgmr.msra.gmra.mrb[56].mxu0 %vm245_vm1, %v4626_v2  ;;  %6496 = vmatmul.mubr.msk.f32.vlgmr.msra.gmra.mrb[30].mxu1 %vm245_vm1, %v4626_v2  ;;  %v5265_v2 = vld [vmem:[#allocation10 + $0x40] sm:$0xff] }
 0xe0d   :  { %7620 = vmatpush1.bf16.msra.mxu0 %v8865_v55  ;;  %7651 = vmatpush3.bf16.msra.mxu1 %v8869_v57 }
 0xe0e   :  { %7622 = vmatprep.subr.bf16.mxu0 %v8874_v58  ;;  %7652 = vmatprep.subr.bf16.mxu1 %v8134_v59 }
 0xe0f   :  { %4835 = vmatprep.mubr.f32.mxu0 %v8132_v1  ;;  %6530 = vmatprep.mubr.msk.f32.mxu1 %vm8135_vm0, %v8132_v1 }
 0xe11   :  { %7624 = vmatpush1.bf16.msra.mxu0 %v8878_v49  ;;  %7654 = vmatpush3.bf16.msra.mxu1 %v8883_v9 }
 0xe12   :  { %7626 = vmatprep.subr.bf16.mxu0 %v8887_v17  ;;  %7655 = vmatprep.subr.bf16.mxu1 %v8134_v59 }
 0xe15   :  { %7628 = vmatpush1.bf16.msra.mxu0 %v8890_v32  ;;  %7657 = vmatpush3.bf16.msra.mxu1 %v8893_v46 }
 0xe16   :  { %7630 = vmatprep.subr.bf16.mxu0 %v8897_v54  ;;  %7658 = vmatprep.subr.bf16.mxu1 %v8134_v59 }
 0xe19   :  { %7632 = vmatpush1.bf16.msra.mxu0 %v8900_v7  ;;  %7660 = vmatpush3.bf16.msra.mxu1 %v8903_v15 }
 0xe1a   :  { %7634 = vmatprep.subr.bf16.mxu0 %v8907_v47  ;;  %7661 = vmatprep.subr.bf16.mxu1 %v8134_v59 }
 0xe1d   :  { %7636 = vmatpush1.bf16.msra.mxu0 %v8910_v18  ;;  %7663 = vmatpush3.bf16.msra.mxu1 %v8913_v24 }
 0xe1e   :  { %7638 = vmatprep.subr.bf16.mxu0 %v8916_v41  ;;  %7664 = vmatprep.subr.bf16.mxu1 %v8134_v59 }
 0xe21   :  { %7640 = vmatpush1.bf16.msra.mxu0 %v8919_v48  ;;  %7666 = vmatpush3.bf16.msra.mxu1 %v8921_v51 }
 0xe22   :  { %7642 = vmatprep.subr.bf16.mxu0 %v8925_v4  ;;  %7667 = vmatprep.subr.bf16.mxu1 %v8134_v59 }
 0xe25   :  { %7644 = vmatpush1.bf16.msra.mxu0 %v8928_v13  ;;  %7669 = vmatpush3.bf16.msra.mxu1 %v8932_v16 }
 0xe26   :  { %7646 = vmatprep.subr.bf16.mxu0 %v8934_v22  ;;  %7670 = vmatprep.subr.bf16.mxu1 %v8134_v59 }
 0xe29   :  { %7648 = vmatpush1.bf16.msra.mxu0 %v8938_v53  ;;  %7672 = vmatpush3.bf16.msra.mxu1 %v8942_v60 }
 0xe2a   :  { %7674 = vmatprep.subr.bf16.mxu0 %v8841_v63  ;;  %7681 = vmatprep.subr.bf16.mxu1 %v8134_v59 }
 0xed7   :  { %v4523_v29 = vpop.f32.mrb[54].mxu0  ;;  %v4594_v19 = vpop.f32.mrb[28].mxu1 }
 0xed8   :  { %v4598_v56 = vadd.f32 %v4523_v29, %v4382_v30  ;;  %v4525_v6 = vpop.f32.mrb[55].mxu0  ;;  %v6486_v40 = vpop.f32.mrb[29].mxu1  ;;  %v5457_v25 = vmul.f32 -1.442695, %v4594_v19  ;;  %v5263_v30 = vld [vmem:[#allocation10 + $0x30] sm:$0xff]  ;;  %v5266_v29 = vld [vmem:[#allocation10 + $0x48] sm:$0xff] }
 0xed9   :  { %v4612_v28 = vadd.f32 %v9012_v8, %v4525_v6  ;;  %v7759_v19 = vpack.c.bf16 %v5266_v29, %v5265_v2  ;;  %v5268_v6 = vld [vmem:[#allocation10 + $0x58] sm:$0xff] }
 0xeda   :  { %v5456_v12 = vmul.f32 -1.442695, %v4598_v56  ;;  %v5267_v56 = vld [vmem:[#allocation10 + $0x50] sm:$0xff] }
 0xedb   :  { %v7763_v40 = vpack.c.bf16 %v5268_v6, %v5267_v56 }
 0xedc   :  { %7973 = vpow2.f32 %v5456_v12  ;;  %v5269_v12 = vld [vmem:[#allocation10 + $0x60] sm:$0xff] }
 0xedd   :  { %7975 = vpow2.f32 %v5457_v25  ;;  %v5270_v25 = vld [vmem:[#allocation10 + $0x68] sm:$0xff] }
 0xee6   :  { %v7974_v34 = vpop.eup %7973 }
 0xee7   :  { %v4602_v43 = vadd.f32 1.0, %v7974_v34  ;;  %v7976_v5 = vpop.eup %7975  ;;  %v5271_v34 = vld [vmem:[#allocation10 + $0x70] sm:$0xff] }
 0xee8   :  { %v4609_v23 = vadd.f32 1.0, %v7976_v5 }
 0xee9   :  { %7977 = vrcp.f32 %v4602_v43  ;;  %v5272_v43 = vld [vmem:[#allocation10 + $0x78] sm:$0xff] }
 0xeea   :  { %7979 = vrcp.f32 %v4609_v23  ;;  %v7771_v5 = vpack.c.bf16 %v5272_v43, %v5271_v34 }
 0xef3   :  { %v7978_v42 = vpop.eup %7977 }
 0xef4   :  { %v4613_v63 = vmul.f32 %v7978_v42, %v4612_v28  ;;  %v7980_v61 = vpop.eup %7979 }
 0xef5   :  { %v4616_v26 = vsub.f32 1.0, %v7980_v61  ;;  %v4618_v20 = vmul.f32 %v7980_v61, %v9244_v10 }
 0xef6   :  { %v4614_v52 = vadd.f32 %v4613_v63, %v4384_v36  ;;  %v5264_v36 = vld [vmem:[#allocation10 + $0x38] sm:$0xff] }
 0xef7   :  { %v7755_v45 = vpack.c.bf16 %v5264_v36, %v5263_v30 }
 0xef8   :  { %7981 = vtanh.f32 %v4614_v52 }
 0xf02   :  { %v7982_v3 = vpop.eup %7981 }
 0xf03   :  { %v4617_v11 = vmul.f32 %v7982_v3, %v4616_v26 }
 0xf05   :  { %v9300_v37 = vadd.f32 %v4618_v20, %v4617_v11  ;;  %v8005_v20 = vld [vmem:[%s9403_s7] ss:$0 sm:$0xff] }
 0xf07   :  { %4836 = vmatmul.mubr.f32.vlgmr.msra.gmra.mrb[58].mxu0 %v9300_v37  ;;  %6531 = vmatmul.mubr.f32.vlgmr.msra.gmra.mrb[30].mxu1 %v9300_v37 }
 0xf08   :  { %7676 = vmatpush1.bf16.msra.mxu0 %v8843_v14  ;;  %7683 = vmatpush3.bf16.msra.mxu1 %v8846_v62  ;;  %v4696_v14 = vpop.f32.mrb[56].mxu0  ;;  %v4938_v62 = vpop.permute.xlu1 %4937 }
 0xf09   :  { %7678 = vmatprep.subr.bf16.mxu0 %v8850_v27  ;;  %7684 = vmatprep.subr.bf16.mxu1 %v8134_v59  ;;  %v4698_v33 = vpop.f32.mrb[57].mxu0  ;;  %vm4939_vm3 = vcmp.eq.s32.totalorder %v8402_v50, %v4938_v62  ;;  %v5258_v50 = vld [vmem:[#allocation10 + $0x8] sm:$0xff]  ;;  %v5466_v62 = vld [vmem:[%s9405_s9] ss:$0 sm:$0xff] }
 0xf0a   :  { %5008 = vmatprep.mubr.f32.mxu0 %v8132_v1  ;;  %6541 = vmatprep.mubr.msk.f32.mxu1 %vm8135_vm0, %v8132_v1  ;;  %v4940_v27 = vsel %vm4939_vm3, 1.0, %v8132_v1 }
 0xf0c   :  { %7680 = vmatpush1.bf16.msra.mxu0 %v8853_v38  ;;  %7686 = vmatpush3.bf16.msra.mxu1 %v8856_v44 }
 0xf0d   :  { %7688 = vmatprep.subr.bf16.mxu0 %v8861_v0  ;;  %7719 = vmatprep.subr.bf16.mxu1 %v8134_v59 }
 0xf0f   :  { %5462 = vmatmul.mubr.msk.f32.vlgmr.msra.gmra.mrb[60].mxu0 %vm245_vm1, %v4940_v27  ;;  %6542 = vmatmul.mubr.msk.f32.vlgmr.msra.gmra.mrb[32].mxu1 %vm245_vm1, %v4940_v27 }
 0xf10   :  { %7690 = vmatpush1.bf16.msra.mxu0 %v8865_v55  ;;  %7721 = vmatpush3.bf16.msra.mxu1 %v8869_v57 }
 0xf11   :  { %7692 = vmatprep.subr.bf16.mxu0 %v8874_v58  ;;  %7722 = vmatprep.subr.bf16.mxu1 %v8134_v59 }
 0xf12   :  { %5149 = vmatprep.mubr.f32.mxu0 %v8132_v1  ;;  %6576 = vmatprep.mubr.msk.f32.mxu1 %vm8135_vm0, %v8132_v1  ;;  %v5257_v1 = vld [vmem:[#allocation10] sm:$0xff] }
 0xf13   :  { %v7743_v38 = vpack.c.bf16 %v5258_v50, %v5257_v1 }
 0xf14   :  { %7694 = vmatpush1.bf16.msra.mxu0 %v8878_v49  ;;  %7724 = vmatpush3.bf16.msra.mxu1 %v8883_v9 }
 0xf15   :  { %7696 = vmatprep.subr.bf16.mxu0 %v8887_v17  ;;  %7725 = vmatprep.subr.bf16.mxu1 %v8134_v59 }
 0xf18   :  { %7698 = vmatpush1.bf16.msra.mxu0 %v8890_v32  ;;  %7727 = vmatpush3.bf16.msra.mxu1 %v8893_v46 }
 0xf19   :  { %7700 = vmatprep.subr.bf16.mxu0 %v8897_v54  ;;  %7728 = vmatprep.subr.bf16.mxu1 %v8134_v59 }
 0xf1c   :  { %7702 = vmatpush1.bf16.msra.mxu0 %v8900_v7  ;;  %7730 = vmatpush3.bf16.msra.mxu1 %v8903_v15 }
 0xf1d   :  { %7704 = vmatprep.subr.bf16.mxu0 %v8907_v47  ;;  %7731 = vmatprep.subr.bf16.mxu1 %v8134_v59 }
 0xf20   :  { %7706 = vmatpush1.bf16.msra.mxu0 %v8910_v18  ;;  %7733 = vmatpush3.bf16.msra.mxu1 %v8913_v24 }
 0xf21   :  { %7708 = vmatprep.subr.bf16.mxu0 %v8916_v41  ;;  %7734 = vmatprep.subr.bf16.mxu1 %v8134_v59 }
 0xf24   :  { %7710 = vmatpush1.bf16.msra.mxu0 %v8919_v48  ;;  %7736 = vmatpush3.bf16.msra.mxu1 %v8921_v51  ;;  %v5259_v48 = vld [vmem:[#allocation10 + $0x10] sm:$0xff]  ;;  %v5260_v51 = vld [vmem:[#allocation10 + $0x18] sm:$0xff] }
 0xf25   :  { %7712 = vmatprep.subr.bf16.mxu0 %v8925_v4  ;;  %7737 = vmatprep.subr.bf16.mxu1 %v8134_v59 }
 0xf28   :  { %7714 = vmatpush1.bf16.msra.mxu0 %v8928_v13  ;;  %7739 = vmatpush3.bf16.msra.mxu1 %v8932_v16 }
 0xf29   :  { %7716 = vmatprep.subr.bf16.mxu0 %v8934_v22  ;;  %7740 = vmatprep.subr.bf16.mxu1 %v8134_v59  ;;  %v7747_v22 = vpack.c.bf16 %v5260_v51, %v5259_v48 }
 0xf2c   :  { %7718 = vmatpush1.bf16.msra.mxu0 %v8938_v53  ;;  %7742 = vmatpush3.bf16.msra.mxu1 %v8942_v60  ;;  %v5261_v53 = vld [vmem:[#allocation10 + $0x20] sm:$0xff]  ;;  %v5262_v60 = vld [vmem:[#allocation10 + $0x28] sm:$0xff] }
 0xf2d   :  { %7744 = vmatprep.subr.bf16.mxu0 %v7743_v38 }
 0xfda   :  { %v4837_v44 = vpop.f32.mrb[58].mxu0  ;;  %v4908_v0 = vpop.f32.mrb[30].mxu1 }
 0xfdb   :  { %v4912_v55 = vadd.f32 %v4837_v44, %v4696_v14  ;;  %v4839_v57 = vpop.f32.mrb[59].mxu0  ;;  %v6532_v58 = vpop.f32.mrb[31].mxu1  ;;  %v5461_v9 = vmul.f32 -1.442695, %v4908_v0 }
 0xfdc   :  { %v4926_v54 = vadd.f32 %v9012_v8, %v4839_v57  ;;  %v7751_v8 = vpack.c.bf16 %v5262_v60, %v5261_v53 }
 0xfdd   :  { %v5460_v49 = vmul.f32 -1.442695, %v4912_v55 }
 0xfdf   :  { %7983 = vpow2.f32 %v5460_v49 }
 0xfe0   :  { %7985 = vpow2.f32 %v5461_v9 }
 0xfe2   :  { %v5010_v23 = vpop.f32.mrb[60].mxu0 }
 0xfe3   :  { %v5012_v28 = vpop.f32.mrb[61].mxu0 }
 0xfe9   :  { %v7984_v17 = vpop.eup %7983 }
 0xfea   :  { %v4916_v32 = vadd.f32 1.0, %v7984_v17  ;;  %v7986_v46 = vpop.eup %7985 }
 0xfeb   :  { %v4923_v59 = vadd.f32 1.0, %v7986_v46 }
 0xfec   :  { %7987 = vrcp.f32 %v4916_v32 }
 0xfed   :  { %7989 = vrcp.f32 %v4923_v59 }
 0xff6   :  { %v7988_v7 = vpop.eup %7987 }
 0xff7   :  { %v4927_v15 = vmul.f32 %v7988_v7, %v4926_v54  ;;  %v7990_v18 = vpop.eup %7989 }
 0xff8   :  { %v4930_v24 = vsub.f32 1.0, %v7990_v18  ;;  %v4932_v13 = vmul.f32 %v7990_v18, %v9300_v37 }
 0xff9   :  { %v4928_v47 = vadd.f32 %v4927_v15, %v4698_v33 }
 0xffb   :  { %7991 = vtanh.f32 %v4928_v47 }
0x1005   :  { %v7992_v41 = vpop.eup %7991 }
0x1006   :  { %v4931_v4 = vmul.f32 %v7992_v41, %v4930_v24 }
0x1008   :  { %v9354_v16 = vadd.f32 %v4932_v13, %v4931_v4 }
0x100a   :  { %5150 = vmatmul.mubr.f32.vlgmr.msra.gmra.mrb[62].mxu0 %v9354_v16  ;;  %6577 = vmatmul.mubr.f32.vlgmr.msra.gmra.mrb[32].mxu1 %v9354_v16 }
0x100b   :  { %7746 = vmatpush3.bf16.msra.mxu0 %v7743_v38  ;;  %6611 = vmatprep.mubr.f32.mxu0 %v9016_v31  ;;  %v7767_v31 = vpack.c.bf16 %v5270_v25, %v5269_v12 }
0x100c   :  { %7748 = vmatprep.subr.bf16.mxu0 %v7747_v22 }
0x100f   :  { %7750 = vmatpush3.bf16.msra.mxu0 %v7747_v22 }
0x1010   :  { %7752 = vmatprep.subr.bf16.mxu0 %v7751_v8 }
0x1013   :  { %7754 = vmatpush3.bf16.msra.mxu0 %v7751_v8 }
0x1014   :  { %7756 = vmatprep.subr.bf16.mxu0 %v7755_v45 }
0x1017   :  { %7758 = vmatpush3.bf16.msra.mxu0 %v7755_v45 }
0x1018   :  { %7760 = vmatprep.subr.bf16.mxu0 %v7759_v19 }
0x101b   :  { %7762 = vmatpush3.bf16.msra.mxu0 %v7759_v19 }
0x101c   :  { %7764 = vmatprep.subr.bf16.mxu0 %v7763_v40 }
0x101f   :  { %7766 = vmatpush3.bf16.msra.mxu0 %v7763_v40 }
0x1020   :  { %7768 = vmatprep.subr.bf16.mxu0 %v7767_v31 }
0x1023   :  { %7770 = vmatpush3.bf16.msra.mxu0 %v7767_v31 }
0x1024   :  { %7772 = vmatprep.subr.bf16.mxu0 %v7771_v5 }
0x1027   :  { %7774 = vmatpush3.bf16.msra.mxu0 %v7771_v5 }
0x102a   :  { %6612 = vmatmul.mubr.f32.vlgmr.msra.gmra.mrb[64].mxu0 %v9072_v39 }
0x102b   :  { %6614 = vmatprep.mubr.f32.mxu0 %v9128_v35 }
0x102e   :  { %6615 = vmatmul.mubr.f32.gmra.mrb[66].mxu0 %v9184_v21 }
0x102f   :  { %6617 = vmatprep.mubr.f32.mxu0 %v9244_v10 }
0x1032   :  { %6618 = vmatmul.mubr.f32.gmra.mrb[68].mxu0 %v9300_v37 }
0x1033   :  { %6620 = vmatprep.mubr.f32.mxu0 %v9354_v16 }
0x10dd   :  { %v5151_v42 = vpop.f32.mrb[62].mxu0  ;;  %v5222_v63 = vpop.f32.mrb[32].mxu1 }
0x10de   :  { %v5226_v52 = vadd.f32 %v5151_v42, %v5010_v23  ;;  %v5153_v61 = vpop.f32.mrb[63].mxu0  ;;  %v6578_v26 = vpop.f32.mrb[33].mxu1  ;;  %v5465_v39 = vmul.f32 -1.442695, %v5222_v63 }
0x10df   :  { %v5240_v37 = vadd.f32 %v8005_v20, %v5153_v61 }
0x10e0   :  { %v5464_v3 = vmul.f32 -1.442695, %v5226_v52 }
0x10e2   :  { %7993 = vpow2.f32 %v5464_v3 }
0x10e3   :  { %7995 = vpow2.f32 %v5465_v39 }
0x10ec   :  { %v7994_v35 = vpop.eup %7993 }
0x10ed   :  { %v5230_v11 = vadd.f32 1.0, %v7994_v35  ;;  %v7996_v21 = vpop.eup %7995 }
0x10ee   :  { %v5237_v10 = vadd.f32 1.0, %v7996_v21 }
0x10ef   :  { %7997 = vrcp.f32 %v5230_v11 }
0x10f0   :  { %7999 = vrcp.f32 %v5237_v10 }
0x10f9   :  { %v7998_v14 = vpop.eup %7997 }
0x10fa   :  { %v5241_v33 = vmul.f32 %v7998_v14, %v5240_v37  ;;  %v8000_v49 = vpop.eup %7999 }
0x10fb   :  { %v5244_v59 = vsub.f32 1.0, %v8000_v49  ;;  %v5246_v15 = vmul.f32 %v8000_v49, %v9354_v16 }
0x10fc   :  { %v5242_v27 = vadd.f32 %v5241_v33, %v5012_v28 }
0x10fd   :  { %v6613_v1 = vpop.f32.mrb[64].mxu0 }
0x10fe   :  { %8001 = vtanh.f32 %v5242_v27  ;;  %v5352_v50 = vadd.f32 %v6613_v1, %v5466_v62  ;;  %v5346_v38 = vpop.f32.mrb[65].mxu0 }
0x10ff   :  { %v5347_v44 = vadd.f32 %v5466_v62, %v5346_v38 }
0x1100   :  { %5386 = vst [vmem:[%s9406_s10 + $0x8] sm:$0xff] %v5352_v50 }
0x1101   :  { %5385 = vst [vmem:[%s9406_s10] sm:$0xff] %v5347_v44  ;;  %v6616_v0 = vpop.f32.mrb[66].mxu0 }
0x1102   :  { %v5362_v55 = vadd.f32 %v6616_v0, %v5466_v62  ;;  %v5356_v57 = vpop.f32.mrb[67].mxu0 }
0x1103   :  { %v5357_v58 = vadd.f32 %v5466_v62, %v5356_v57 }
0x1104   :  { %5388 = vst [vmem:[%s9406_s10 + $0x18] sm:$0xff] %v5362_v55 }
0x1105   :  { %5387 = vst [vmem:[%s9406_s10 + $0x10] sm:$0xff] %v5357_v58  ;;  %v6619_v9 = vpop.f32.mrb[68].mxu0 }
0x1106   :  { %v5372_v17 = vadd.f32 %v6619_v9, %v5466_v62  ;;  %v5366_v32 = vpop.f32.mrb[69].mxu0 }
0x1107   :  { %v5367_v46 = vadd.f32 %v5466_v62, %v5366_v32 }
0x1108   :  { %v8002_v54 = vpop.eup %8001  ;;  %5390 = vst [vmem:[%s9406_s10 + $0x28] sm:$0xff] %v5372_v17 }
0x1109   :  { %5389 = vst [vmem:[%s9406_s10 + $0x20] sm:$0xff] %v5367_v46  ;;  %v5245_v7 = vmul.f32 %v8002_v54, %v5244_v59 }
0x110b   :  { %v5247_v47 = vadd.f32 %v5246_v15, %v5245_v7 }
0x110d   :  { %6621 = vmatmul.mubr.f32.gmra.mrb[70].mxu0 %v5247_v47 }
0x11e0   :  { %v6622_v18 = vpop.f32.mrb[70].mxu0 }
0x11e1   :  { %v5382_v24 = vadd.f32 %v6622_v18, %v5466_v62  ;;  %v5376_v41 = vpop.f32.mrb[71].mxu0 }
0x11e2   :  { %v5377_v48 = vadd.f32 %v5466_v62, %v5376_v41 }
0x11e3   :  { %5392 = vst [vmem:[%s9406_s10 + $0x38] sm:$0xff] %v5382_v24 }
0x11e4   :  { %5391 = vst [vmem:[%s9406_s10 + $0x30] sm:$0xff] %v5377_v48 }
0x11e5   :  { %5397 = vsyncpa [#allocation4], 1 }
0x11e6   :  { %5398 = vsyncpa [#allocation6], 1 }
0x11e7   :  { %5399 = vsyncpa [#allocation9], 1 }

</bundles_post_ra>
